<compile_context>
chip_gen: v7x
topology: tpu7x:2x2x1
jax: 0.10.0
libtpu: 0.0.40
codegen_flags: <defaults>
</compile_context>

<pallas_src>
import functools
import numpy as np

import jax
import jax.numpy as jnp
from jax.experimental import pallas as pl
from jax.experimental.pallas import tpu as pltpu

EXPANSION = 4  # config.EXPANSION in SlowFast

_VMEM_BUDGET = 24 * 1024 * 1024      # target working-set per kernel
_VMEM_FLOOR = 16 * 1024 * 1024
_VMEM_CEIL = 48 * 1024 * 1024        # < 64 MiB physical VMEM per v7x core
_ACC_BUDGET = 512 * 1024             # live f32 accumulator strip in conv3x3


def _round_up(x, m):
    return (x + m - 1) // m * m


def _vmem_limit(footprint_bytes):
    return int(min(_VMEM_CEIL, max(_VMEM_FLOOR, 2 * footprint_bytes)))


def _pick_tk(K, cap=512):
    """Largest multiple-of-128 divisor of K that is <= cap, else K (full-K)."""
    if K <= cap:
        return K
    t = (cap // 128) * 128
    while t >= 128:
        if K % t == 0:
            return t
        t -= 128
    return K


# --------------------------------------------------------------------------- #
# Pallas kernel 1: matmul + BN shift (+ residual) (+ ReLU)
#   nk == 1 -> scratch-free direct kernel; nk > 1 -> f32 VMEM accumulator.
# --------------------------------------------------------------------------- #
def _mm_bn_direct_kernel(*refs, relu, has_res):
    if has_res:
        x_ref, w_ref, shift_ref, res_ref, o_ref = refs
    else:
        x_ref, w_ref, shift_ref, o_ref = refs
        res_ref = None
    y = jnp.dot(x_ref[...].astype(jnp.bfloat16), w_ref[...],
                preferred_element_type=jnp.float32) + shift_ref[...]
    if res_ref is not None:
        y = y + res_ref[...].astype(jnp.float32)
    if relu:
        y = jnp.maximum(y, 0.0)
    o_ref[...] = y.astype(o_ref.dtype)


def _mm_bn_acc_kernel(*refs, relu, has_res):
    if has_res:
        x_ref, w_ref, shift_ref, res_ref, o_ref, acc_ref = refs
    else:
        x_ref, w_ref, shift_ref, o_ref, acc_ref = refs
        res_ref = None
    k = pl.program_id(2)

    @pl.when(k == 0)
    def _():
        acc_ref[...] = jnp.zeros_like(acc_ref)

    acc_ref[...] += jnp.dot(x_ref[...].astype(jnp.bfloat16), w_ref[...],
                            preferred_element_type=jnp.float32)

    @pl.when(k == pl.num_programs(2) - 1)
    def _():
        y = acc_ref[...] + shift_ref[...]
        if res_ref is not None:
            y = y + res_ref[...].astype(jnp.float32)
        if relu:
            y = jnp.maximum(y, 0.0)
        o_ref[...] = y.astype(o_ref.dtype)


def matmul_bn(x2d, wmat, shift, *, relu, residual=None,
              out_dtype=jnp.bfloat16, tm_max=512):
    """y = maybe_relu( x @ w + shift [+ residual] ), bf16 MXU inputs, f32 acc.

    x2d:      (M, K)   any float dtype (cast to bf16 inside the kernel)
    wmat:     (K, Cp)  bf16, BN scale pre-folded, Cp % 128 == 0
    shift:    (1, Cp)  f32
    residual: (M, Cp)  optional; residual add + final ReLU are fused.
    """
    M, K = x2d.shape
    Kw, Cp = wmat.shape
    assert Kw == K and Cp % 128 == 0
    xb = x2d.dtype.itemsize
    ob = np.dtype(out_dtype).itemsize
    rb = residual.dtype.itemsize if residual is not None else 0

    tm = min(tm_max, _round_up(M, 16))
    tk = _pick_tk(K)

    def footprint(tm_, tk_, tn_):
        b = 2 * tm_ * tk_ * xb            # activations (double buffered)
        b += 2 * tk_ * tn_ * 2            # weights (bf16)
        b += 2 * tm_ * tn_ * ob           # output
        b += 2 * tn_ * 4                  # shift
        b += tm_ * tn_ * 4                # f32 accumulator scratch (nk > 1)
        if residual is not None:
            b += 2 * tm_ * tn_ * rb
        return b

    # Prefer a single N tile so the activation matrix is streamed once.
    tn = 128
    for cand in range(Cp, 127, -128):
        if Cp % cand == 0 and footprint(tm, tk, cand) <= _VMEM_BUDGET:
            tn = cand
            break

    nm, nn, nk = pl.cdiv(M, tm), Cp // tn, K // tk
    # v7x shards "parallel" axes over two TensorCores: keep >= 2 blocks.
    if nm * nn < 2 and M >= 32:
        tm = _round_up(pl.cdiv(M, 2), 16)
        nm = pl.cdiv(M, tm)

    has_res = residual is not None
    args = [x2d, wmat, shift] + ([residual] if has_res else [])

    if nk == 1:
        in_specs = [
            pl.BlockSpec((tm, K), lambda i, j: (i, 0)),
            pl.BlockSpec((K, tn), lambda i, j: (0, j)),
            pl.BlockSpec((1, tn), lambda i, j: (0, j)),
        ]
        if has_res:
            in_specs.append(pl.BlockSpec((tm, tn), lambda i, j: (i, j)))
        out_spec = pl.BlockSpec((tm, tn), lambda i, j: (i, j))
        grid = (nm, nn)
        kernel = functools.partial(_mm_bn_direct_kernel, relu=relu, has_res=has_res)
        scratch = []
        dims = ("parallel", "parallel")
    else:
        in_specs = [
            pl.BlockSpec((tm, tk), lambda i, j, k: (i, k)),
            pl.BlockSpec((tk, tn), lambda i, j, k: (k, j)),
            pl.BlockSpec((1, tn), lambda i, j, k: (0, j)),
        ]
        if has_res:
            in_specs.append(pl.BlockSpec((tm, tn), lambda i, j, k: (i, j)))
        out_spec = pl.BlockSpec((tm, tn), lambda i, j, k: (i, j))
        grid = (nm, nn, nk)
        kernel = functools.partial(_mm_bn_acc_kernel, relu=relu, has_res=has_res)
        scratch = [pltpu.VMEM((tm, tn), jnp.float32)]
        dims = ("parallel", "parallel", "arbitrary")

    return pl.pallas_call(
        kernel,
        out_shape=jax.ShapeDtypeStruct((M, Cp), out_dtype),
        grid_spec=pltpu.PrefetchScalarGridSpec(
            num_scalar_prefetch=0,
            grid=grid,
            in_specs=in_specs,
            out_specs=out_spec,
            scratch_shapes=scratch,
        ),
        compiler_params=pltpu.CompilerParams(
            dimension_semantics=dims,
            vmem_limit_bytes=_vmem_limit(footprint(tm, tk, tn)),
        ),
    )(*args)


# --------------------------------------------------------------------------- #
# Pallas kernel 2: fused (1,3,3) conv + BN shift + ReLU (stride 1, pad 1)
#   One NDHWC plane per grid step.  The zero-padded halo plane is built in
#   VMEM (no HBM pad/de-pad), the kw taps are folded into the contraction dim
#   (3 dots of K=3C) and the rows are processed in strips so the live f32
#   accumulator stays small.
# --------------------------------------------------------------------------- #
def _conv3x3_bn_relu_kernel(x_ref, w_ref, shift_ref, o_ref, *, strip, wpad):
    _, H, W, C = x_ref.shape
    Co = o_ref.shape[-1]
    Wp = wpad + 2

    # Zero-padded plane built in VMEM (value form; never round-trips HBM).
    x = x_ref[0].astype(jnp.bfloat16)                       # (H, W, C)
    zl = jnp.zeros((H, 1, C), jnp.bfloat16)
    zr = jnp.zeros((H, Wp - W - 1, C), jnp.bfloat16)
    zrow = jnp.zeros((1, Wp, C), jnp.bfloat16)
    xp = jnp.concatenate([zl, x, zr], axis=1)               # (H, Wp, C)
    xp = jnp.concatenate([zrow, xp, zrow], axis=0)          # (H+2, Wp, C)

    # Fold the kw taps into the contraction dim: (H+2, wpad, 3C).
    xw = jnp.concatenate(
        [xp[:, 0:wpad, :], xp[:, 1:wpad + 1, :], xp[:, 2:wpad + 2, :]], axis=-1)

    shift = shift_ref[...]
    for r0 in range(0, H, strip):
        sh = min(strip, H - r0)
        acc = jnp.zeros((sh * wpad, Co), jnp.float32)
        for kh in range(3):
            lhs = xw[r0 + kh:r0 + kh + sh].reshape(sh * wpad, 3 * C)
            acc = acc + jnp.dot(lhs, w_ref[kh],
                                preferred_element_type=jnp.float32)
        y = jnp.maximum(acc + shift, 0.0).astype(o_ref.dtype)
        o_ref[0, r0:r0 + sh, :, :] = y.reshape(sh, wpad, Co)[:, :W, :]


def conv3x3_bn_relu(x_planes, w_kh, shift, *, out_dtype=jnp.bfloat16):
    """x_planes: (P, H, W, C) bf16 (unpadded), C % 128 == 0
       w_kh:     (3, 3C, Co) bf16 -- kh-major, kw folded into K, BN scale folded
       shift:    (1, Co) f32
       returns   (P, H, W, Co)   [stride 1, spatial pad 1]"""
    P, H, W, C = x_planes.shape
    kh3, K3, Co = w_kh.shape
    assert kh3 == 3 and K3 == 3 * C and Co % 128 == 0
    wpad = _round_up(W, 16)                   # keeps in-kernel reshapes tile-aligned

    def footprint(tn_):
        b = 2 * H * W * C * 2                 # input plane (double buffered)
        b += (H + 2) * (wpad + 2) * C * 2     # padded plane
        b += 2 * 3 * (H + 2) * wpad * C * 2   # kw-folded LHS (+ relayout headroom)
        b += 2 * 3 * K3 * tn_ * 2             # weights
        b += 2 * H * W * tn_ * 2              # output block
        b += 2 * tn_ * 4
        return b

    tn = 128
    for cand in range(Co, 127, -128):
        if Co % cand == 0 and footprint(cand) <= _VMEM_BUDGET:
            tn = cand
            break

    strip = int(max(1, min(H, _ACC_BUDGET // (wpad * tn * 4))))

    return pl.pallas_call(
        functools.partial(_conv3x3_bn_relu_kernel, strip=strip, wpad=wpad),
        out_shape=jax.ShapeDtypeStruct((P, H, W, Co), out_dtype),
        grid_spec=pltpu.PrefetchScalarGridSpec(
            num_scalar_prefetch=0,
            grid=(P, Co // tn),
            in_specs=[
                pl.BlockSpec((1, H, W, C), lambda p, j: (p, 0, 0, 0)),
                # grid-invariant weight index when Co // tn == 1 -> DMA'd once
                pl.BlockSpec((3, K3, tn), lambda p, j: (0, 0, j)),
                pl.BlockSpec((1, tn), lambda p, j: (0, j)),
            ],
            out_specs=pl.BlockSpec((1, H, W, tn), lambda p, j: (p, 0, 0, j)),
        ),
        compiler_params=pltpu.CompilerParams(
            dimension_semantics=("parallel", "parallel"),
            vmem_limit_bytes=_vmem_limit(footprint(tn)),
        ),
    )(x_planes, w_kh, shift)


# --------------------------------------------------------------------------- #
# Pallas kernel 3: fused (3,1,1) temporal conv + BN shift + ReLU (pad (1,0,0))
#   Tap grid axis with a D-shifted, boundary-masked input index_map; no im2col.
# --------------------------------------------------------------------------- #
def _temporal3_bn_relu_kernel(x_ref, w_ref, shift_ref, o_ref, acc_ref):
    d = pl.program_id(2)
    t = pl.program_id(3)
    nd = pl.num_programs(2)

    @pl.when(t == 0)
    def _():
        acc_ref[...] = jnp.zeros_like(acc_ref)

    src = d + t - 1
    @pl.when(jnp.logical_and(src >= 0, src < nd))
    def _():
        acc_ref[...] += jnp.dot(x_ref[0, 0].astype(jnp.bfloat16), w_ref[t],
                                preferred_element_type=jnp.float32)

    @pl.when(t == pl.num_programs(3) - 1)
    def _():
        o_ref[0, 0] = jnp.maximum(acc_ref[...] + shift_ref[...], 0.0
                                  ).astype(o_ref.dtype)


def conv_temporal3_bn_relu(x, w_taps, shift, *, out_dtype=jnp.bfloat16, tm_max=512):
    """x: (N, D, HW, Cin) any float; w_taps: (3, Cin, Cop) bf16; shift: (1, Cop).
       Temporal (3,1,1) conv, stride 1, pad (1,0,0), + BN shift + ReLU."""
    N, D, HW, Cin = x.shape
    taps, Cin_w, Cop = w_taps.shape
    assert taps == 3 and Cin_w == Cin and Cop % 128 == 0
    xb = x.dtype.itemsize
    ob = np.dtype(out_dtype).itemsize
    tm = min(tm_max, _round_up(HW, 16))
    nm = pl.cdiv(HW, tm)

    def x_map(n, m, d, t):
        return (n, jnp.clip(d + t - 1, 0, D - 1), m, 0)

    footprint = (2 * tm * Cin * xb + 2 * 3 * Cin * Cop * 2 + 2 * tm * Cop * ob
                 + 2 * Cop * 4 + tm * Cop * 4)

    return pl.pallas_call(
        _temporal3_bn_relu_kernel,
        out_shape=jax.ShapeDtypeStruct((N, D, HW, Cop), out_dtype),
        grid_spec=pltpu.PrefetchScalarGridSpec(
            num_scalar_prefetch=0,
            grid=(N, nm, D, 3),
            in_specs=[
                pl.BlockSpec((1, 1, tm, Cin), x_map),
                # whole weight stack resident (grid-invariant index)
                pl.BlockSpec((3, Cin, Cop), lambda n, m, d, t: (0, 0, 0)),
                pl.BlockSpec((1, Cop), lambda n, m, d, t: (0, 0)),
            ],
            out_specs=pl.BlockSpec((1, 1, tm, Cop),
                                   lambda n, m, d, t: (n, d, m, 0)),
            scratch_shapes=[pltpu.VMEM((tm, Cop), jnp.float32)],
        ),
        compiler_params=pltpu.CompilerParams(
            dimension_semantics=("parallel", "parallel", "arbitrary", "arbitrary"),
            vmem_limit_bytes=_vmem_limit(footprint),
        ),
    )(x, w_taps, shift)


# --------------------------------------------------------------------------- #
# Parameter construction for BasicConv = Conv3d(bias=False) + BN (inference).
# BN scale folded into weights; output channels padded to multiples of 128.
# --------------------------------------------------------------------------- #
def _basic_conv_params(key, cin, cout, ksize, *, cin_pad=None):
    kt, kh, kw = ksize
    ntaps = kt * kh * kw
    cin_pad = cin if cin_pad is None else cin_pad
    cout_pad = _round_up(cout, 128)
    k1, k2, k3, k4, k5 = jax.random.split(key, 5)
    fan_in = cin * ntaps
    w = jax.random.normal(k1, (cout, cin, kt, kh, kw), jnp.float32) / np.sqrt(fan_in)
    gamma = 1.0 + 0.1 * jax.random.normal(k2, (cout,), jnp.float32)
    beta = 0.1 * jax.random.normal(k3, (cout,), jnp.float32)
    mean = 0.05 * jax.random.normal(k4, (cout,), jnp.float32)
    var = 1.0 + 0.1 * jax.random.uniform(k5, (cout,), jnp.float32)
    eps = 1e-5
    scale = gamma / jnp.sqrt(var + eps)
    shift = beta - mean * scale

    # Fold BN scale into the conv weight; pad in/out channels with zeros.
    w_scaled = w * scale[:, None, None, None, None]                     # (Co,Ci,kt,kh,kw)
    w_ct = jnp.transpose(w_scaled.reshape(cout, cin, ntaps), (1, 2, 0))  # (Ci, taps, Co)
    w_ct = jnp.pad(w_ct, ((0, cin_pad - cin), (0, 0), (0, cout_pad - cout)))
    wmat = w_ct.reshape(cin_pad * ntaps, cout_pad).astype(jnp.bfloat16)  # (Ci*taps, Cop)
    w_taps = jnp.transpose(w_ct, (1, 0, 2)).astype(jnp.bfloat16)         # (taps, Cip, Cop)
    w_kh = None
    if ksize == (1, 3, 3):
        # kh-major, kw folded into the contraction dim: (3, 3*Cip, Cop)
        w_kh = w_taps.reshape(3, 3, cin_pad, cout_pad).reshape(3, 3 * cin_pad, cout_pad)
    shift_p = jnp.pad(shift, (0, cout_pad - cout)).reshape(1, cout_pad).astype(jnp.float32)

    return dict(w=w, gamma=gamma, beta=beta, mean=mean, var=var, eps=eps,
                wmat=wmat, w_taps=w_taps, w_kh=w_kh, shift=shift_p,
                ksize=ksize, cout=cout, coutp=cout_pad, cinp=cin_pad)


class ResBlockPallas:
    def __init__(self, key, in_planes, planes, stride=1, head_conv=1):
        self.in_planes, self.planes = in_planes, planes
        self.stride, self.head_conv = stride, head_conv
        k0, k1, k2, k3 = jax.random.split(key, 4)
        c1p = _round_up(planes, 128)
        if stride != 1 or in_planes != planes * EXPANSION:
            self.p_x = _basic_conv_params(k0, in_planes, planes * EXPANSION, (1, 1, 1))
        else:
            self.p_x = None
        if head_conv == 1:
            self.p_first = _basic_conv_params(k1, in_planes, planes, (1, 1, 1))
            self.first_pad = (0, 0, 0)
        elif head_conv == 3:
            self.p_first = _basic_conv_params(k1, in_planes, planes, (3, 1, 1))
            self.first_pad = (1, 0, 0)
        else:
            raise ValueError("head conv is error!")
        self.p_conv2 = _basic_conv_params(k2, planes, planes, (1, 3, 3), cin_pad=c1p)
        self.p_conv3 = _basic_conv_params(k3, planes, planes * EXPANSION, (1, 1, 1),
                                          cin_pad=c1p)

    @functools.partial(jax.jit, static_argnums=0)
    def forward(self, x_ncdhw):
        s = self.stride
        N, Cin, D, H, W = x_ncdhw.shape
        # Public interface stays NCDHW (matches the PyTorch module); a full
        # network would keep channels-last end-to-end and skip these transposes.
        x_cl = jnp.transpose(x_ncdhw, (0, 2, 3, 4, 1))            # NDHWC (f32)

        # ---- conv_first + BN + ReLU ----
        c1p = self.p_first["coutp"]
        if self.head_conv == 1:
            out1 = matmul_bn(x_cl.reshape(-1, Cin), self.p_first["wmat"],
                             self.p_first["shift"], relu=True)
        else:  # (3,1,1) temporal conv: fused kernel, no HBM im2col
            out1 = conv_temporal3_bn_relu(x_cl.reshape(N, D, H * W, Cin),
                                          self.p_first["w_taps"],
                                          self.p_first["shift"])
        x1_planes = out1.reshape(N * D, H, W, c1p)                # free reshape

        # ---- conv[0]: (1,3,3), stride (1,s,s), pad (0,1,1), + BN + ReLU ----
        c2p = self.p_conv2["coutp"]
        out2 = conv3x3_bn_relu(x1_planes, self.p_conv2["w_kh"],
                               self.p_conv2["shift"])             # (N*D, H, W, c2p)
        if s != 1:
            # TODO(synk): fuse the decimation into the halo kernel (strided
            # stores) instead of computing the discarded rows/columns.
            out2 = out2[:, ::s, ::s, :]
        Ho, Wo = out2.shape[1], out2.shape[2]
        rows2 = out2.reshape(-1, c2p)                             # free reshape

        # ---- residual path ----
        c3 = self.planes * EXPANSION
        c3p = self.p_conv3["coutp"]
        if self.p_x is not None:
            rows_r = x_cl[:, :, ::s, ::s, :].reshape(-1, Cin)
            residual = matmul_bn(rows_r, self.p_x["wmat"], self.p_x["shift"],
                                 relu=False)
        else:
            res_cl = x_cl
            if c3p != Cin:  # lane padding only needed for toy channel counts
                res_cl = jnp.pad(x_cl, ((0, 0),) * 4 + ((0, c3p - Cin),))
            residual = res_cl.reshape(-1, c3p)                    # stays f32

        # ---- conv[2]: 1x1x1 + BN, fused residual add + final ReLU (bf16) ----
        out3 = matmul_bn(rows2, self.p_conv3["wmat"], self.p_conv3["shift"],
                         relu=True, residual=residual, out_dtype=jnp.bfloat16)
        out = out3[:, :c3].reshape(N, D, Ho, Wo, c3)
        return jnp.transpose(out, (0, 4, 1, 2, 3))                # NCDHW, bf16


# --------------------------------------------------------------------------- #
# Pure-JAX reference (lax.conv, f32) for correctness verification
# --------------------------------------------------------------------------- #
def _conv_bn_ref(x, p, stride, padding, relu):
    y = jax.lax.conv_general_dilated(
        x, p["w"], window_strides=stride,
        padding=[(q, q) for q in padding],
        dimension_numbers=("NCDHW", "OIDHW", "NCDHW"),
        precision=jax.lax.Precision.HIGHEST,
    )
    c = y.shape[1]
    b = (1, c, 1, 1, 1)
    y = (y - p["mean"].reshape(b)) / jnp.sqrt(p["var"].reshape(b) + p["eps"]) \
        * p["gamma"].reshape(b) + p["beta"].reshape(b)
    return jnp.maximum(y, 0.0) if relu else y


def ref_forward(x, blk):
    s = blk.stride
    out = _conv_bn_ref(x, blk.p_first, (1, 1, 1), blk.first_pad, relu=True)
    out = _conv_bn_ref(out, blk.p_conv2, (1, s, s), (0, 1, 1), relu=True)
    out = _conv_bn_ref(out, blk.p_conv3, (1, 1, 1), (0, 0, 0), relu=False)
    if blk.p_x is not None:
        residual = _conv_bn_ref(x, blk.p_x, (1, s, s), (0, 0, 0), relu=False)
    else:
        residual = x
    return jnp.maximum(residual + out, 0.0)


def _check(blk, x):
    out = jax.block_until_ready(blk.forward(x))
    ref = jax.block_until_ready(ref_forward(x, blk))
    # bf16 MXU inputs + bf16 intermediates/output (f32 accumulation) vs an
    # f32 HIGHEST reference => loose tolerance.
    np.testing.assert_allclose(np.asarray(out.astype(jnp.float32)),
                               np.asarray(ref), rtol=3e-2, atol=3e-2)


if __name__ == "__main__":
    key = jax.random.PRNGKey(0)
    kp1, kp2, kp3, kp4, kx1, kx2, kx4 = jax.random.split(key, 7)

    N, D, H, W = 2, 4, 16, 16

    # 1) Projection residual (conv_x), head_conv=1, stride=1: fused halo conv2.
    in_planes, planes = 4, 4
    x1 = jax.random.normal(kx1, (N, in_planes, D, H, W), jnp.float32)
    _check(ResBlockPallas(kp1, in_planes, planes, stride=1, head_conv=1), x1)

    # 2) Identity residual (in_planes == planes*EXPANSION), temporal head_conv=3.
    in_planes2, planes2 = 16, 4
    x2 = jax.random.normal(kx2, (N, in_planes2, D, H, W), jnp.float32)
    _check(ResBlockPallas(kp2, in_planes2, planes2, stride=1, head_conv=3), x2)

    # 3) Spatial stride 2: fused halo conv2 + post-kernel decimation.
    _check(ResBlockPallas(kp3, in_planes, planes, stride=2, head_conv=1), x1)

    # 4) W not a multiple of 16 (W=24): halo kernel with in-kernel width padding.
    x4 = jax.random.normal(kx4, (N, in_planes, D, 24, 24), jnp.float32)
    _check(ResBlockPallas(kp4, in_planes, planes, stride=1, head_conv=1), x4)

    print("KERNEL_OK")
</pallas_src>

<mosaic_0001>
module attributes {stable_mosaic.version = 11 : i64} {
  func.func @_conv3x3_bn_relu_kernel(%arg0: i32, %arg1: i32, %arg2: memref<1x16x16x128xbf16, #tpu.memory_space<vmem>>, %arg3: memref<3x384x128xbf16, #tpu.memory_space<vmem>>, %arg4: memref<1x128xf32, #tpu.memory_space<vmem>>, %arg5: memref<1x16x16x128xbf16, #tpu.memory_space<vmem>>) attributes {dimension_semantics = [#tpu.dimension_semantics<parallel>, #tpu.dimension_semantics<parallel>], iteration_bounds = array<i64: 8, 1>, scalar_prefetch = 0 : i64, scratch_operands = 0 : i64, tpu.core_type = #tpu.core_type<tc>, window_params = [{transform_indices = @transform_0, window_bounds = array<i64: 1, 16, 16, 128>}, {transform_indices = @transform_1, window_bounds = array<i64: 3, 384, 128>}, {transform_indices = @transform_2, window_bounds = array<i64: 1, 128>}, {transform_indices = @transform_3, window_bounds = array<i64: 1, 16, 16, 128>}]} {
    %c0 = arith.constant 0 : index
    %c0_0 = arith.constant 0 : index
    %c0_1 = arith.constant 0 : index
    %c0_2 = arith.constant 0 : index
    %0 = vector.load %arg2[%c0, %c0_0, %c0_1, %c0_2] : memref<1x16x16x128xbf16, #tpu.memory_space<vmem>>, vector<1x16x16x128xbf16>
    %1 = vector.shape_cast %0 : vector<1x16x16x128xbf16> to vector<16x16x128xbf16>
    %cst = arith.constant 0.000000e+00 : bf16
    %2 = vector.broadcast %cst : bf16 to vector<16x1x128xbf16>
    %cst_3 = arith.constant 0.000000e+00 : bf16
    %3 = vector.broadcast %cst_3 : bf16 to vector<16x1x128xbf16>
    %cst_4 = arith.constant 0.000000e+00 : bf16
    %4 = vector.broadcast %cst_4 : bf16 to vector<1x18x128xbf16>
    %5 = tpu.concatenate %2, %1, %3 in 1 : vector<16x1x128xbf16>, vector<16x16x128xbf16>, vector<16x1x128xbf16> -> vector<16x18x128xbf16>
    %6 = tpu.concatenate %4, %5, %4 in 0 : vector<1x18x128xbf16>, vector<16x18x128xbf16>, vector<1x18x128xbf16> -> vector<18x18x128xbf16>
    %7 = vector.extract_strided_slice %6 {offsets = [0, 0, 0], sizes = [18, 16, 128], strides = [1, 1, 1]} : vector<18x18x128xbf16> to vector<18x16x128xbf16>
    %8 = vector.extract_strided_slice %6 {offsets = [0, 1, 0], sizes = [18, 16, 128], strides = [1, 1, 1]} : vector<18x18x128xbf16> to vector<18x16x128xbf16>
    %9 = vector.extract_strided_slice %6 {offsets = [0, 2, 0], sizes = [18, 16, 128], strides = [1, 1, 1]} : vector<18x18x128xbf16> to vector<18x16x128xbf16>
    %10 = tpu.concatenate %7, %8, %9 in 2 : vector<18x16x128xbf16>, vector<18x16x128xbf16>, vector<18x16x128xbf16> -> vector<18x16x384xbf16>
    %c0_5 = arith.constant 0 : index
    %c0_6 = arith.constant 0 : index
    %11 = vector.load %arg4[%c0_5, %c0_6] : memref<1x128xf32, #tpu.memory_space<vmem>>, vector<1x128xf32>
    %cst_7 = arith.constant 0.000000e+00 : f32
    %12 = vector.broadcast %cst_7 : f32 to vector<256x128xf32>
    %13 = vector.extract_strided_slice %10 {offsets = [0, 0, 0], sizes = [16, 16, 384], strides = [1, 1, 1]} : vector<18x16x384xbf16> to vector<16x16x384xbf16>
    %14 = vector.shape_cast %13 : vector<16x16x384xbf16> to vector<256x384xbf16>
    %c0_8 = arith.constant 0 : index
    %c0_9 = arith.constant 0 : index
    %c0_10 = arith.constant 0 : index
    %15 = vector.load %arg3[%c0_8, %c0_9, %c0_10] : memref<3x384x128xbf16, #tpu.memory_space<vmem>>, vector<1x384x128xbf16>
    %16 = vector.shape_cast %15 : vector<1x384x128xbf16> to vector<384x128xbf16>
    %cst_11 = arith.constant dense<0.000000e+00> : vector<256x128xf32>
    %17 = tpu.matmul %14, %16, %cst_11 {dimension_numbers = #tpu.dot_dimension_numbers<[1], [0], [0], [1], [0, 0, 1, 1], [], []>} : vector<256x384xbf16>, vector<384x128xbf16>, vector<256x128xf32> -> vector<256x128xf32>
    %18 = arith.addf %12, %17 : vector<256x128xf32>
    %19 = vector.extract_strided_slice %10 {offsets = [1, 0, 0], sizes = [16, 16, 384], strides = [1, 1, 1]} : vector<18x16x384xbf16> to vector<16x16x384xbf16>
    %20 = vector.shape_cast %19 : vector<16x16x384xbf16> to vector<256x384xbf16>
    %c1 = arith.constant 1 : index
    %c0_12 = arith.constant 0 : index
    %c0_13 = arith.constant 0 : index
    %21 = vector.load %arg3[%c1, %c0_12, %c0_13] : memref<3x384x128xbf16, #tpu.memory_space<vmem>>, vector<1x384x128xbf16>
    %22 = vector.shape_cast %21 : vector<1x384x128xbf16> to vector<384x128xbf16>
    %cst_14 = arith.constant dense<0.000000e+00> : vector<256x128xf32>
    %23 = tpu.matmul %20, %22, %cst_14 {dimension_numbers = #tpu.dot_dimension_numbers<[1], [0], [0], [1], [0, 0, 1, 1], [], []>} : vector<256x384xbf16>, vector<384x128xbf16>, vector<256x128xf32> -> vector<256x128xf32>
    %24 = arith.addf %18, %23 : vector<256x128xf32>
    %25 = vector.extract_strided_slice %10 {offsets = [2, 0, 0], sizes = [16, 16, 384], strides = [1, 1, 1]} : vector<18x16x384xbf16> to vector<16x16x384xbf16>
    %26 = vector.shape_cast %25 : vector<16x16x384xbf16> to vector<256x384xbf16>
    %c2 = arith.constant 2 : index
    %c0_15 = arith.constant 0 : index
    %c0_16 = arith.constant 0 : index
    %27 = vector.load %arg3[%c2, %c0_15, %c0_16] : memref<3x384x128xbf16, #tpu.memory_space<vmem>>, vector<1x384x128xbf16>
    %28 = vector.shape_cast %27 : vector<1x384x128xbf16> to vector<384x128xbf16>
    %cst_17 = arith.constant dense<0.000000e+00> : vector<256x128xf32>
    %29 = tpu.matmul %26, %28, %cst_17 {dimension_numbers = #tpu.dot_dimension_numbers<[1], [0], [0], [1], [0, 0, 1, 1], [], []>} : vector<256x384xbf16>, vector<384x128xbf16>, vector<256x128xf32> -> vector<256x128xf32>
    %30 = arith.addf %24, %29 : vector<256x128xf32>
    %31 = vector.broadcast %11 : vector<1x128xf32> to vector<256x128xf32>
    %32 = arith.addf %30, %31 : vector<256x128xf32>
    %cst_18 = arith.constant 0.000000e+00 : f32
    %33 = vector.broadcast %cst_18 : f32 to vector<256x128xf32>
    %34 = arith.maximumf %32, %33 : vector<256x128xf32>
    %35 = arith.truncf %34 : vector<256x128xf32> to vector<256x128xbf16>
    %36 = vector.shape_cast %35 : vector<256x128xbf16> to vector<16x16x128xbf16>
    %c0_19 = arith.constant 0 : index
    %c0_20 = arith.constant 0 : index
    %c0_21 = arith.constant 0 : index
    %c0_22 = arith.constant 0 : index
    %37 = vector.load %arg5[%c0_19, %c0_20, %c0_21, %c0_22] : memref<1x16x16x128xbf16, #tpu.memory_space<vmem>>, vector<1x16x16x128xbf16>
    %38 = vector.shape_cast %37 : vector<1x16x16x128xbf16> to vector<16x16x128xbf16>
    %39 = vector.shape_cast %36 : vector<16x16x128xbf16> to vector<1x16x16x128xbf16>
    tpu.vector_store %arg5[%c0_19, %c0_20, %c0_21, %c0_22], %39 {strides = array<i32>} : memref<1x16x16x128xbf16, #tpu.memory_space<vmem>>, vector<1x16x16x128xbf16>,
    return
  }
  func.func @transform_0(%arg0: i32, %arg1: i32) -> (i32, i32, i32, i32) {
    %c0_i32 = arith.constant 0 : i32
    %c0_i32_0 = arith.constant 0 : i32
    %c0_i32_1 = arith.constant 0 : i32
    %c0_i32_2 = arith.constant 0 : i32
    return %arg0, %c0_i32, %c0_i32_0, %c0_i32_1 : i32, i32, i32, i32
  }
  func.func @transform_1(%arg0: i32, %arg1: i32) -> (i32, i32, i32) {
    %c0_i32 = arith.constant 0 : i32
    %c0_i32_0 = arith.constant 0 : i32
    %c0_i32_1 = arith.constant 0 : i32
    return %c0_i32, %c0_i32_0, %arg1 : i32, i32, i32
  }
  func.func @transform_2(%arg0: i32, %arg1: i32) -> (i32, i32) {
    %c0_i32 = arith.constant 0 : i32
    %c0_i32_0 = arith.constant 0 : i32
    return %c0_i32, %arg1 : i32, i32
  }
  func.func @transform_3(%arg0: i32, %arg1: i32) -> (i32, i32, i32, i32) {
    %c0_i32 = arith.constant 0 : i32
    %c0_i32_0 = arith.constant 0 : i32
    %c0_i32_1 = arith.constant 0 : i32
    return %arg0, %c0_i32, %c0_i32_0, %arg1 : i32, i32, i32, i32
  }
}

module attributes {stable_mosaic.version = 11 : i64} {
  func.func @_mm_bn_direct_kernel(%arg0: i32, %arg1: i32, %arg2: memref<512x4xf32, #tpu.memory_space<vmem>>, %arg3: memref<4x128xbf16, #tpu.memory_space<vmem>>, %arg4: memref<1x128xf32, #tpu.memory_space<vmem>>, %arg5: memref<512x128xbf16, #tpu.memory_space<vmem>>) attributes {dimension_semantics = [#tpu.dimension_semantics<parallel>, #tpu.dimension_semantics<parallel>], iteration_bounds = array<i64: 4, 1>, scalar_prefetch = 0 : i64, scratch_operands = 0 : i64, tpu.core_type = #tpu.core_type<tc>, window_params = [{transform_indices = @transform_0, window_bounds = array<i64: 512, 4>}, {transform_indices = @transform_1, window_bounds = array<i64: 4, 128>}, {transform_indices = @transform_2, window_bounds = array<i64: 1, 128>}, {transform_indices = @transform_3, window_bounds = array<i64: 512, 128>}]} {
    %c0 = arith.constant 0 : index
    %c0_0 = arith.constant 0 : index
    %0 = vector.load %arg2[%c0, %c0_0] : memref<512x4xf32, #tpu.memory_space<vmem>>, vector<512x4xf32>
    %1 = arith.truncf %0 : vector<512x4xf32> to vector<512x4xbf16>
    %c0_1 = arith.constant 0 : index
    %c0_2 = arith.constant 0 : index
    %2 = vector.load %arg3[%c0_1, %c0_2] : memref<4x128xbf16, #tpu.memory_space<vmem>>, vector<4x128xbf16>
    %cst = arith.constant dense<0.000000e+00> : vector<512x128xf32>
    %3 = tpu.matmul %1, %2, %cst {dimension_numbers = #tpu.dot_dimension_numbers<[1], [0], [0], [1], [0, 0, 1, 1], [], []>} : vector<512x4xbf16>, vector<4x128xbf16>, vector<512x128xf32> -> vector<512x128xf32>
    %c0_3 = arith.constant 0 : index
    %c0_4 = arith.constant 0 : index
    %4 = vector.load %arg4[%c0_3, %c0_4] : memref<1x128xf32, #tpu.memory_space<vmem>>, vector<1x128xf32>
    %5 = vector.broadcast %4 : vector<1x128xf32> to vector<512x128xf32>
    %6 = arith.addf %3, %5 : vector<512x128xf32>
    %cst_5 = arith.constant 0.000000e+00 : f32
    %7 = vector.broadcast %cst_5 : f32 to vector<512x128xf32>
    %8 = arith.maximumf %6, %7 : vector<512x128xf32>
    %9 = arith.truncf %8 : vector<512x128xf32> to vector<512x128xbf16>
    %c0_6 = arith.constant 0 : index
    %c0_7 = arith.constant 0 : index
    %10 = vector.load %arg5[%c0_6, %c0_7] : memref<512x128xbf16, #tpu.memory_space<vmem>>, vector<512x128xbf16>
    tpu.vector_store %arg5[%c0_6, %c0_7], %9 {strides = array<i32>} : memref<512x128xbf16, #tpu.memory_space<vmem>>, vector<512x128xbf16>,
    return
  }
  func.func @transform_0(%arg0: i32, %arg1: i32) -> (i32, i32) {
    %c0_i32 = arith.constant 0 : i32
    %c0_i32_0 = arith.constant 0 : i32
    return %arg0, %c0_i32 : i32, i32
  }
  func.func @transform_1(%arg0: i32, %arg1: i32) -> (i32, i32) {
    %c0_i32 = arith.constant 0 : i32
    %c0_i32_0 = arith.constant 0 : i32
    return %c0_i32, %arg1 : i32, i32
  }
  func.func @transform_2(%arg0: i32, %arg1: i32) -> (i32, i32) {
    %c0_i32 = arith.constant 0 : i32
    %c0_i32_0 = arith.constant 0 : i32
    return %c0_i32, %arg1 : i32, i32
  }
  func.func @transform_3(%arg0: i32, %arg1: i32) -> (i32, i32) {
    %c0_i32 = arith.constant 0 : i32
    return %arg0, %arg1 : i32, i32
  }
}

module attributes {stable_mosaic.version = 11 : i64} {
  func.func @_mm_bn_direct_kernel(%arg0: i32, %arg1: i32, %arg2: memref<512x4xf32, #tpu.memory_space<vmem>>, %arg3: memref<4x128xbf16, #tpu.memory_space<vmem>>, %arg4: memref<1x128xf32, #tpu.memory_space<vmem>>, %arg5: memref<512x128xbf16, #tpu.memory_space<vmem>>) attributes {dimension_semantics = [#tpu.dimension_semantics<parallel>, #tpu.dimension_semantics<parallel>], iteration_bounds = array<i64: 4, 1>, scalar_prefetch = 0 : i64, scratch_operands = 0 : i64, tpu.core_type = #tpu.core_type<tc>, window_params = [{transform_indices = @transform_0, window_bounds = array<i64: 512, 4>}, {transform_indices = @transform_1, window_bounds = array<i64: 4, 128>}, {transform_indices = @transform_2, window_bounds = array<i64: 1, 128>}, {transform_indices = @transform_3, window_bounds = array<i64: 512, 128>}]} {
    %c0 = arith.constant 0 : index
    %c0_0 = arith.constant 0 : index
    %0 = vector.load %arg2[%c0, %c0_0] : memref<512x4xf32, #tpu.memory_space<vmem>>, vector<512x4xf32>
    %1 = arith.truncf %0 : vector<512x4xf32> to vector<512x4xbf16>
    %c0_1 = arith.constant 0 : index
    %c0_2 = arith.constant 0 : index
    %2 = vector.load %arg3[%c0_1, %c0_2] : memref<4x128xbf16, #tpu.memory_space<vmem>>, vector<4x128xbf16>
    %cst = arith.constant dense<0.000000e+00> : vector<512x128xf32>
    %3 = tpu.matmul %1, %2, %cst {dimension_numbers = #tpu.dot_dimension_numbers<[1], [0], [0], [1], [0, 0, 1, 1], [], []>} : vector<512x4xbf16>, vector<4x128xbf16>, vector<512x128xf32> -> vector<512x128xf32>
    %c0_3 = arith.constant 0 : index
    %c0_4 = arith.constant 0 : index
    %4 = vector.load %arg4[%c0_3, %c0_4] : memref<1x128xf32, #tpu.memory_space<vmem>>, vector<1x128xf32>
    %5 = vector.broadcast %4 : vector<1x128xf32> to vector<512x128xf32>
    %6 = arith.addf %3, %5 : vector<512x128xf32>
    %7 = arith.truncf %6 : vector<512x128xf32> to vector<512x128xbf16>
    %c0_5 = arith.constant 0 : index
    %c0_6 = arith.constant 0 : index
    %8 = vector.load %arg5[%c0_5, %c0_6] : memref<512x128xbf16, #tpu.memory_space<vmem>>, vector<512x128xbf16>
    tpu.vector_store %arg5[%c0_5, %c0_6], %7 {strides = array<i32>} : memref<512x128xbf16, #tpu.memory_space<vmem>>, vector<512x128xbf16>,
    return
  }
  func.func @transform_0(%arg0: i32, %arg1: i32) -> (i32, i32) {
    %c0_i32 = arith.constant 0 : i32
    %c0_i32_0 = arith.constant 0 : i32
    return %arg0, %c0_i32 : i32, i32
  }
  func.func @transform_1(%arg0: i32, %arg1: i32) -> (i32, i32) {
    %c0_i32 = arith.constant 0 : i32
    %c0_i32_0 = arith.constant 0 : i32
    return %c0_i32, %arg1 : i32, i32
  }
  func.func @transform_2(%arg0: i32, %arg1: i32) -> (i32, i32) {
    %c0_i32 = arith.constant 0 : i32
    %c0_i32_0 = arith.constant 0 : i32
    return %c0_i32, %arg1 : i32, i32
  }
  func.func @transform_3(%arg0: i32, %arg1: i32) -> (i32, i32) {
    %c0_i32 = arith.constant 0 : i32
    return %arg0, %arg1 : i32, i32
  }
}

module attributes {stable_mosaic.version = 11 : i64} {
  func.func @_mm_bn_direct_kernel(%arg0: i32, %arg1: i32, %arg2: memref<512x128xbf16, #tpu.memory_space<vmem>>, %arg3: memref<128x128xbf16, #tpu.memory_space<vmem>>, %arg4: memref<1x128xf32, #tpu.memory_space<vmem>>, %arg5: memref<512x128xbf16, #tpu.memory_space<vmem>>, %arg6: memref<512x128xbf16, #tpu.memory_space<vmem>>) attributes {dimension_semantics = [#tpu.dimension_semantics<parallel>, #tpu.dimension_semantics<parallel>], iteration_bounds = array<i64: 4, 1>, scalar_prefetch = 0 : i64, scratch_operands = 0 : i64, tpu.core_type = #tpu.core_type<tc>, window_params = [{transform_indices = @transform_0, window_bounds = array<i64: 512, 128>}, {transform_indices = @transform_1, window_bounds = array<i64: 128, 128>}, {transform_indices = @transform_2, window_bounds = array<i64: 1, 128>}, {transform_indices = @transform_3, window_bounds = array<i64: 512, 128>}, {transform_indices = @transform_4, window_bounds = array<i64: 512, 128>}]} {
    %c0 = arith.constant 0 : index
    %c0_0 = arith.constant 0 : index
    %0 = vector.load %arg2[%c0, %c0_0] : memref<512x128xbf16, #tpu.memory_space<vmem>>, vector<512x128xbf16>
    %c0_1 = arith.constant 0 : index
    %c0_2 = arith.constant 0 : index
    %1 = vector.load %arg3[%c0_1, %c0_2] : memref<128x128xbf16, #tpu.memory_space<vmem>>, vector<128x128xbf16>
    %cst = arith.constant dense<0.000000e+00> : vector<512x128xf32>
    %2 = tpu.matmul %0, %1, %cst {dimension_numbers = #tpu.dot_dimension_numbers<[1], [0], [0], [1], [0, 0, 1, 1], [], []>} : vector<512x128xbf16>, vector<128x128xbf16>, vector<512x128xf32> -> vector<512x128xf32>
    %c0_3 = arith.constant 0 : index
    %c0_4 = arith.constant 0 : index
    %3 = vector.load %arg4[%c0_3, %c0_4] : memref<1x128xf32, #tpu.memory_space<vmem>>, vector<1x128xf32>
    %4 = vector.broadcast %3 : vector<1x128xf32> to vector<512x128xf32>
    %5 = arith.addf %2, %4 : vector<512x128xf32>
    %c0_5 = arith.constant 0 : index
    %c0_6 = arith.constant 0 : index
    %6 = vector.load %arg5[%c0_5, %c0_6] : memref<512x128xbf16, #tpu.memory_space<vmem>>, vector<512x128xbf16>
    %7 = arith.extf %6 : vector<512x128xbf16> to vector<512x128xf32>
    %8 = arith.addf %5, %7 : vector<512x128xf32>
    %cst_7 = arith.constant 0.000000e+00 : f32
    %9 = vector.broadcast %cst_7 : f32 to vector<512x128xf32>
    %10 = arith.maximumf %8, %9 : vector<512x128xf32>
    %11 = arith.truncf %10 : vector<512x128xf32> to vector<512x128xbf16>
    %c0_8 = arith.constant 0 : index
    %c0_9 = arith.constant 0 : index
    %12 = vector.load %arg6[%c0_8, %c0_9] : memref<512x128xbf16, #tpu.memory_space<vmem>>, vector<512x128xbf16>
    tpu.vector_store %arg6[%c0_8, %c0_9], %11 {strides = array<i32>} : memref<512x128xbf16, #tpu.memory_space<vmem>>, vector<512x128xbf16>,
    return
  }
  func.func @transform_0(%arg0: i32, %arg1: i32) -> (i32, i32) {
    %c0_i32 = arith.constant 0 : i32
    %c0_i32_0 = arith.constant 0 : i32
    return %arg0, %c0_i32 : i32, i32
  }
  func.func @transform_1(%arg0: i32, %arg1: i32) -> (i32, i32) {
    %c0_i32 = arith.constant 0 : i32
    %c0_i32_0 = arith.constant 0 : i32
    return %c0_i32, %arg1 : i32, i32
  }
  func.func @transform_2(%arg0: i32, %arg1: i32) -> (i32, i32) {
    %c0_i32 = arith.constant 0 : i32
    %c0_i32_0 = arith.constant 0 : i32
    return %c0_i32, %arg1 : i32, i32
  }
  func.func @transform_3(%arg0: i32, %arg1: i32) -> (i32, i32) {
    %c0_i32 = arith.constant 0 : i32
    return %arg0, %arg1 : i32, i32
  }
  func.func @transform_4(%arg0: i32, %arg1: i32) -> (i32, i32) {
    %c0_i32 = arith.constant 0 : i32
    return %arg0, %arg1 : i32, i32
  }
}

</mosaic_0001>

<bundles_post_ra>
// kernel: forward.4
= control target key start
LH: loop header
LB: loop body
LE: loop exit
PB: predicated region body
PF: predicated region fallthrough
CT: control target
= control target key end

     0   :  { %s1742_s12 = smov 0   ;;  %s1744_s13 = smov 0   ;;  %s1983_s0 = inlined_call_operand.vmem [shape: f32[2048,4], index: 0, kind: input, shape index: {}]   ;;  %s1984_s1 = inlined_call_operand.vmem [shape: bf16[4,128], index: 1, kind: input, shape index: {}]   ;;  %s1985_s2 = inlined_call_operand.vmem [shape: f32[1,128], index: 2, kind: input, shape index: {}]   ;;  %s1986_s3 = inlined_call_operand.vmem [shape: bf16[2048,128], index: 3, kind: output, shape index: {}]  }
   0x1   :  { %s1746_s14 = smov 0  }
   0x2 LB: > { %s25_s15 = sadd.s32 1, %s1716_s13  ;;  %p1212_p0 = scmp.ge.s32.totalorder %s1720_s14, 1  ;;  %s1720_s14 = sphi %s1746_s14, %s13_s14   ;;  %s1716_s13 = sphi %s1744_s13, %s1988_s13   ;;  %s1712_s12 = sphi %s1742_s12, %s1987_s12  }
   0x3   : > { %p27_p1 = scmp.ge.s32.totalorder %s25_s15, 4  ;;  %p169_p2 = scmp.lt.s32.totalorder %s1720_s14, 5 }
   0x5   : > { %s1990_s15 = smov (%p27_p1, %s25_s15), 0  ;;  %p170_p3 = pnand %p1212_p0, %p169_p2 }
   0x6   : > { %v322_v0 = vld [vmem:[%s1984_s1] sm:$0x3] (!%p170_p3)  ;;  %vm427_vm0 = vcmask (!%p170_p3), 1041408   ;;  %s1213_s18 = sshll.u32 (!%p170_p3), %s1712_s12, 6  ;;  %vm330_vm1 = vcmask (!%p170_p3), 31744  }
   0x7   : > { %173 = sbr.rel (%p170_p3) target bundleno = 300 (0x12c), region = 32  ;;  %1672 = vmatprep.subr.msk.bf16.mxu0 (!%p170_p3), %vm427_vm0, %v322_v0  ;;  %1673 = vmatprep.subr.msk.bf16.mxu1 (!%p170_p3), %vm427_vm0, %v322_v0  ;;  %v429_v1 = vsel (!%p170_p3), %vm427_vm0, %v322_v0, 0  ;;  %p204_p4 = scmp.lt.s32.totalorder (!%p170_p3), %s1213_s18, 255 }
   0x8   : > { %1605 = vmatpush3.bf16.msra.mxu0 (!%p170_p3), %v429_v1  ;;  %1671 = vmatpush3.bf16.msra.mxu1 (!%p170_p3), %v429_v1 }
   0xe   : > { %s1992_s18 = smov (!%p204_p4, %s1213_s18), 255 }
   0xf   : > { %s1214_s19 = sshll.u32 %s1992_s18, 3  ;;  %s1216_s25 = sshll.u32 %s1992_s18, 2 }
  0x10   : > { %s1769_s22 = scalar_lea.vmem %s1983_s0, %s1214_s19  ;;  %s1884_s28 = scalar_lea.vmem %s1986_s3, %s1216_s25 }
  0x11   : > { %v226_v2 = vld [vmem:[%s1769_s22] sm:$0xff]  ;;  %v227_v3 = vld [vmem:[%s1769_s22 + $0x8] sm:$0xff]  ;;  %v228_v7 = vld [vmem:[%s1769_s22 + $0x10] sm:$0xff] }
  0x12   : > { %v258_v4 = vld [vmem:[%s1769_s22 + $0x100] sm:$0xff]  ;;  %v290_v5 = vpack.c.bf16 %v227_v3, %v226_v2  ;;  %v259_v6 = vld [vmem:[%s1769_s22 + $0x108] sm:$0xff]  ;;  %v229_v8 = vld [vmem:[%s1769_s22 + $0x18] sm:$0xff] }
  0x13   : > { %v306_v9 = vpack.c.bf16 %v259_v6, %v258_v4  ;;  %v291_v10 = vpack.c.bf16 %v229_v8, %v228_v7  ;;  %v260_v11 = vld [vmem:[%s1769_s22 + $0x110] sm:$0xff]  ;;  %v261_v12 = vld [vmem:[%s1769_s22 + $0x118] sm:$0xff]  ;;  %v230_v13 = vld [vmem:[%s1769_s22 + $0x20] sm:$0xff] }
  0x14   : > { %1606 = vmatprep.mubr.msk.bf16.mxu0 %vm330_vm1, %v290_v5  ;;  %v307_v14 = vpack.c.bf16 %v261_v12, %v260_v11  ;;  %v231_v15 = vld [vmem:[%s1769_s22 + $0x28] sm:$0xff]  ;;  %v262_v16 = vld [vmem:[%s1769_s22 + $0x120] sm:$0xff]  ;;  %v232_v20 = vld [vmem:[%s1769_s22 + $0x30] sm:$0xff] }
  0x15   : > { %v263_v17 = vld [vmem:[%s1769_s22 + $0x128] sm:$0xff]  ;;  %1638 = vmatprep.mubr.msk.bf16.mxu1 %vm330_vm1, %v306_v9  ;;  %1607 = vmatmul.mubr.msk.bf16.vlgmr.msra.gmra.mrb[0].mxu0 %vm330_vm1, %v291_v10  ;;  %v292_v18 = vpack.c.bf16 %v231_v15, %v230_v13  ;;  %v233_v21 = vld [vmem:[%s1769_s22 + $0x38] sm:$0xff]  ;;  %v264_v22 = vld [vmem:[%s1769_s22 + $0x130] sm:$0xff] }
  0x16   : > { %v308_v19 = vpack.c.bf16 %v263_v17, %v262_v16  ;;  %1639 = vmatmul.mubr.msk.bf16.vlgmr.msra.gmra.mrb[0].mxu1 %vm330_vm1, %v307_v14  ;;  %v265_v23 = vld [vmem:[%s1769_s22 + $0x138] sm:$0xff]  ;;  %v234_v24 = vld [vmem:[%s1769_s22 + $0x40] sm:$0xff]  ;;  %v235_v25 = vld [vmem:[%s1769_s22 + $0x48] sm:$0xff]  ;;  %v293_v28 = vpack.c.bf16 %v233_v21, %v232_v20 }
  0x17   : > { %1610 = vmatprep.mubr.msk.bf16.mxu0 %vm330_vm1, %v292_v18  ;;  %v266_v26 = vld [vmem:[%s1769_s22 + $0x140] sm:$0xff]  ;;  %v267_v27 = vld [vmem:[%s1769_s22 + $0x148] sm:$0xff]  ;;  %v309_v29 = vpack.c.bf16 %v265_v23, %v264_v22  ;;  %v294_v30 = vpack.c.bf16 %v235_v25, %v234_v24  ;;  %v236_v32 = vld [vmem:[%s1769_s22 + $0x50] sm:$0xff] }
  0x18   : > { %1642 = vmatprep.mubr.msk.bf16.mxu1 %vm330_vm1, %v308_v19  ;;  %v310_v31 = vpack.c.bf16 %v267_v27, %v266_v26  ;;  %v237_v33 = vld [vmem:[%s1769_s22 + $0x58] sm:$0xff]  ;;  %v268_v34 = vld [vmem:[%s1769_s22 + $0x150] sm:$0xff]  ;;  %v238_v36 = vld [vmem:[%s1769_s22 + $0x60] sm:$0xff] }
  0x19   : > { %v269_v35 = vld [vmem:[%s1769_s22 + $0x158] sm:$0xff]  ;;  %v239_v37 = vld [vmem:[%s1769_s22 + $0x68] sm:$0xff]  ;;  %v270_v38 = vld [vmem:[%s1769_s22 + $0x160] sm:$0xff]  ;;  %v295_v40 = vpack.c.bf16 %v237_v33, %v236_v32 }
  0x1a   : > { %v271_v39 = vld [vmem:[%s1769_s22 + $0x168] sm:$0xff]  ;;  %v311_v41 = vpack.c.bf16 %v269_v35, %v268_v34  ;;  %v296_v42 = vpack.c.bf16 %v239_v37, %v238_v36  ;;  %v240_v44 = vld [vmem:[%s1769_s22 + $0x70] sm:$0xff]  ;;  %v241_v45 = vld [vmem:[%s1769_s22 + $0x78] sm:$0xff] }
  0x1b   : > { %v312_v43 = vpack.c.bf16 %v271_v39, %v270_v38  ;;  %v272_v46 = vld [vmem:[%s1769_s22 + $0x170] sm:$0xff]  ;;  %v273_v47 = vld [vmem:[%s1769_s22 + $0x178] sm:$0xff]  ;;  %v242_v48 = vld [vmem:[%s1769_s22 + $0x80] sm:$0xff]  ;;  %v297_v52 = vpack.c.bf16 %v241_v45, %v240_v44 }
  0x1c   : > { %v243_v49 = vld [vmem:[%s1769_s22 + $0x88] sm:$0xff]  ;;  %v274_v50 = vld [vmem:[%s1769_s22 + $0x180] sm:$0xff]  ;;  %v313_v53 = vpack.c.bf16 %v273_v47, %v272_v46  ;;  %v244_v56 = vld [vmem:[%s1769_s22 + $0x90] sm:$0xff] }
  0x1d   : > { %1611 = vmatmul.mubr.msk.bf16.gmra.mrb[4].mxu0 %vm330_vm1, %v293_v28  ;;  %v275_v51 = vld [vmem:[%s1769_s22 + $0x188] sm:$0xff]  ;;  %v298_v54 = vpack.c.bf16 %v243_v49, %v242_v48  ;;  %v245_v57 = vld [vmem:[%s1769_s22 + $0x98] sm:$0xff]  ;;  %v276_v58 = vld [vmem:[%s1769_s22 + $0x190] sm:$0xff] }
  0x1e   : > { %1643 = vmatmul.mubr.msk.bf16.gmra.mrb[4].mxu1 %vm330_vm1, %v309_v29  ;;  %1614 = vmatprep.mubr.msk.bf16.mxu0 %vm330_vm1, %v294_v30  ;;  %v314_v55 = vpack.c.bf16 %v275_v51, %v274_v50  ;;  %v277_v59 = vld [vmem:[%s1769_s22 + $0x198] sm:$0xff]  ;;  %v246_v60 = vld [vmem:[%s1769_s22 + $0xa0] sm:$0xff]  ;;  %v247_v61 = vld [vmem:[%s1769_s22 + $0xa8] sm:$0xff]  ;;  %v299_v0 = vpack.c.bf16 %v245_v57, %v244_v56 }
  0x1f   : > { %1646 = vmatprep.mubr.msk.bf16.mxu1 %vm330_vm1, %v310_v31  ;;  %v278_v62 = vld [vmem:[%s1769_s22 + $0x1a0] sm:$0xff]  ;;  %v279_v63 = vld [vmem:[%s1769_s22 + $0x1a8] sm:$0xff]  ;;  %v315_v1 = vpack.c.bf16 %v277_v59, %v276_v58  ;;  %v300_v2 = vpack.c.bf16 %v247_v61, %v246_v60  ;;  %v248_v4 = vld [vmem:[%s1769_s22 + $0xb0] sm:$0xff] }
  0x20   : > { %v316_v3 = vpack.c.bf16 %v279_v63, %v278_v62  ;;  %v249_v5 = vld [vmem:[%s1769_s22 + $0xb8] sm:$0xff]  ;;  %v280_v6 = vld [vmem:[%s1769_s22 + $0x1b0] sm:$0xff]  ;;  %v250_v8 = vld [vmem:[%s1769_s22 + $0xc0] sm:$0xff] }
  0x21   : > { %v281_v7 = vld [vmem:[%s1769_s22 + $0x1b8] sm:$0xff]  ;;  %v251_v9 = vld [vmem:[%s1769_s22 + $0xc8] sm:$0xff]  ;;  %v282_v10 = vld [vmem:[%s1769_s22 + $0x1c0] sm:$0xff]  ;;  %v301_v12 = vpack.c.bf16 %v249_v5, %v248_v4 }
  0x22   : > { %v283_v11 = vld [vmem:[%s1769_s22 + $0x1c8] sm:$0xff]  ;;  %v317_v13 = vpack.c.bf16 %v281_v7, %v280_v6  ;;  %v302_v14 = vpack.c.bf16 %v251_v9, %v250_v8  ;;  %v252_v16 = vld [vmem:[%s1769_s22 + $0xd0] sm:$0xff]  ;;  %v253_v17 = vld [vmem:[%s1769_s22 + $0xd8] sm:$0xff] }
  0x23   : > { %v318_v15 = vpack.c.bf16 %v283_v11, %v282_v10  ;;  %v284_v18 = vld [vmem:[%s1769_s22 + $0x1d0] sm:$0xff]  ;;  %v285_v19 = vld [vmem:[%s1769_s22 + $0x1d8] sm:$0xff]  ;;  %v254_v20 = vld [vmem:[%s1769_s22 + $0xe0] sm:$0xff]  ;;  %v303_v24 = vpack.c.bf16 %v253_v17, %v252_v16 }
  0x24   : > { %v255_v21 = vld [vmem:[%s1769_s22 + $0xe8] sm:$0xff]  ;;  %v286_v22 = vld [vmem:[%s1769_s22 + $0x1e0] sm:$0xff]  ;;  %v319_v25 = vpack.c.bf16 %v285_v19, %v284_v18  ;;  %v256_v28 = vld [vmem:[%s1769_s22 + $0xf0] sm:$0xff] }
  0x25   : > { %1615 = vmatmul.mubr.msk.bf16.gmra.mrb[8].mxu0 %vm330_vm1, %v295_v40  ;;  %v287_v23 = vld [vmem:[%s1769_s22 + $0x1e8] sm:$0xff]  ;;  %v304_v26 = vpack.c.bf16 %v255_v21, %v254_v20  ;;  %v257_v29 = vld [vmem:[%s1769_s22 + $0xf8] sm:$0xff]  ;;  %v288_v30 = vld [vmem:[%s1769_s22 + $0x1f0] sm:$0xff] }
  0x26   : > { %1647 = vmatmul.mubr.msk.bf16.gmra.mrb[8].mxu1 %vm330_vm1, %v311_v41  ;;  %1618 = vmatprep.mubr.msk.bf16.mxu0 %vm330_vm1, %v296_v42  ;;  %v320_v27 = vpack.c.bf16 %v287_v23, %v286_v22  ;;  %v289_v31 = vld [vmem:[%s1769_s22 + $0x1f8] sm:$0xff]  ;;  %v305_v32 = vpack.c.bf16 %v257_v29, %v256_v28  ;;  %v1870_v34 = vld [vmem:[%s1985_s2] ss:$0 sm:$0xff] }
  0x27   : > { %1650 = vmatprep.mubr.msk.bf16.mxu1 %vm330_vm1, %v312_v43  ;;  %v321_v33 = vpack.c.bf16 %v289_v31, %v288_v30 }
  0x2d   : > { %1619 = vmatmul.mubr.msk.bf16.gmra.mrb[12].mxu0 %vm330_vm1, %v297_v52 }
  0x2e   : > { %1651 = vmatmul.mubr.msk.bf16.gmra.mrb[12].mxu1 %vm330_vm1, %v313_v53  ;;  %1622 = vmatprep.mubr.msk.bf16.mxu0 %vm330_vm1, %v298_v54 }
  0x2f   : > { %1654 = vmatprep.mubr.msk.bf16.mxu1 %vm330_vm1, %v314_v55 }
  0x35   : > { %1623 = vmatmul.mubr.msk.bf16.gmra.mrb[16].mxu0 %vm330_vm1, %v299_v0 }
  0x36   : > { %1655 = vmatmul.mubr.msk.bf16.gmra.mrb[16].mxu1 %vm330_vm1, %v315_v1  ;;  %1626 = vmatprep.mubr.msk.bf16.mxu0 %vm330_vm1, %v300_v2 }
  0x37   : > { %1658 = vmatprep.mubr.msk.bf16.mxu1 %vm330_vm1, %v316_v3 }
  0x3d   : > { %1627 = vmatmul.mubr.msk.bf16.gmra.mrb[20].mxu0 %vm330_vm1, %v301_v12 }
  0x3e   : > { %1659 = vmatmul.mubr.msk.bf16.gmra.mrb[20].mxu1 %vm330_vm1, %v317_v13  ;;  %1630 = vmatprep.mubr.msk.bf16.mxu0 %vm330_vm1, %v302_v14 }
  0x3f   : > { %1662 = vmatprep.mubr.msk.bf16.mxu1 %vm330_vm1, %v318_v15 }
  0x45   : > { %1631 = vmatmul.mubr.msk.bf16.gmra.mrb[24].mxu0 %vm330_vm1, %v303_v24 }
  0x46   : > { %1663 = vmatmul.mubr.msk.bf16.gmra.mrb[24].mxu1 %vm330_vm1, %v319_v25  ;;  %1634 = vmatprep.mubr.msk.bf16.mxu0 %vm330_vm1, %v304_v26 }
  0x47   : > { %1666 = vmatprep.mubr.msk.bf16.mxu1 %vm330_vm1, %v320_v27 }
  0x4d   : > { %1635 = vmatmul.mubr.msk.bf16.gmra.mrb[28].mxu0 %vm330_vm1, %v305_v32 }
  0x4e   : > { %1667 = vmatmul.mubr.msk.bf16.gmra.mrb[28].mxu1 %vm330_vm1, %v321_v33 }
  0xe8   : > { %v1608_v35 = vpop.f32.mrb[0].mxu0 }
  0xe9   : > { %v474_v36 = vadd.f32 %v1608_v35, %v1870_v34  ;;  %v1640_v37 = vpop.f32.mrb[0].mxu1  ;;  %v465_v38 = vpop.f32.mrb[1].mxu0 }
  0xea   : > { %v602_v39 = vadd.f32 %v1640_v37, %v1870_v34  ;;  %v466_v40 = vadd.f32 %v1870_v34, %v465_v38  ;;  %v593_v41 = vpop.f32.mrb[1].mxu1  ;;  %v1609_v42 = vpop.f32.mrb[2].mxu0 }
  0xeb   : > { %v594_v43 = vadd.f32 %v1870_v34, %v593_v41  ;;  %v477_v44 = vadd.f32 %v1609_v42, %v1870_v34  ;;  %v1641_v45 = vpop.f32.mrb[2].mxu1  ;;  %v468_v46 = vpop.f32.mrb[3].mxu0  ;;  %v722_v50 = vmax.f32 %v474_v36, 0.0 }
  0xec   : > { %v605_v47 = vadd.f32 %v1641_v45, %v1870_v34  ;;  %v469_v48 = vadd.f32 %v1870_v34, %v468_v46  ;;  %v596_v49 = vpop.f32.mrb[3].mxu1  ;;  %v754_v53 = vmax.f32 %v602_v39, 0.0  ;;  %v720_v54 = vmax.f32 %v466_v40, 0.0 }
  0xed   : > { %v723_v51 = vmax.f32 %v477_v44, 0.0  ;;  %v597_v52 = vadd.f32 %v1870_v34, %v596_v49  ;;  %v752_v57 = vmax.f32 %v594_v43, 0.0 }
  0xee   : > { %v755_v55 = vmax.f32 %v605_v47, 0.0  ;;  %v721_v56 = vmax.f32 %v469_v48, 0.0 }
  0xef   : > { %v1388_v58 = vpack.c.bf16 %v723_v51, %v722_v50  ;;  %v753_v59 = vmax.f32 %v597_v52, 0.0 }
  0xf0   : > { %v1468_v60 = vpack.c.bf16 %v755_v55, %v754_v53  ;;  %v1383_v61 = vpack.c.bf16 %v721_v56, %v720_v54  ;;  %v1612_v62 = vpop.f32.mrb[4].mxu0 }
  0xf1   : > { %1540 = vst [vmem:[%s1884_s28 + $0x8] sm:$0xff] %v1388_v58   ;;  %v1463_v63 = vpack.c.bf16 %v753_v59, %v752_v57  ;;  %v490_v0 = vadd.f32 %v1612_v62, %v1870_v34  ;;  %v1644_v1 = vpop.f32.mrb[4].mxu1  ;;  %v481_v2 = vpop.f32.mrb[5].mxu0 }
  0xf2   : > { %1556 = vst [vmem:[%s1884_s28 + $0x88] sm:$0xff] %v1468_v60   ;;  %1384 = vst [vmem:[%s1884_s28] sm:$0xff] %v1383_v61   ;;  %v618_v3 = vadd.f32 %v1644_v1, %v1870_v34  ;;  %v482_v4 = vadd.f32 %v1870_v34, %v481_v2  ;;  %v609_v5 = vpop.f32.mrb[5].mxu1  ;;  %v1613_v6 = vpop.f32.mrb[6].mxu0 }
  0xf3   : > { %1555 = vst [vmem:[%s1884_s28 + $0x80] sm:$0xff] %v1463_v63   ;;  %v610_v7 = vadd.f32 %v1870_v34, %v609_v5  ;;  %v493_v8 = vadd.f32 %v1613_v6, %v1870_v34  ;;  %v1645_v9 = vpop.f32.mrb[6].mxu1  ;;  %v484_v10 = vpop.f32.mrb[7].mxu0  ;;  %v726_v14 = vmax.f32 %v490_v0, 0.0 }
  0xf4   : > { %v621_v11 = vadd.f32 %v1645_v9, %v1870_v34  ;;  %v485_v12 = vadd.f32 %v1870_v34, %v484_v10  ;;  %v612_v13 = vpop.f32.mrb[7].mxu1  ;;  %v758_v17 = vmax.f32 %v618_v3, 0.0  ;;  %v724_v18 = vmax.f32 %v482_v4, 0.0 }
  0xf5   : > { %v727_v15 = vmax.f32 %v493_v8, 0.0  ;;  %v613_v16 = vadd.f32 %v1870_v34, %v612_v13  ;;  %v756_v21 = vmax.f32 %v610_v7, 0.0 }
  0xf6   : > { %v759_v19 = vmax.f32 %v621_v11, 0.0  ;;  %v725_v20 = vmax.f32 %v485_v12, 0.0 }
  0xf7   : > { %v1398_v22 = vpack.c.bf16 %v727_v15, %v726_v14  ;;  %v757_v23 = vmax.f32 %v613_v16, 0.0 }
  0xf8   : > { %v1478_v24 = vpack.c.bf16 %v759_v19, %v758_v17  ;;  %v1393_v25 = vpack.c.bf16 %v725_v20, %v724_v18  ;;  %v1616_v26 = vpop.f32.mrb[8].mxu0 }
  0xf9   : > { %1542 = vst [vmem:[%s1884_s28 + $0x18] sm:$0xff] %v1398_v22   ;;  %v1473_v27 = vpack.c.bf16 %v757_v23, %v756_v21  ;;  %v506_v28 = vadd.f32 %v1616_v26, %v1870_v34  ;;  %v1648_v29 = vpop.f32.mrb[8].mxu1  ;;  %v497_v30 = vpop.f32.mrb[9].mxu0 }
  0xfa   : > { %1558 = vst [vmem:[%s1884_s28 + $0x98] sm:$0xff] %v1478_v24   ;;  %1541 = vst [vmem:[%s1884_s28 + $0x10] sm:$0xff] %v1393_v25   ;;  %v634_v31 = vadd.f32 %v1648_v29, %v1870_v34  ;;  %v498_v32 = vadd.f32 %v1870_v34, %v497_v30  ;;  %v625_v33 = vpop.f32.mrb[9].mxu1  ;;  %v1617_v35 = vpop.f32.mrb[10].mxu0 }
  0xfb   : > { %1557 = vst [vmem:[%s1884_s28 + $0x90] sm:$0xff] %v1473_v27   ;;  %v626_v36 = vadd.f32 %v1870_v34, %v625_v33  ;;  %v509_v37 = vadd.f32 %v1617_v35, %v1870_v34  ;;  %v1649_v38 = vpop.f32.mrb[10].mxu1  ;;  %v500_v39 = vpop.f32.mrb[11].mxu0  ;;  %v730_v43 = vmax.f32 %v506_v28, 0.0 }
  0xfc   : > { %v637_v40 = vadd.f32 %v1649_v38, %v1870_v34  ;;  %v501_v41 = vadd.f32 %v1870_v34, %v500_v39  ;;  %v628_v42 = vpop.f32.mrb[11].mxu1  ;;  %v762_v46 = vmax.f32 %v634_v31, 0.0  ;;  %v728_v47 = vmax.f32 %v498_v32, 0.0 }
  0xfd   : > { %v731_v44 = vmax.f32 %v509_v37, 0.0  ;;  %v629_v45 = vadd.f32 %v1870_v34, %v628_v42  ;;  %v760_v50 = vmax.f32 %v626_v36, 0.0 }
  0xfe   : > { %v763_v48 = vmax.f32 %v637_v40, 0.0  ;;  %v729_v49 = vmax.f32 %v501_v41, 0.0 }
  0xff   : > { %v1408_v51 = vpack.c.bf16 %v731_v44, %v730_v43  ;;  %v761_v52 = vmax.f32 %v629_v45, 0.0 }
 0x100   : > { %v1488_v53 = vpack.c.bf16 %v763_v48, %v762_v46  ;;  %v1403_v54 = vpack.c.bf16 %v729_v49, %v728_v47  ;;  %v1620_v55 = vpop.f32.mrb[12].mxu0 }
 0x101   : > { %1544 = vst [vmem:[%s1884_s28 + $0x28] sm:$0xff] %v1408_v51   ;;  %v1483_v56 = vpack.c.bf16 %v761_v52, %v760_v50  ;;  %v522_v57 = vadd.f32 %v1620_v55, %v1870_v34  ;;  %v1652_v58 = vpop.f32.mrb[12].mxu1  ;;  %v513_v59 = vpop.f32.mrb[13].mxu0 }
 0x102   : > { %1560 = vst [vmem:[%s1884_s28 + $0xa8] sm:$0xff] %v1488_v53   ;;  %1543 = vst [vmem:[%s1884_s28 + $0x20] sm:$0xff] %v1403_v54   ;;  %v650_v60 = vadd.f32 %v1652_v58, %v1870_v34  ;;  %v514_v61 = vadd.f32 %v1870_v34, %v513_v59  ;;  %v641_v62 = vpop.f32.mrb[13].mxu1  ;;  %v1621_v63 = vpop.f32.mrb[14].mxu0 }
 0x103   : > { %1559 = vst [vmem:[%s1884_s28 + $0xa0] sm:$0xff] %v1483_v56   ;;  %v642_v0 = vadd.f32 %v1870_v34, %v641_v62  ;;  %v525_v1 = vadd.f32 %v1621_v63, %v1870_v34  ;;  %v1653_v2 = vpop.f32.mrb[14].mxu1  ;;  %v516_v3 = vpop.f32.mrb[15].mxu0  ;;  %v734_v7 = vmax.f32 %v522_v57, 0.0 }
 0x104   : > { %v653_v4 = vadd.f32 %v1653_v2, %v1870_v34  ;;  %v517_v5 = vadd.f32 %v1870_v34, %v516_v3  ;;  %v644_v6 = vpop.f32.mrb[15].mxu1  ;;  %v766_v10 = vmax.f32 %v650_v60, 0.0  ;;  %v732_v11 = vmax.f32 %v514_v61, 0.0 }
 0x105   : > { %v735_v8 = vmax.f32 %v525_v1, 0.0  ;;  %v645_v9 = vadd.f32 %v1870_v34, %v644_v6  ;;  %v764_v14 = vmax.f32 %v642_v0, 0.0 }
 0x106   : > { %v767_v12 = vmax.f32 %v653_v4, 0.0  ;;  %v733_v13 = vmax.f32 %v517_v5, 0.0 }
 0x107   : > { %v1418_v15 = vpack.c.bf16 %v735_v8, %v734_v7  ;;  %v765_v16 = vmax.f32 %v645_v9, 0.0 }
 0x108   : > { %v1498_v17 = vpack.c.bf16 %v767_v12, %v766_v10  ;;  %v1413_v18 = vpack.c.bf16 %v733_v13, %v732_v11  ;;  %v1624_v19 = vpop.f32.mrb[16].mxu0 }
 0x109   : > { %1546 = vst [vmem:[%s1884_s28 + $0x38] sm:$0xff] %v1418_v15   ;;  %v1493_v20 = vpack.c.bf16 %v765_v16, %v764_v14  ;;  %v538_v21 = vadd.f32 %v1624_v19, %v1870_v34  ;;  %v1656_v22 = vpop.f32.mrb[16].mxu1  ;;  %v529_v23 = vpop.f32.mrb[17].mxu0 }
 0x10a   : > { %1562 = vst [vmem:[%s1884_s28 + $0xb8] sm:$0xff] %v1498_v17   ;;  %1545 = vst [vmem:[%s1884_s28 + $0x30] sm:$0xff] %v1413_v18   ;;  %v666_v24 = vadd.f32 %v1656_v22, %v1870_v34  ;;  %v530_v25 = vadd.f32 %v1870_v34, %v529_v23  ;;  %v657_v26 = vpop.f32.mrb[17].mxu1  ;;  %v1625_v27 = vpop.f32.mrb[18].mxu0 }
 0x10b   : > { %1561 = vst [vmem:[%s1884_s28 + $0xb0] sm:$0xff] %v1493_v20   ;;  %v658_v28 = vadd.f32 %v1870_v34, %v657_v26  ;;  %v541_v29 = vadd.f32 %v1625_v27, %v1870_v34  ;;  %v1657_v30 = vpop.f32.mrb[18].mxu1  ;;  %v532_v31 = vpop.f32.mrb[19].mxu0  ;;  %v738_v36 = vmax.f32 %v538_v21, 0.0 }
 0x10c   : > { %v669_v32 = vadd.f32 %v1657_v30, %v1870_v34  ;;  %v533_v33 = vadd.f32 %v1870_v34, %v532_v31  ;;  %v660_v35 = vpop.f32.mrb[19].mxu1  ;;  %v770_v39 = vmax.f32 %v666_v24, 0.0  ;;  %v736_v40 = vmax.f32 %v530_v25, 0.0 }
 0x10d   : > { %v739_v37 = vmax.f32 %v541_v29, 0.0  ;;  %v661_v38 = vadd.f32 %v1870_v34, %v660_v35  ;;  %v768_v43 = vmax.f32 %v658_v28, 0.0 }
 0x10e   : > { %v771_v41 = vmax.f32 %v669_v32, 0.0  ;;  %v737_v42 = vmax.f32 %v533_v33, 0.0 }
 0x10f   : > { %v1428_v44 = vpack.c.bf16 %v739_v37, %v738_v36  ;;  %v769_v45 = vmax.f32 %v661_v38, 0.0 }
 0x110   : > { %v1508_v46 = vpack.c.bf16 %v771_v41, %v770_v39  ;;  %v1423_v47 = vpack.c.bf16 %v737_v42, %v736_v40  ;;  %v1628_v48 = vpop.f32.mrb[20].mxu0 }
 0x111   : > { %1548 = vst [vmem:[%s1884_s28 + $0x48] sm:$0xff] %v1428_v44   ;;  %v1503_v49 = vpack.c.bf16 %v769_v45, %v768_v43  ;;  %v554_v50 = vadd.f32 %v1628_v48, %v1870_v34  ;;  %v1660_v51 = vpop.f32.mrb[20].mxu1  ;;  %v545_v52 = vpop.f32.mrb[21].mxu0 }
 0x112   : > { %1564 = vst [vmem:[%s1884_s28 + $0xc8] sm:$0xff] %v1508_v46   ;;  %1547 = vst [vmem:[%s1884_s28 + $0x40] sm:$0xff] %v1423_v47   ;;  %v682_v53 = vadd.f32 %v1660_v51, %v1870_v34  ;;  %v546_v54 = vadd.f32 %v1870_v34, %v545_v52  ;;  %v673_v55 = vpop.f32.mrb[21].mxu1  ;;  %v1629_v56 = vpop.f32.mrb[22].mxu0 }
 0x113   : > { %1563 = vst [vmem:[%s1884_s28 + $0xc0] sm:$0xff] %v1503_v49   ;;  %v674_v57 = vadd.f32 %v1870_v34, %v673_v55  ;;  %v557_v58 = vadd.f32 %v1629_v56, %v1870_v34  ;;  %v1661_v59 = vpop.f32.mrb[22].mxu1  ;;  %v548_v60 = vpop.f32.mrb[23].mxu0  ;;  %v742_v0 = vmax.f32 %v554_v50, 0.0 }
 0x114   : > { %v685_v61 = vadd.f32 %v1661_v59, %v1870_v34  ;;  %v549_v62 = vadd.f32 %v1870_v34, %v548_v60  ;;  %v676_v63 = vpop.f32.mrb[23].mxu1  ;;  %v774_v3 = vmax.f32 %v682_v53, 0.0  ;;  %v740_v4 = vmax.f32 %v546_v54, 0.0 }
 0x115   : > { %v743_v1 = vmax.f32 %v557_v58, 0.0  ;;  %v677_v2 = vadd.f32 %v1870_v34, %v676_v63  ;;  %v772_v7 = vmax.f32 %v674_v57, 0.0 }
 0x116   : > { %v775_v5 = vmax.f32 %v685_v61, 0.0  ;;  %v741_v6 = vmax.f32 %v549_v62, 0.0 }
 0x117   : > { %v1438_v8 = vpack.c.bf16 %v743_v1, %v742_v0  ;;  %v773_v9 = vmax.f32 %v677_v2, 0.0 }
 0x118   : > { %v1518_v10 = vpack.c.bf16 %v775_v5, %v774_v3  ;;  %v1433_v11 = vpack.c.bf16 %v741_v6, %v740_v4  ;;  %v1632_v12 = vpop.f32.mrb[24].mxu0 }
 0x119   : > { %1550 = vst [vmem:[%s1884_s28 + $0x58] sm:$0xff] %v1438_v8   ;;  %v1513_v13 = vpack.c.bf16 %v773_v9, %v772_v7  ;;  %v570_v14 = vadd.f32 %v1632_v12, %v1870_v34  ;;  %v1664_v15 = vpop.f32.mrb[24].mxu1  ;;  %v561_v16 = vpop.f32.mrb[25].mxu0 }
 0x11a   : > { %1566 = vst [vmem:[%s1884_s28 + $0xd8] sm:$0xff] %v1518_v10   ;;  %1549 = vst [vmem:[%s1884_s28 + $0x50] sm:$0xff] %v1433_v11   ;;  %v698_v17 = vadd.f32 %v1664_v15, %v1870_v34  ;;  %v562_v18 = vadd.f32 %v1870_v34, %v561_v16  ;;  %v689_v19 = vpop.f32.mrb[25].mxu1  ;;  %v1633_v20 = vpop.f32.mrb[26].mxu0 }
 0x11b   : > { %1565 = vst [vmem:[%s1884_s28 + $0xd0] sm:$0xff] %v1513_v13   ;;  %v690_v21 = vadd.f32 %v1870_v34, %v689_v19  ;;  %v573_v22 = vadd.f32 %v1633_v20, %v1870_v34  ;;  %v1665_v23 = vpop.f32.mrb[26].mxu1  ;;  %v564_v24 = vpop.f32.mrb[27].mxu0  ;;  %v746_v28 = vmax.f32 %v570_v14, 0.0 }
 0x11c   : > { %v701_v25 = vadd.f32 %v1665_v23, %v1870_v34  ;;  %v565_v26 = vadd.f32 %v1870_v34, %v564_v24  ;;  %v692_v27 = vpop.f32.mrb[27].mxu1  ;;  %v778_v31 = vmax.f32 %v698_v17, 0.0  ;;  %v744_v32 = vmax.f32 %v562_v18, 0.0 }
 0x11d   : > { %v747_v29 = vmax.f32 %v573_v22, 0.0  ;;  %v693_v30 = vadd.f32 %v1870_v34, %v692_v27  ;;  %v776_v36 = vmax.f32 %v690_v21, 0.0 }
 0x11e   : > { %v779_v33 = vmax.f32 %v701_v25, 0.0  ;;  %v745_v35 = vmax.f32 %v565_v26, 0.0 }
 0x11f   : > { %v1448_v37 = vpack.c.bf16 %v747_v29, %v746_v28  ;;  %v777_v38 = vmax.f32 %v693_v30, 0.0 }
 0x120   : > { %v1528_v39 = vpack.c.bf16 %v779_v33, %v778_v31  ;;  %v1443_v40 = vpack.c.bf16 %v745_v35, %v744_v32  ;;  %v1636_v41 = vpop.f32.mrb[28].mxu0 }
 0x121   : > { %1552 = vst [vmem:[%s1884_s28 + $0x68] sm:$0xff] %v1448_v37   ;;  %v1523_v42 = vpack.c.bf16 %v777_v38, %v776_v36  ;;  %v586_v43 = vadd.f32 %v1636_v41, %v1870_v34  ;;  %v1668_v44 = vpop.f32.mrb[28].mxu1  ;;  %v577_v45 = vpop.f32.mrb[29].mxu0 }
 0x122   : > { %1568 = vst [vmem:[%s1884_s28 + $0xe8] sm:$0xff] %v1528_v39   ;;  %1551 = vst [vmem:[%s1884_s28 + $0x60] sm:$0xff] %v1443_v40   ;;  %v714_v46 = vadd.f32 %v1668_v44, %v1870_v34  ;;  %v578_v47 = vadd.f32 %v1870_v34, %v577_v45  ;;  %v705_v48 = vpop.f32.mrb[29].mxu1  ;;  %v1637_v49 = vpop.f32.mrb[30].mxu0 }
 0x123   : > { %1567 = vst [vmem:[%s1884_s28 + $0xe0] sm:$0xff] %v1523_v42   ;;  %v706_v50 = vadd.f32 %v1870_v34, %v705_v48  ;;  %v589_v51 = vadd.f32 %v1637_v49, %v1870_v34  ;;  %v1669_v52 = vpop.f32.mrb[30].mxu1  ;;  %v580_v53 = vpop.f32.mrb[31].mxu0  ;;  %v750_v57 = vmax.f32 %v586_v43, 0.0 }
 0x124   : > { %v717_v54 = vadd.f32 %v1669_v52, %v1870_v34  ;;  %v581_v55 = vadd.f32 %v1870_v34, %v580_v53  ;;  %v708_v56 = vpop.f32.mrb[31].mxu1  ;;  %v782_v60 = vmax.f32 %v714_v46, 0.0  ;;  %v748_v61 = vmax.f32 %v578_v47, 0.0 }
 0x125   : > { %v751_v58 = vmax.f32 %v589_v51, 0.0  ;;  %v709_v59 = vadd.f32 %v1870_v34, %v708_v56  ;;  %v780_v0 = vmax.f32 %v706_v50, 0.0 }
 0x126   : > { %v783_v62 = vmax.f32 %v717_v54, 0.0  ;;  %v749_v63 = vmax.f32 %v581_v55, 0.0 }
 0x127   : > { %v1458_v1 = vpack.c.bf16 %v751_v58, %v750_v57  ;;  %v781_v2 = vmax.f32 %v709_v59, 0.0 }
 0x128   : > { %v1538_v3 = vpack.c.bf16 %v783_v62, %v782_v60  ;;  %v1453_v4 = vpack.c.bf16 %v749_v63, %v748_v61 }
 0x129   : > { %1554 = vst [vmem:[%s1884_s28 + $0x78] sm:$0xff] %v1458_v1   ;;  %v1533_v5 = vpack.c.bf16 %v781_v2, %v780_v0 }
 0x12a   : > { %1570 = vst [vmem:[%s1884_s28 + $0xf8] sm:$0xff] %v1538_v3   ;;  %1553 = vst [vmem:[%s1884_s28 + $0x70] sm:$0xff] %v1453_v4  }
 0x12b   : > { %1569 = vst [vmem:[%s1884_s28 + $0xf0] sm:$0xff] %v1533_v5  }
 0x12c PF: > { %s13_s14 = sadd.s32 1, %s1720_s14   ;;  %s1987_s12 = smov %s1716_s13 }
 0x12d   : > { %p10_p5 = scmp.ge.s32.totalorder %s13_s14, 6   ;;  %s1988_s13 = smov %s1990_s15 }
 0x12f   :  { %12 = sbr.rel (!%p10_p5) target bundleno = 2 (0x2), region = 68 }

// kernel: forward.6
= control target key start
LH: loop header
LB: loop body
LE: loop exit
PB: predicated region body
PF: predicated region fallthrough
CT: control target
= control target key end

     0   :  { %s1678_s12 = smov 0   ;;  %s1680_s13 = smov 0   ;;  %s1919_s0 = inlined_call_operand.vmem [shape: f32[2048,4], index: 0, kind: input, shape index: {}]   ;;  %s1920_s1 = inlined_call_operand.vmem [shape: bf16[4,128], index: 1, kind: input, shape index: {}]   ;;  %s1921_s2 = inlined_call_operand.vmem [shape: f32[1,128], index: 2, kind: input, shape index: {}]   ;;  %s1922_s3 = inlined_call_operand.vmem [shape: bf16[2048,128], index: 3, kind: output, shape index: {}]  }
   0x1   :  { %s1682_s14 = smov 0  }
   0x2 LB: > { %s25_s15 = sadd.s32 1, %s1652_s13  ;;  %p1148_p0 = scmp.ge.s32.totalorder %s1656_s14, 1  ;;  %s1656_s14 = sphi %s1682_s14, %s13_s14   ;;  %s1652_s13 = sphi %s1680_s13, %s1924_s13   ;;  %s1648_s12 = sphi %s1678_s12, %s1923_s12  }
   0x3   : > { %p27_p1 = scmp.ge.s32.totalorder %s25_s15, 4  ;;  %p169_p2 = scmp.lt.s32.totalorder %s1656_s14, 5 }
   0x5   : > { %s1926_s15 = smov (%p27_p1, %s25_s15), 0  ;;  %p170_p3 = pnand %p1148_p0, %p169_p2 }
   0x6   : > { %v322_v0 = vld [vmem:[%s1920_s1] sm:$0x3] (!%p170_p3)  ;;  %vm427_vm0 = vcmask (!%p170_p3), 1041408   ;;  %s1149_s18 = sshll.u32 (!%p170_p3), %s1648_s12, 6  ;;  %vm330_vm1 = vcmask (!%p170_p3), 31744  }
   0x7   : > { %173 = sbr.rel (%p170_p3) target bundleno = 298 (0x12a), region = 32  ;;  %1608 = vmatprep.subr.msk.bf16.mxu0 (!%p170_p3), %vm427_vm0, %v322_v0  ;;  %1609 = vmatprep.subr.msk.bf16.mxu1 (!%p170_p3), %vm427_vm0, %v322_v0  ;;  %v429_v1 = vsel (!%p170_p3), %vm427_vm0, %v322_v0, 0  ;;  %p204_p4 = scmp.lt.s32.totalorder (!%p170_p3), %s1149_s18, 255 }
   0x8   : > { %1541 = vmatpush3.bf16.msra.mxu0 (!%p170_p3), %v429_v1  ;;  %1607 = vmatpush3.bf16.msra.mxu1 (!%p170_p3), %v429_v1 }
   0xe   : > { %s1928_s18 = smov (!%p204_p4, %s1149_s18), 255 }
   0xf   : > { %s1150_s19 = sshll.u32 %s1928_s18, 3  ;;  %s1152_s25 = sshll.u32 %s1928_s18, 2 }
  0x10   : > { %s1705_s22 = scalar_lea.vmem %s1919_s0, %s1150_s19  ;;  %s1816_s28 = scalar_lea.vmem %s1922_s3, %s1152_s25 }
  0x11   : > { %v226_v2 = vld [vmem:[%s1705_s22] sm:$0xff]  ;;  %v227_v3 = vld [vmem:[%s1705_s22 + $0x8] sm:$0xff]  ;;  %v228_v7 = vld [vmem:[%s1705_s22 + $0x10] sm:$0xff] }
  0x12   : > { %v258_v4 = vld [vmem:[%s1705_s22 + $0x100] sm:$0xff]  ;;  %v290_v5 = vpack.c.bf16 %v227_v3, %v226_v2  ;;  %v259_v6 = vld [vmem:[%s1705_s22 + $0x108] sm:$0xff]  ;;  %v229_v8 = vld [vmem:[%s1705_s22 + $0x18] sm:$0xff] }
  0x13   : > { %v306_v9 = vpack.c.bf16 %v259_v6, %v258_v4  ;;  %v291_v10 = vpack.c.bf16 %v229_v8, %v228_v7  ;;  %v260_v11 = vld [vmem:[%s1705_s22 + $0x110] sm:$0xff]  ;;  %v261_v12 = vld [vmem:[%s1705_s22 + $0x118] sm:$0xff]  ;;  %v230_v13 = vld [vmem:[%s1705_s22 + $0x20] sm:$0xff] }
  0x14   : > { %1542 = vmatprep.mubr.msk.bf16.mxu0 %vm330_vm1, %v290_v5  ;;  %v307_v14 = vpack.c.bf16 %v261_v12, %v260_v11  ;;  %v231_v15 = vld [vmem:[%s1705_s22 + $0x28] sm:$0xff]  ;;  %v262_v16 = vld [vmem:[%s1705_s22 + $0x120] sm:$0xff]  ;;  %v232_v20 = vld [vmem:[%s1705_s22 + $0x30] sm:$0xff] }
  0x15   : > { %v263_v17 = vld [vmem:[%s1705_s22 + $0x128] sm:$0xff]  ;;  %1574 = vmatprep.mubr.msk.bf16.mxu1 %vm330_vm1, %v306_v9  ;;  %1543 = vmatmul.mubr.msk.bf16.vlgmr.msra.gmra.mrb[0].mxu0 %vm330_vm1, %v291_v10  ;;  %v292_v18 = vpack.c.bf16 %v231_v15, %v230_v13  ;;  %v233_v21 = vld [vmem:[%s1705_s22 + $0x38] sm:$0xff]  ;;  %v264_v22 = vld [vmem:[%s1705_s22 + $0x130] sm:$0xff] }
  0x16   : > { %v308_v19 = vpack.c.bf16 %v263_v17, %v262_v16  ;;  %1575 = vmatmul.mubr.msk.bf16.vlgmr.msra.gmra.mrb[0].mxu1 %vm330_vm1, %v307_v14  ;;  %v265_v23 = vld [vmem:[%s1705_s22 + $0x138] sm:$0xff]  ;;  %v234_v24 = vld [vmem:[%s1705_s22 + $0x40] sm:$0xff]  ;;  %v235_v25 = vld [vmem:[%s1705_s22 + $0x48] sm:$0xff]  ;;  %v293_v28 = vpack.c.bf16 %v233_v21, %v232_v20 }
  0x17   : > { %1546 = vmatprep.mubr.msk.bf16.mxu0 %vm330_vm1, %v292_v18  ;;  %v266_v26 = vld [vmem:[%s1705_s22 + $0x140] sm:$0xff]  ;;  %v267_v27 = vld [vmem:[%s1705_s22 + $0x148] sm:$0xff]  ;;  %v309_v29 = vpack.c.bf16 %v265_v23, %v264_v22  ;;  %v294_v30 = vpack.c.bf16 %v235_v25, %v234_v24  ;;  %v236_v32 = vld [vmem:[%s1705_s22 + $0x50] sm:$0xff] }
  0x18   : > { %1578 = vmatprep.mubr.msk.bf16.mxu1 %vm330_vm1, %v308_v19  ;;  %v310_v31 = vpack.c.bf16 %v267_v27, %v266_v26  ;;  %v237_v33 = vld [vmem:[%s1705_s22 + $0x58] sm:$0xff]  ;;  %v268_v34 = vld [vmem:[%s1705_s22 + $0x150] sm:$0xff]  ;;  %v238_v36 = vld [vmem:[%s1705_s22 + $0x60] sm:$0xff] }
  0x19   : > { %v269_v35 = vld [vmem:[%s1705_s22 + $0x158] sm:$0xff]  ;;  %v239_v37 = vld [vmem:[%s1705_s22 + $0x68] sm:$0xff]  ;;  %v270_v38 = vld [vmem:[%s1705_s22 + $0x160] sm:$0xff]  ;;  %v295_v40 = vpack.c.bf16 %v237_v33, %v236_v32 }
  0x1a   : > { %v271_v39 = vld [vmem:[%s1705_s22 + $0x168] sm:$0xff]  ;;  %v311_v41 = vpack.c.bf16 %v269_v35, %v268_v34  ;;  %v296_v42 = vpack.c.bf16 %v239_v37, %v238_v36  ;;  %v240_v44 = vld [vmem:[%s1705_s22 + $0x70] sm:$0xff]  ;;  %v241_v45 = vld [vmem:[%s1705_s22 + $0x78] sm:$0xff] }
  0x1b   : > { %v312_v43 = vpack.c.bf16 %v271_v39, %v270_v38  ;;  %v272_v46 = vld [vmem:[%s1705_s22 + $0x170] sm:$0xff]  ;;  %v273_v47 = vld [vmem:[%s1705_s22 + $0x178] sm:$0xff]  ;;  %v242_v48 = vld [vmem:[%s1705_s22 + $0x80] sm:$0xff]  ;;  %v297_v52 = vpack.c.bf16 %v241_v45, %v240_v44 }
  0x1c   : > { %v243_v49 = vld [vmem:[%s1705_s22 + $0x88] sm:$0xff]  ;;  %v274_v50 = vld [vmem:[%s1705_s22 + $0x180] sm:$0xff]  ;;  %v313_v53 = vpack.c.bf16 %v273_v47, %v272_v46  ;;  %v244_v56 = vld [vmem:[%s1705_s22 + $0x90] sm:$0xff] }
  0x1d   : > { %1547 = vmatmul.mubr.msk.bf16.gmra.mrb[4].mxu0 %vm330_vm1, %v293_v28  ;;  %v275_v51 = vld [vmem:[%s1705_s22 + $0x188] sm:$0xff]  ;;  %v298_v54 = vpack.c.bf16 %v243_v49, %v242_v48  ;;  %v245_v57 = vld [vmem:[%s1705_s22 + $0x98] sm:$0xff]  ;;  %v276_v58 = vld [vmem:[%s1705_s22 + $0x190] sm:$0xff] }
  0x1e   : > { %1579 = vmatmul.mubr.msk.bf16.gmra.mrb[4].mxu1 %vm330_vm1, %v309_v29  ;;  %1550 = vmatprep.mubr.msk.bf16.mxu0 %vm330_vm1, %v294_v30  ;;  %v314_v55 = vpack.c.bf16 %v275_v51, %v274_v50  ;;  %v277_v59 = vld [vmem:[%s1705_s22 + $0x198] sm:$0xff]  ;;  %v246_v60 = vld [vmem:[%s1705_s22 + $0xa0] sm:$0xff]  ;;  %v247_v61 = vld [vmem:[%s1705_s22 + $0xa8] sm:$0xff]  ;;  %v299_v0 = vpack.c.bf16 %v245_v57, %v244_v56 }
  0x1f   : > { %1582 = vmatprep.mubr.msk.bf16.mxu1 %vm330_vm1, %v310_v31  ;;  %v278_v62 = vld [vmem:[%s1705_s22 + $0x1a0] sm:$0xff]  ;;  %v279_v63 = vld [vmem:[%s1705_s22 + $0x1a8] sm:$0xff]  ;;  %v315_v1 = vpack.c.bf16 %v277_v59, %v276_v58  ;;  %v300_v2 = vpack.c.bf16 %v247_v61, %v246_v60  ;;  %v248_v4 = vld [vmem:[%s1705_s22 + $0xb0] sm:$0xff] }
  0x20   : > { %v316_v3 = vpack.c.bf16 %v279_v63, %v278_v62  ;;  %v249_v5 = vld [vmem:[%s1705_s22 + $0xb8] sm:$0xff]  ;;  %v280_v6 = vld [vmem:[%s1705_s22 + $0x1b0] sm:$0xff]  ;;  %v250_v8 = vld [vmem:[%s1705_s22 + $0xc0] sm:$0xff] }
  0x21   : > { %v281_v7 = vld [vmem:[%s1705_s22 + $0x1b8] sm:$0xff]  ;;  %v251_v9 = vld [vmem:[%s1705_s22 + $0xc8] sm:$0xff]  ;;  %v282_v10 = vld [vmem:[%s1705_s22 + $0x1c0] sm:$0xff]  ;;  %v301_v12 = vpack.c.bf16 %v249_v5, %v248_v4 }
  0x22   : > { %v283_v11 = vld [vmem:[%s1705_s22 + $0x1c8] sm:$0xff]  ;;  %v317_v13 = vpack.c.bf16 %v281_v7, %v280_v6  ;;  %v302_v14 = vpack.c.bf16 %v251_v9, %v250_v8  ;;  %v252_v16 = vld [vmem:[%s1705_s22 + $0xd0] sm:$0xff]  ;;  %v253_v17 = vld [vmem:[%s1705_s22 + $0xd8] sm:$0xff] }
  0x23   : > { %v318_v15 = vpack.c.bf16 %v283_v11, %v282_v10  ;;  %v284_v18 = vld [vmem:[%s1705_s22 + $0x1d0] sm:$0xff]  ;;  %v285_v19 = vld [vmem:[%s1705_s22 + $0x1d8] sm:$0xff]  ;;  %v254_v20 = vld [vmem:[%s1705_s22 + $0xe0] sm:$0xff]  ;;  %v303_v24 = vpack.c.bf16 %v253_v17, %v252_v16 }
  0x24   : > { %v255_v21 = vld [vmem:[%s1705_s22 + $0xe8] sm:$0xff]  ;;  %v286_v22 = vld [vmem:[%s1705_s22 + $0x1e0] sm:$0xff]  ;;  %v319_v25 = vpack.c.bf16 %v285_v19, %v284_v18  ;;  %v256_v28 = vld [vmem:[%s1705_s22 + $0xf0] sm:$0xff] }
  0x25   : > { %1551 = vmatmul.mubr.msk.bf16.gmra.mrb[8].mxu0 %vm330_vm1, %v295_v40  ;;  %v287_v23 = vld [vmem:[%s1705_s22 + $0x1e8] sm:$0xff]  ;;  %v304_v26 = vpack.c.bf16 %v255_v21, %v254_v20  ;;  %v257_v29 = vld [vmem:[%s1705_s22 + $0xf8] sm:$0xff]  ;;  %v288_v30 = vld [vmem:[%s1705_s22 + $0x1f0] sm:$0xff] }
  0x26   : > { %1583 = vmatmul.mubr.msk.bf16.gmra.mrb[8].mxu1 %vm330_vm1, %v311_v41  ;;  %1554 = vmatprep.mubr.msk.bf16.mxu0 %vm330_vm1, %v296_v42  ;;  %v320_v27 = vpack.c.bf16 %v287_v23, %v286_v22  ;;  %v289_v31 = vld [vmem:[%s1705_s22 + $0x1f8] sm:$0xff]  ;;  %v305_v32 = vpack.c.bf16 %v257_v29, %v256_v28  ;;  %v1806_v35 = vld [vmem:[%s1921_s2] ss:$0 sm:$0xff] }
  0x27   : > { %1586 = vmatprep.mubr.msk.bf16.mxu1 %vm330_vm1, %v312_v43  ;;  %v321_v33 = vpack.c.bf16 %v289_v31, %v288_v30 }
  0x2d   : > { %1555 = vmatmul.mubr.msk.bf16.gmra.mrb[12].mxu0 %vm330_vm1, %v297_v52 }
  0x2e   : > { %1587 = vmatmul.mubr.msk.bf16.gmra.mrb[12].mxu1 %vm330_vm1, %v313_v53  ;;  %1558 = vmatprep.mubr.msk.bf16.mxu0 %vm330_vm1, %v298_v54 }
  0x2f   : > { %1590 = vmatprep.mubr.msk.bf16.mxu1 %vm330_vm1, %v314_v55 }
  0x35   : > { %1559 = vmatmul.mubr.msk.bf16.gmra.mrb[16].mxu0 %vm330_vm1, %v299_v0 }
  0x36   : > { %1591 = vmatmul.mubr.msk.bf16.gmra.mrb[16].mxu1 %vm330_vm1, %v315_v1  ;;  %1562 = vmatprep.mubr.msk.bf16.mxu0 %vm330_vm1, %v300_v2 }
  0x37   : > { %1594 = vmatprep.mubr.msk.bf16.mxu1 %vm330_vm1, %v316_v3 }
  0x3d   : > { %1563 = vmatmul.mubr.msk.bf16.gmra.mrb[20].mxu0 %vm330_vm1, %v301_v12 }
  0x3e   : > { %1595 = vmatmul.mubr.msk.bf16.gmra.mrb[20].mxu1 %vm330_vm1, %v317_v13  ;;  %1566 = vmatprep.mubr.msk.bf16.mxu0 %vm330_vm1, %v302_v14 }
  0x3f   : > { %1598 = vmatprep.mubr.msk.bf16.mxu1 %vm330_vm1, %v318_v15 }
  0x45   : > { %1567 = vmatmul.mubr.msk.bf16.gmra.mrb[24].mxu0 %vm330_vm1, %v303_v24 }
  0x46   : > { %1599 = vmatmul.mubr.msk.bf16.gmra.mrb[24].mxu1 %vm330_vm1, %v319_v25  ;;  %1570 = vmatprep.mubr.msk.bf16.mxu0 %vm330_vm1, %v304_v26 }
  0x47   : > { %1602 = vmatprep.mubr.msk.bf16.mxu1 %vm330_vm1, %v320_v27 }
  0x4d   : > { %1571 = vmatmul.mubr.msk.bf16.gmra.mrb[28].mxu0 %vm330_vm1, %v305_v32 }
  0x4e   : > { %1603 = vmatmul.mubr.msk.bf16.gmra.mrb[28].mxu1 %vm330_vm1, %v321_v33 }
  0xe8   : > { %v1544_v34 = vpop.f32.mrb[0].mxu0 }
  0xe9   : > { %v1576_v36 = vpop.f32.mrb[0].mxu1  ;;  %v465_v37 = vpop.f32.mrb[1].mxu0  ;;  %v474_v40 = vadd.f32 %v1544_v34, %v1806_v35 }
  0xea   : > { %v593_v38 = vpop.f32.mrb[1].mxu1  ;;  %v1545_v39 = vpop.f32.mrb[2].mxu0  ;;  %v602_v44 = vadd.f32 %v1576_v36, %v1806_v35  ;;  %v466_v45 = vadd.f32 %v1806_v35, %v465_v37 }
  0xeb   : > { %v477_v41 = vadd.f32 %v1545_v39, %v1806_v35  ;;  %v1577_v42 = vpop.f32.mrb[2].mxu1  ;;  %v468_v43 = vpop.f32.mrb[3].mxu0  ;;  %v594_v49 = vadd.f32 %v1806_v35, %v593_v38 }
  0xec   : > { %v605_v46 = vadd.f32 %v1577_v42, %v1806_v35  ;;  %v469_v47 = vadd.f32 %v1806_v35, %v468_v43  ;;  %v596_v48 = vpop.f32.mrb[3].mxu1 }
  0xed   : > { %v1324_v50 = vpack.c.bf16 %v477_v41, %v474_v40  ;;  %v597_v51 = vadd.f32 %v1806_v35, %v596_v48 }
  0xee   : > { %v1404_v52 = vpack.c.bf16 %v605_v46, %v602_v44  ;;  %v1319_v53 = vpack.c.bf16 %v469_v47, %v466_v45 }
  0xef   : > { %1476 = vst [vmem:[%s1816_s28 + $0x8] sm:$0xff] %v1324_v50   ;;  %v1399_v54 = vpack.c.bf16 %v597_v51, %v594_v49 }
  0xf0   : > { %1492 = vst [vmem:[%s1816_s28 + $0x88] sm:$0xff] %v1404_v52   ;;  %1320 = vst [vmem:[%s1816_s28] sm:$0xff] %v1319_v53   ;;  %v1548_v55 = vpop.f32.mrb[4].mxu0 }
  0xf1   : > { %1491 = vst [vmem:[%s1816_s28 + $0x80] sm:$0xff] %v1399_v54   ;;  %v1580_v56 = vpop.f32.mrb[4].mxu1  ;;  %v481_v57 = vpop.f32.mrb[5].mxu0  ;;  %v490_v60 = vadd.f32 %v1548_v55, %v1806_v35 }
  0xf2   : > { %v609_v58 = vpop.f32.mrb[5].mxu1  ;;  %v1549_v59 = vpop.f32.mrb[6].mxu0  ;;  %v618_v0 = vadd.f32 %v1580_v56, %v1806_v35  ;;  %v482_v1 = vadd.f32 %v1806_v35, %v481_v57 }
  0xf3   : > { %v493_v61 = vadd.f32 %v1549_v59, %v1806_v35  ;;  %v1581_v62 = vpop.f32.mrb[6].mxu1  ;;  %v484_v63 = vpop.f32.mrb[7].mxu0  ;;  %v610_v5 = vadd.f32 %v1806_v35, %v609_v58 }
  0xf4   : > { %v621_v2 = vadd.f32 %v1581_v62, %v1806_v35  ;;  %v485_v3 = vadd.f32 %v1806_v35, %v484_v63  ;;  %v612_v4 = vpop.f32.mrb[7].mxu1 }
  0xf5   : > { %v1334_v6 = vpack.c.bf16 %v493_v61, %v490_v60  ;;  %v613_v7 = vadd.f32 %v1806_v35, %v612_v4 }
  0xf6   : > { %v1414_v8 = vpack.c.bf16 %v621_v2, %v618_v0  ;;  %v1329_v9 = vpack.c.bf16 %v485_v3, %v482_v1 }
  0xf7   : > { %1478 = vst [vmem:[%s1816_s28 + $0x18] sm:$0xff] %v1334_v6   ;;  %v1409_v10 = vpack.c.bf16 %v613_v7, %v610_v5 }
  0xf8   : > { %1494 = vst [vmem:[%s1816_s28 + $0x98] sm:$0xff] %v1414_v8   ;;  %1477 = vst [vmem:[%s1816_s28 + $0x10] sm:$0xff] %v1329_v9   ;;  %v1552_v11 = vpop.f32.mrb[8].mxu0 }
  0xf9   : > { %1493 = vst [vmem:[%s1816_s28 + $0x90] sm:$0xff] %v1409_v10   ;;  %v1584_v12 = vpop.f32.mrb[8].mxu1  ;;  %v497_v13 = vpop.f32.mrb[9].mxu0  ;;  %v506_v16 = vadd.f32 %v1552_v11, %v1806_v35 }
  0xfa   : > { %v625_v14 = vpop.f32.mrb[9].mxu1  ;;  %v1553_v15 = vpop.f32.mrb[10].mxu0  ;;  %v634_v20 = vadd.f32 %v1584_v12, %v1806_v35  ;;  %v498_v21 = vadd.f32 %v1806_v35, %v497_v13 }
  0xfb   : > { %v509_v17 = vadd.f32 %v1553_v15, %v1806_v35  ;;  %v1585_v18 = vpop.f32.mrb[10].mxu1  ;;  %v500_v19 = vpop.f32.mrb[11].mxu0  ;;  %v626_v25 = vadd.f32 %v1806_v35, %v625_v14 }
  0xfc   : > { %v637_v22 = vadd.f32 %v1585_v18, %v1806_v35  ;;  %v501_v23 = vadd.f32 %v1806_v35, %v500_v19  ;;  %v628_v24 = vpop.f32.mrb[11].mxu1 }
  0xfd   : > { %v1344_v26 = vpack.c.bf16 %v509_v17, %v506_v16  ;;  %v629_v27 = vadd.f32 %v1806_v35, %v628_v24 }
  0xfe   : > { %v1424_v28 = vpack.c.bf16 %v637_v22, %v634_v20  ;;  %v1339_v29 = vpack.c.bf16 %v501_v23, %v498_v21 }
  0xff   : > { %1480 = vst [vmem:[%s1816_s28 + $0x28] sm:$0xff] %v1344_v26   ;;  %v1419_v30 = vpack.c.bf16 %v629_v27, %v626_v25 }
 0x100   : > { %1496 = vst [vmem:[%s1816_s28 + $0xa8] sm:$0xff] %v1424_v28   ;;  %1479 = vst [vmem:[%s1816_s28 + $0x20] sm:$0xff] %v1339_v29   ;;  %v1556_v31 = vpop.f32.mrb[12].mxu0 }
 0x101   : > { %1495 = vst [vmem:[%s1816_s28 + $0xa0] sm:$0xff] %v1419_v30   ;;  %v1588_v32 = vpop.f32.mrb[12].mxu1  ;;  %v513_v33 = vpop.f32.mrb[13].mxu0  ;;  %v522_v37 = vadd.f32 %v1556_v31, %v1806_v35 }
 0x102   : > { %v641_v34 = vpop.f32.mrb[13].mxu1  ;;  %v1557_v36 = vpop.f32.mrb[14].mxu0  ;;  %v650_v41 = vadd.f32 %v1588_v32, %v1806_v35  ;;  %v514_v42 = vadd.f32 %v1806_v35, %v513_v33 }
 0x103   : > { %v525_v38 = vadd.f32 %v1557_v36, %v1806_v35  ;;  %v1589_v39 = vpop.f32.mrb[14].mxu1  ;;  %v516_v40 = vpop.f32.mrb[15].mxu0  ;;  %v642_v46 = vadd.f32 %v1806_v35, %v641_v34 }
 0x104   : > { %v653_v43 = vadd.f32 %v1589_v39, %v1806_v35  ;;  %v517_v44 = vadd.f32 %v1806_v35, %v516_v40  ;;  %v644_v45 = vpop.f32.mrb[15].mxu1 }
 0x105   : > { %v1354_v47 = vpack.c.bf16 %v525_v38, %v522_v37  ;;  %v645_v48 = vadd.f32 %v1806_v35, %v644_v45 }
 0x106   : > { %v1434_v49 = vpack.c.bf16 %v653_v43, %v650_v41  ;;  %v1349_v50 = vpack.c.bf16 %v517_v44, %v514_v42 }
 0x107   : > { %1482 = vst [vmem:[%s1816_s28 + $0x38] sm:$0xff] %v1354_v47   ;;  %v1429_v51 = vpack.c.bf16 %v645_v48, %v642_v46 }
 0x108   : > { %1498 = vst [vmem:[%s1816_s28 + $0xb8] sm:$0xff] %v1434_v49   ;;  %1481 = vst [vmem:[%s1816_s28 + $0x30] sm:$0xff] %v1349_v50   ;;  %v1560_v52 = vpop.f32.mrb[16].mxu0 }
 0x109   : > { %1497 = vst [vmem:[%s1816_s28 + $0xb0] sm:$0xff] %v1429_v51   ;;  %v1592_v53 = vpop.f32.mrb[16].mxu1  ;;  %v529_v54 = vpop.f32.mrb[17].mxu0  ;;  %v538_v57 = vadd.f32 %v1560_v52, %v1806_v35 }
 0x10a   : > { %v657_v55 = vpop.f32.mrb[17].mxu1  ;;  %v1561_v56 = vpop.f32.mrb[18].mxu0  ;;  %v666_v61 = vadd.f32 %v1592_v53, %v1806_v35  ;;  %v530_v62 = vadd.f32 %v1806_v35, %v529_v54 }
 0x10b   : > { %v541_v58 = vadd.f32 %v1561_v56, %v1806_v35  ;;  %v1593_v59 = vpop.f32.mrb[18].mxu1  ;;  %v532_v60 = vpop.f32.mrb[19].mxu0  ;;  %v658_v2 = vadd.f32 %v1806_v35, %v657_v55 }
 0x10c   : > { %v669_v63 = vadd.f32 %v1593_v59, %v1806_v35  ;;  %v533_v0 = vadd.f32 %v1806_v35, %v532_v60  ;;  %v660_v1 = vpop.f32.mrb[19].mxu1 }
 0x10d   : > { %v1364_v3 = vpack.c.bf16 %v541_v58, %v538_v57  ;;  %v661_v4 = vadd.f32 %v1806_v35, %v660_v1 }
 0x10e   : > { %v1444_v5 = vpack.c.bf16 %v669_v63, %v666_v61  ;;  %v1359_v6 = vpack.c.bf16 %v533_v0, %v530_v62 }
 0x10f   : > { %1484 = vst [vmem:[%s1816_s28 + $0x48] sm:$0xff] %v1364_v3   ;;  %v1439_v7 = vpack.c.bf16 %v661_v4, %v658_v2 }
 0x110   : > { %1500 = vst [vmem:[%s1816_s28 + $0xc8] sm:$0xff] %v1444_v5   ;;  %1483 = vst [vmem:[%s1816_s28 + $0x40] sm:$0xff] %v1359_v6   ;;  %v1564_v8 = vpop.f32.mrb[20].mxu0 }
 0x111   : > { %1499 = vst [vmem:[%s1816_s28 + $0xc0] sm:$0xff] %v1439_v7   ;;  %v1596_v9 = vpop.f32.mrb[20].mxu1  ;;  %v545_v10 = vpop.f32.mrb[21].mxu0  ;;  %v554_v13 = vadd.f32 %v1564_v8, %v1806_v35 }
 0x112   : > { %v673_v11 = vpop.f32.mrb[21].mxu1  ;;  %v1565_v12 = vpop.f32.mrb[22].mxu0  ;;  %v682_v17 = vadd.f32 %v1596_v9, %v1806_v35  ;;  %v546_v18 = vadd.f32 %v1806_v35, %v545_v10 }
 0x113   : > { %v557_v14 = vadd.f32 %v1565_v12, %v1806_v35  ;;  %v1597_v15 = vpop.f32.mrb[22].mxu1  ;;  %v548_v16 = vpop.f32.mrb[23].mxu0  ;;  %v674_v22 = vadd.f32 %v1806_v35, %v673_v11 }
 0x114   : > { %v685_v19 = vadd.f32 %v1597_v15, %v1806_v35  ;;  %v549_v20 = vadd.f32 %v1806_v35, %v548_v16  ;;  %v676_v21 = vpop.f32.mrb[23].mxu1 }
 0x115   : > { %v1374_v23 = vpack.c.bf16 %v557_v14, %v554_v13  ;;  %v677_v24 = vadd.f32 %v1806_v35, %v676_v21 }
 0x116   : > { %v1454_v25 = vpack.c.bf16 %v685_v19, %v682_v17  ;;  %v1369_v26 = vpack.c.bf16 %v549_v20, %v546_v18 }
 0x117   : > { %1486 = vst [vmem:[%s1816_s28 + $0x58] sm:$0xff] %v1374_v23   ;;  %v1449_v27 = vpack.c.bf16 %v677_v24, %v674_v22 }
 0x118   : > { %1502 = vst [vmem:[%s1816_s28 + $0xd8] sm:$0xff] %v1454_v25   ;;  %1485 = vst [vmem:[%s1816_s28 + $0x50] sm:$0xff] %v1369_v26   ;;  %v1568_v28 = vpop.f32.mrb[24].mxu0 }
 0x119   : > { %1501 = vst [vmem:[%s1816_s28 + $0xd0] sm:$0xff] %v1449_v27   ;;  %v1600_v29 = vpop.f32.mrb[24].mxu1  ;;  %v561_v30 = vpop.f32.mrb[25].mxu0  ;;  %v570_v33 = vadd.f32 %v1568_v28, %v1806_v35 }
 0x11a   : > { %v689_v31 = vpop.f32.mrb[25].mxu1  ;;  %v1569_v32 = vpop.f32.mrb[26].mxu0  ;;  %v698_v38 = vadd.f32 %v1600_v29, %v1806_v35  ;;  %v562_v39 = vadd.f32 %v1806_v35, %v561_v30 }
 0x11b   : > { %v573_v34 = vadd.f32 %v1569_v32, %v1806_v35  ;;  %v1601_v36 = vpop.f32.mrb[26].mxu1  ;;  %v564_v37 = vpop.f32.mrb[27].mxu0  ;;  %v690_v43 = vadd.f32 %v1806_v35, %v689_v31 }
 0x11c   : > { %v701_v40 = vadd.f32 %v1601_v36, %v1806_v35  ;;  %v565_v41 = vadd.f32 %v1806_v35, %v564_v37  ;;  %v692_v42 = vpop.f32.mrb[27].mxu1 }
 0x11d   : > { %v1384_v44 = vpack.c.bf16 %v573_v34, %v570_v33  ;;  %v693_v45 = vadd.f32 %v1806_v35, %v692_v42 }
 0x11e   : > { %v1464_v46 = vpack.c.bf16 %v701_v40, %v698_v38  ;;  %v1379_v47 = vpack.c.bf16 %v565_v41, %v562_v39 }
 0x11f   : > { %1488 = vst [vmem:[%s1816_s28 + $0x68] sm:$0xff] %v1384_v44   ;;  %v1459_v48 = vpack.c.bf16 %v693_v45, %v690_v43 }
 0x120   : > { %1504 = vst [vmem:[%s1816_s28 + $0xe8] sm:$0xff] %v1464_v46   ;;  %1487 = vst [vmem:[%s1816_s28 + $0x60] sm:$0xff] %v1379_v47   ;;  %v1572_v49 = vpop.f32.mrb[28].mxu0 }
 0x121   : > { %1503 = vst [vmem:[%s1816_s28 + $0xe0] sm:$0xff] %v1459_v48   ;;  %v1604_v50 = vpop.f32.mrb[28].mxu1  ;;  %v577_v51 = vpop.f32.mrb[29].mxu0  ;;  %v586_v54 = vadd.f32 %v1572_v49, %v1806_v35 }
 0x122   : > { %v705_v52 = vpop.f32.mrb[29].mxu1  ;;  %v1573_v53 = vpop.f32.mrb[30].mxu0  ;;  %v714_v58 = vadd.f32 %v1604_v50, %v1806_v35  ;;  %v578_v59 = vadd.f32 %v1806_v35, %v577_v51 }
 0x123   : > { %v589_v55 = vadd.f32 %v1573_v53, %v1806_v35  ;;  %v1605_v56 = vpop.f32.mrb[30].mxu1  ;;  %v580_v57 = vpop.f32.mrb[31].mxu0  ;;  %v706_v63 = vadd.f32 %v1806_v35, %v705_v52 }
 0x124   : > { %v717_v60 = vadd.f32 %v1605_v56, %v1806_v35  ;;  %v581_v61 = vadd.f32 %v1806_v35, %v580_v57  ;;  %v708_v62 = vpop.f32.mrb[31].mxu1 }
 0x125   : > { %v1394_v0 = vpack.c.bf16 %v589_v55, %v586_v54  ;;  %v709_v1 = vadd.f32 %v1806_v35, %v708_v62 }
 0x126   : > { %v1474_v2 = vpack.c.bf16 %v717_v60, %v714_v58  ;;  %v1389_v3 = vpack.c.bf16 %v581_v61, %v578_v59 }
 0x127   : > { %1490 = vst [vmem:[%s1816_s28 + $0x78] sm:$0xff] %v1394_v0   ;;  %v1469_v4 = vpack.c.bf16 %v709_v1, %v706_v63 }
 0x128   : > { %1506 = vst [vmem:[%s1816_s28 + $0xf8] sm:$0xff] %v1474_v2   ;;  %1489 = vst [vmem:[%s1816_s28 + $0x70] sm:$0xff] %v1389_v3  }
 0x129   : > { %1505 = vst [vmem:[%s1816_s28 + $0xf0] sm:$0xff] %v1469_v4  }
 0x12a PF: > { %s13_s14 = sadd.s32 1, %s1656_s14   ;;  %s1923_s12 = smov %s1652_s13 }
 0x12b   : > { %p10_p5 = scmp.ge.s32.totalorder %s13_s14, 6   ;;  %s1924_s13 = smov %s1926_s15 }
 0x12d   :  { %12 = sbr.rel (!%p10_p5) target bundleno = 2 (0x2), region = 68 }

// kernel: forward.5
= control target key start
LH: loop header
LB: loop body
LE: loop exit
PB: predicated region body
PF: predicated region fallthrough
CT: control target
= control target key end

     0   :  { %s3990_s12 = smov 0   ;;  %s3992_s13 = smov 0   ;;  %s5084_s0 = inlined_call_operand.vmem [shape: bf16[8,16,16,128], index: 0, kind: input, shape index: {}]   ;;  %s5085_s1 = inlined_call_operand.vmem [shape: bf16[3,384,128], index: 1, kind: input, shape index: {}]   ;;  %s5086_s2 = inlined_call_operand.vmem [shape: f32[1,128], index: 2, kind: input, shape index: {}]   ;;  %s5087_s3 = inlined_call_operand.vmem [shape: bf16[8,16,16,128], index: 3, kind: output, shape index: {}]  }
   0x1   :  { %s3994_s14 = smov 0  }
   0x2 LB: > { %s25_s15 = sadd.s32 1, %s3963_s13  ;;  %p2751_p0 = scmp.ge.s32.totalorder %s3967_s14, 1  ;;  %s3967_s14 = sphi %s3994_s14, %s13_s14   ;;  %s3963_s13 = sphi %s3992_s13, %s5116_s13   ;;  %s3959_s12 = sphi %s3990_s12, %s5115_s12  }
   0x3   : > { %p27_p1 = scmp.ge.s32.totalorder %s25_s15, 8  ;;  %p168_p2 = scmp.lt.s32.totalorder %s3967_s14, 9 }
   0x5   : > { %s5118_s15 = smov (%p27_p1, %s25_s15), 0  ;;  %p169_p3 = pnand %p2751_p0, %p168_p2 }
   0x7   : > { %172 = sbr.rel (%p169_p3) target bundleno = 561 (0x231), region = 32 }
   0xe   : > { %v3857_v0 = vld [vmem:[%s5085_s1 + $0x100] sm:$0xff]   ;;  %v3860_v3 = vld [vmem:[%s5085_s1 + $0x108] sm:$0xff]   ;;  %v3863_v6 = vld [vmem:[%s5085_s1 + $0x110] sm:$0xff]   ;;  %p202_p4 = scmp.lt.s32.totalorder %s3959_s12, 7  ;;  %vm479_vm0 = vcmask 1040384   ;;  %vm765_vm2 = vcmask 1046528  }
   0xf   : > { %v4016_v1 = vld [vmem:[%s5085_s1 + $0x140] sm:$0xff]   ;;  %3104 = vmatprep.subr.bf16.mxu0 %v3857_v0  ;;  %v4029_v4 = vld [vmem:[%s5085_s1 + $0x148] sm:$0xff]   ;;  %v4041_v7 = vld [vmem:[%s5085_s1 + $0x150] sm:$0xff]   ;;  %vm480_vm1 = vsmask.f32 256 }
  0x10   : > { %v3859_v2 = vld [vmem:[%s5085_s1 + $0xc0] sm:$0xff]   ;;  %3656 = vmatprep.subr.bf16.mxu1 %v4016_v1  ;;  %v3862_v5 = vld [vmem:[%s5085_s1 + $0xc8] sm:$0xff]   ;;  %v3865_v8 = vld [vmem:[%s5085_s1 + $0xd0] sm:$0xff]   ;;  %s5120_s12 = smov (!%p202_p4, %s3959_s12), 7  ;;  %vm514_vm4 = vsmask.f32 7424 }
  0x11   : > { %3105 = vmatpush3.bf16.msra.mxu0 %v3859_v2  ;;  %3664 = vmatpush3.bf16.msra.mxu1 %v4016_v1  ;;  %v3866_v9 = vld [vmem:[%s5085_s1 + $0x118] sm:$0xff]   ;;  %v3869_v12 = vld [vmem:[%s5085_s1 + $0x120] sm:$0xff]   ;;  %v3872_v15 = vld [vmem:[%s5085_s1 + $0x128] sm:$0xff]   ;;  %s2975_s27 = sshll.u32 %s5120_s12, 7 }
  0x12   : > { %3106 = vmatprep.subr.bf16.mxu0 %v3860_v3  ;;  %3657 = vmatprep.subr.bf16.mxu1 %v4029_v4  ;;  %v4054_v10 = vld [vmem:[%s5085_s1 + $0x158] sm:$0xff]   ;;  %v4068_v13 = vld [vmem:[%s5085_s1 + $0x160] sm:$0xff]   ;;  %v4084_v16 = vld [vmem:[%s5085_s1 + $0x168] sm:$0xff]   ;;  %s4105_s9 = scalar_lea.vmem %s5084_s0, %s2975_s27 }
  0x13   : > { %v3868_v11 = vld [vmem:[%s5085_s1 + $0xd8] sm:$0xff]   ;;  %v3871_v14 = vld [vmem:[%s5085_s1 + $0xe0] sm:$0xff]   ;;  %v3874_v17 = vld [vmem:[%s5085_s1 + $0xe8] sm:$0xff]  }
  0x14   : > { %v3875_v18 = vld [vmem:[%s5085_s1 + $0x130] sm:$0xff]   ;;  %v3881_v21 = vld [vmem:[%s4105_s9] sm:$0xff]   ;;  %v3878_v22 = vld [vmem:[%s5085_s1 + $0x138] sm:$0xff]  }
  0x15   : > { %3107 = vmatpush3.bf16.msra.mxu0 %v3862_v5  ;;  %3665 = vmatpush3.bf16.msra.mxu1 %v4029_v4  ;;  %v4098_v19 = vld [vmem:[%s5085_s1 + $0x170] sm:$0xff]   ;;  %v4119_v23 = vld [vmem:[%s5085_s1 + $0x178] sm:$0xff]   ;;  %v336_v24 = vshrl.u32 %v3881_v21, 16  ;;  %v339_v25 = vshll.u32 %v3881_v21, 16  ;;  %v3882_v26 = vld [vmem:[%s4105_s9 + $0x40] sm:$0xff]  }
  0x16   : > { %3108 = vmatprep.subr.bf16.mxu0 %v3863_v6  ;;  %3658 = vmatprep.subr.bf16.mxu1 %v4041_v7  ;;  %v3877_v20 = vld [vmem:[%s5085_s1 + $0xf0] sm:$0xff]   ;;  %v3883_v27 = vld [vmem:[%s4105_s9 + $0x48] sm:$0xff]   ;;  %v3880_v28 = vld [vmem:[%s5085_s1 + $0xf8] sm:$0xff]   ;;  %v392_v31 = vshrl.u32 %v3882_v26, 16  ;;  %v395_v32 = vshll.u32 %v3882_v26, 16 }
  0x17   : > { %v338_v29 = vrot.slane %v336_v24, 7  ;;  %vm4128_vm3 = vmand %vm479_vm0, %vm480_vm1  ;;  %v399_v33 = vshrl.u32 %v3883_v27, 16  ;;  %v3884_v34 = vld [vmem:[%s5085_s1 + $0x40] sm:$0xff]   ;;  %v402_v38 = vshll.u32 %v3883_v27, 16  ;;  %v3888_v48 = vld [vmem:[%s4105_s9 + $0x8] sm:$0xff]   ;;  %v5091_v27 = vmov 0  }
  0x18   : > { %v394_v37 = vrot.slane %v392_v31, 7  ;;  %v3885_v55 = vld [vmem:[%s5085_s1] sm:$0xff]   ;;  %v343_v56 = vshrl.u32 %v3888_v48, 16  ;;  %v3886_v58 = vld [vmem:[%s5085_s1 + $0x48] sm:$0xff]   ;;  %v346_v59 = vshll.u32 %v3888_v48, 16  ;;  %v3889_v60 = vld [vmem:[%s4105_s9 + $0x50] sm:$0xff]  }
  0x19   : > { %3109 = vmatpush3.bf16.msra.mxu0 %v3865_v8  ;;  %3666 = vmatpush3.bf16.msra.mxu1 %v4041_v7  ;;  %v341_v35 = vor.u32 %v339_v25, %v338_v29  ;;  %v4138_v36 = vsel %vm4128_vm3, %v338_v29, 0  ;;  %v401_v40 = vrot.slane %v399_v33, 7  ;;  %v3890_v61 = vld [vmem:[%s4105_s9 + $0x58] sm:$0xff]   ;;  %v406_v3 = vshrl.u32 %v3889_v60, 16  ;;  %v3891_v26 = vld [vmem:[%s5085_s1 + $0x50] sm:$0xff]  }
  0x1a   : > { %3110 = vmatprep.subr.bf16.mxu0 %v3866_v9  ;;  %3659 = vmatprep.subr.bf16.mxu1 %v4054_v10  ;;  %v531_v39 = vshll.u32 %v4138_v36, 16  ;;  %v397_v42 = vor.u32 %v395_v32, %v394_v37  ;;  %v4148_v43 = vsel %vm4128_vm3, %v394_v37, 0  ;;  %v345_v2 = vrot.slane %v343_v56, 7  ;;  %v3895_v33 = vld [vmem:[%s4105_s9 + $0x10] sm:$0xff]  }
  0x1b   : > { %v4144_v41 = vsel %vm4128_vm3, 0, %v341_v35  ;;  %v793_v47 = vrot.slane %v4148_v43, 1  ;;  %v404_v50 = vor.u32 %v402_v38, %v401_v40  ;;  %v4161_v51 = vsel %vm4128_vm3, %v401_v40, 0 }
  0x1c   : > { %v524_v44 = vshrl.u32 %v4144_v41, 16  ;;  %v526_v45 = vshll.u32 %v4144_v41, 16  ;;  %v533_v46 = vrot.slane %v531_v39, 1  ;;  %v4157_v49 = vsel %vm4128_vm3, 0, %v397_v42  ;;  %v3892_v39 = vld [vmem:[%s5085_s1 + $0x10] sm:$0xff]  }
  0x1d   : > { %3111 = vmatpush3.bf16.msra.mxu0 %v3868_v11  ;;  %3667 = vmatpush3.bf16.msra.mxu1 %v4054_v10  ;;  %v792_v53 = vrot.slane %v4157_v49, 1  ;;  %v796_v54 = vrot.slane %v4161_v51, 1  ;;  %v4170_v57 = vsel %vm4128_vm3, 0, %v404_v50  ;;  %v409_v5 = vshll.u32 %v3889_v60, 16  ;;  %v3896_v50 = vld [vmem:[%s4105_s9 + $0x60] sm:$0xff]  }
  0x1e   : > { %3112 = vmatprep.subr.bf16.mxu0 %v3869_v12  ;;  %3660 = vmatprep.subr.bf16.mxu1 %v4068_v13  ;;  %v528_v52 = vrot.slane %v526_v45, 1  ;;  %v795_v0 = vrot.slane %v4170_v57, 1  ;;  %v413_v6 = vshrl.u32 %v3890_v61, 16  ;;  %v416_v8 = vshll.u32 %v3890_v61, 16 }
  0x1f   : > { %v4178_v63 = vsel %vm765_vm2, %v792_v53, %v793_v47  ;;  %v348_v12 = vor.u32 %v346_v59, %v345_v2  ;;  %v350_v45 = vshrl.u32 %v3895_v33, 16  ;;  %v423_v59 = vshll.u32 %v3896_v50, 16 }
  0x20   : > { %v529_v62 = vor.u32 %v528_v52, %v524_v44  ;;  %3544 = vmatprep.mubr.bf16.mxu1 %v4178_v63  ;;  %v4186_v11 = vsel %vm765_vm2, %v795_v0, %v796_v54  ;;  %v3893_v44 = vld [vmem:[%s5085_s1 + $0x58] sm:$0xff]   ;;  %v3897_v54 = vld [vmem:[%s4105_s9 + $0x68] sm:$0xff]  }
  0x21   : > { %3113 = vmatpush3.bf16.msra.mxu0 %v3871_v14  ;;  %3668 = vmatpush3.bf16.msra.mxu1 %v4068_v13  ;;  %v4190_v14 = vsel %vm4128_vm3, %v345_v2, 0  ;;  %v4201_v21 = vsel %vm4128_vm3, 0, %v348_v12  ;;  %v352_v53 = vrot.slane %v350_v45, 7  ;;  %v427_v61 = vshrl.u32 %v3897_v54, 16  ;;  %v3894_v0 = vld [vmem:[%s5085_s1 + $0x18] sm:$0xff]  }
  0x22   : > { %3114 = vmatprep.subr.bf16.mxu0 %v3872_v15  ;;  %3661 = vmatprep.subr.bf16.mxu1 %v4084_v16  ;;  %v4183_v9 = vsel %vm514_vm4, %v529_v62, %v533_v46  ;;  %v543_v15 = vshll.u32 %v4190_v14, 16  ;;  %v538_v24 = vshll.u32 %v4201_v21, 16  ;;  %v353_v46 = vshll.u32 %v3895_v33, 16  ;;  %v3900_v33 = vld [vmem:[%s5085_s1 + $0x68] sm:$0xff]   ;;  %v3904_v45 = vld [vmem:[%s4105_s9 + $0x78] sm:$0xff]  }
  0x23   : > { %1107 = vmatprep.mubr.bf16.mxu0 %v4183_v9  ;;  %v4258_v60 = vsel %vm4128_vm3, %v352_v53, 0  ;;  %v430_v62 = vshll.u32 %v3897_v54, 16 }
  0x24   : > { %v545_v29 = vrot.slane %v543_v15, 1  ;;  %v555_v2 = vshll.u32 %v4258_v60, 16 }
  0x25   : > { %3115 = vmatpush3.bf16.msra.mxu0 %v3874_v17  ;;  %3669 = vmatpush3.bf16.msra.mxu1 %v4084_v16  ;;  %v408_v17 = vrot.slane %v406_v3, 7 }
  0x26   : > { %3116 = vmatprep.subr.bf16.mxu0 %v3875_v18  ;;  %3662 = vmatprep.subr.bf16.mxu1 %v4098_v19  ;;  %v415_v18 = vrot.slane %v413_v6, 7 }
  0x27   : > { %v411_v25 = vor.u32 %v409_v5, %v408_v17  ;;  %v4214_v31 = vsel %vm4128_vm3, %v408_v17, 0  ;;  %v3898_v5 = vld [vmem:[%s5085_s1 + $0x60] sm:$0xff]   ;;  %v557_v17 = vrot.slane %v555_v2, 1 }
  0x28   : > { %v4218_v32 = vsel %vm4128_vm3, %v415_v18, 0  ;;  %v799_v37 = vrot.slane %v4214_v31, 1 }
  0x29   : > { %3117 = vmatpush3.bf16.msra.mxu0 %v3877_v20  ;;  %3670 = vmatpush3.bf16.msra.mxu1 %v4098_v19  ;;  %v3887_v20 = vld [vmem:[%s5085_s1 + $0x8] sm:$0xff]   ;;  %v4224_v35 = vsel %vm4128_vm3, 0, %v411_v25  ;;  %v802_v38 = vrot.slane %v4218_v32, 1 }
  0x2a   : > { %3118 = vmatprep.subr.bf16.mxu0 %v3878_v22  ;;  %3663 = vmatprep.subr.bf16.mxu1 %v4119_v23  ;;  %v536_v22 = vshrl.u32 %v4201_v21, 16  ;;  %v798_v40 = vrot.slane %v4224_v35, 1 }
  0x2c   : > { %v4243_v52 = vsel %vm765_vm2, %v798_v40, %v799_v37 }
  0x2d   : > { %3119 = vmatpush3.bf16.msra.mxu0 %v3880_v28  ;;  %3671 = vmatpush3.bf16.msra.mxu1 %v4119_v23  ;;  %v4210_v28 = vrot.slane %v5091_v27, 1 }
  0x2e   : > { %3512 = vmatprep.subr.bf16.mxu0 %v4016_v1  ;;  %3240 = vmatprep.subr.bf16.mxu1 %v3884_v34  ;;  %v540_v34 = vrot.slane %v538_v24, 1 }
  0x30   : > { %3545 = vmatmul.mubr.bf16.vlgmr.msra.gmra.mrb[0].mxu1 %v4186_v11  ;;  %1108 = vmatmul.mubr.bf16.vlgmr.msra.gmra.mrb[0].mxu0 %v4144_v41  ;;  %v541_v47 = vor.u32 %v540_v34, %v536_v22 }
  0x31   : > { %3241 = vmatpush3.bf16.msra.mxu1 %v3885_v55  ;;  %3513 = vmatpush3.bf16.msra.mxu0 %v4016_v1  ;;  %v418_v1 = vor.u32 %v416_v8, %v415_v18  ;;  %v429_v8 = vrot.slane %v427_v61, 7 }
  0x32   : > { %3242 = vmatprep.subr.bf16.mxu1 %v3886_v58  ;;  %3514 = vmatprep.subr.bf16.mxu0 %v4029_v4  ;;  %v4248_v55 = vsel %vm514_vm4, %v541_v47, %v545_v29  ;;  %v420_v58 = vshrl.u32 %v3896_v50, 16  ;;  %v3901_v47 = vld [vmem:[%s5085_s1 + $0x28] sm:$0xff]  }
  0x33   : > { %v4234_v42 = vsel %vm4128_vm3, 0, %v418_v1  ;;  %3548 = vmatprep.mubr.bf16.mxu1 %v4243_v52  ;;  %1115 = vmatprep.mubr.bf16.mxu0 %v4248_v55  ;;  %v432_v24 = vor.u32 %v430_v62, %v429_v8  ;;  %v444_v62 = vshll.u32 %v3904_v45, 16 }
  0x34   : > { %v801_v48 = vrot.slane %v4234_v42, 1  ;;  %v422_v3 = vrot.slane %v420_v58, 7 }
  0x35   : > { %3243 = vmatpush3.bf16.msra.mxu1 %v3887_v20  ;;  %3515 = vmatpush3.bf16.msra.mxu0 %v4029_v4  ;;  %v355_v4 = vor.u32 %v353_v46, %v352_v53  ;;  %v3899_v20 = vld [vmem:[%s5085_s1 + $0x20] sm:$0xff]   ;;  %v4299_v37 = vsel %vm4128_vm3, 0, %v432_v24 }
  0x36   : > { %3244 = vmatprep.subr.bf16.mxu1 %v3891_v26  ;;  %3516 = vmatprep.subr.bf16.mxu0 %v4041_v7  ;;  %v4252_v56 = vsel %vm765_vm2, %v801_v48, %v802_v38  ;;  %v425_v18 = vor.u32 %v423_v59, %v422_v3  ;;  %v4281_v22 = vsel %vm4128_vm3, %v422_v3, 0  ;;  %v3902_v38 = vld [vmem:[%s4105_s9 + $0x18] sm:$0xff]   ;;  %v441_v59 = vshrl.u32 %v3904_v45, 16  ;;  %v3906_v3 = vld [vmem:[%s5085_s1 + $0x30] sm:$0xff]  }
  0x37   : > { %5100 = vst [vmem:[#allocation2_spill] sm:$0xff] %v4252_v56  ;;  %v4270_v6 = vsel %vm4128_vm3, 0, %v355_v4  ;;  %v805_v29 = vrot.slane %v4281_v22, 1  ;;  %v357_v48 = vshrl.u32 %v3902_v38, 16  ;;  %v360_v50 = vshll.u32 %v3902_v38, 16 }
  0x38   : > { %3549 = vmatmul.mubr.bf16.gmra.mrb[4].mxu1 %v4252_v56  ;;  %1116 = vmatmul.mubr.bf16.gmra.mrb[4].mxu0 %v4201_v21  ;;  %v548_v12 = vshrl.u32 %v4270_v6, 16  ;;  %v550_v15 = vshll.u32 %v4270_v6, 16  ;;  %v4289_v26 = vsel %vm4128_vm3, 0, %v425_v18  ;;  %v443_v2 = vrot.slane %v441_v59, 7 }
  0x39   : > { %3245 = vmatpush3.bf16.msra.mxu1 %v3892_v39  ;;  %3517 = vmatpush3.bf16.msra.mxu0 %v4041_v7  ;;  %v4285_v7 = vsel %vm4128_vm3, %v429_v8, 0  ;;  %v804_v34 = vrot.slane %v4289_v26, 1  ;;  %v3903_v39 = vld [vmem:[%s4105_s9 + $0x70] sm:$0xff]   ;;  %v359_v4 = vrot.slane %v357_v48, 7 }
  0x3a   : > { %3246 = vmatprep.subr.bf16.mxu1 %v3893_v44  ;;  %3518 = vmatprep.subr.bf16.mxu0 %v4054_v10  ;;  %v552_v25 = vrot.slane %v550_v15, 1  ;;  %v808_v1 = vrot.slane %v4285_v7, 1  ;;  %v807_v44 = vrot.slane %v4299_v37, 1  ;;  %v434_v53 = vshrl.u32 %v3903_v39, 16 }
  0x3b   : > { %v4308_v46 = vsel %vm765_vm2, %v804_v34, %v805_v29  ;;  %v437_v58 = vshll.u32 %v3903_v39, 16  ;;  %v4331_v8 = vsel %vm4128_vm3, %v359_v4, 0  ;;  %v4342_v24 = vsel %vm4128_vm3, %v443_v2, 0 }
  0x3c   : > { %v553_v40 = vor.u32 %v552_v25, %v548_v12  ;;  %5101 = vst [vmem:[#allocation3_spill] sm:$0xff] %v4308_v46  ;;  %3552 = vmatprep.mubr.bf16.mxu1 %v4308_v46  ;;  %v436_v61 = vrot.slane %v434_v53, 7  ;;  %v3907_v25 = vld [vmem:[%s5085_s1 + $0x78] sm:$0xff]  }
  0x3d   : > { %3247 = vmatpush3.bf16.msra.mxu1 %v3894_v0  ;;  %3519 = vmatpush3.bf16.msra.mxu0 %v4054_v10  ;;  %v4318_v10 = vsel %vm765_vm2, %v807_v44, %v808_v1  ;;  %v3905_v0 = vld [vmem:[%s5085_s1 + $0x70] sm:$0xff]   ;;  %v814_v1 = vrot.slane %v4342_v24, 1  ;;  %v3908_v44 = vld [vmem:[%s5085_s1 + $0x38] sm:$0xff]  }
  0x3e   : > { %3248 = vmatprep.subr.bf16.mxu1 %v3898_v5  ;;  %3520 = vmatprep.subr.bf16.mxu0 %v4068_v13  ;;  %v4314_v54 = vsel %vm514_vm4, %v553_v40, %v557_v17  ;;  %5102 = vst [vmem:[#allocation4_spill] sm:$0xff] %v4318_v10  ;;  %v362_v5 = vor.u32 %v360_v50, %v359_v4  ;;  %v4335_v15 = vsel %vm4128_vm3, %v436_v61, 0  ;;  %v567_v17 = vshll.u32 %v4331_v8, 16  ;;  %v4371_v50 = vld [vmem:[%s5085_s1 + $0x80] sm:$0xff]  }
  0x3f   : > { %1123 = vmatprep.mubr.bf16.mxu0 %v4314_v54  ;;  %v439_v12 = vor.u32 %v437_v58, %v436_v61  ;;  %v811_v18 = vrot.slane %v4335_v15, 1  ;;  %v3911_v61 = vld [vmem:[%s4105_s9 + $0x28] sm:$0xff]   ;;  %v699_v56 = vshll.u32 %v4335_v15, 16  ;;  %v768_v15 = vrot.slane %v4144_v41, 1 }
  0x40   : > { %3553 = vmatmul.mubr.bf16.gmra.mrb[8].mxu1 %v4318_v10  ;;  %1124 = vmatmul.mubr.bf16.gmra.mrb[8].mxu0 %v4270_v6  ;;  %v4350_v29 = vsel %vm4128_vm3, 0, %v362_v5  ;;  %v569_v39 = vrot.slane %v567_v17, 1  ;;  %v374_v17 = vshll.u32 %v3911_v61, 16 }
  0x41   : > { %3249 = vmatpush3.bf16.msra.mxu1 %v3899_v20  ;;  %3521 = vmatpush3.bf16.msra.mxu0 %v4068_v13  ;;  %v446_v20 = vor.u32 %v444_v62, %v443_v2  ;;  %v4354_v13 = vsel %vm4128_vm3, 0, %v439_v12  ;;  %v560_v34 = vshrl.u32 %v4350_v29, 16  ;;  %v562_v38 = vshll.u32 %v4350_v29, 16 }
  0x42   : > { %3250 = vmatprep.subr.bf16.mxu1 %v3900_v33  ;;  %3522 = vmatprep.subr.bf16.mxu0 %v4084_v16  ;;  %v3909_v33 = vld [vmem:[%s4105_s9 + $0x20] sm:$0xff]   ;;  %v810_v40 = vrot.slane %v4354_v13, 1  ;;  %v620_v2 = vshrl.u32 %v4157_v49, 16  ;;  %v371_v12 = vshrl.u32 %v3911_v61, 16 }
  0x43   : > { %v4366_v45 = vsel %vm4128_vm3, 0, %v446_v20  ;;  %v367_v48 = vshll.u32 %v3909_v33, 16  ;;  %v564_v53 = vrot.slane %v562_v38, 1  ;;  %v622_v38 = vshll.u32 %v4157_v49, 16 }
  0x44   : > { %v4375_v58 = vsel %vm765_vm2, %v810_v40, %v811_v18  ;;  %v813_v59 = vrot.slane %v4366_v45, 1 }
  0x45   : > { %3251 = vmatpush3.bf16.msra.mxu1 %v3901_v47  ;;  %v364_v47 = vshrl.u32 %v3909_v33, 16  ;;  %3523 = vmatpush3.bf16.msra.mxu0 %v4084_v16  ;;  %5103 = vst [vmem:[#allocation5_spill] sm:$0xff] %v4375_v58  ;;  %v565_v62 = vor.u32 %v564_v53, %v560_v34  ;;  %v3912_v16 = vld [vmem:[%s4105_s9 + $0x30] sm:$0xff]   ;;  %v3914_v33 = vld [vmem:[%s4105_s9 + $0x38] sm:$0xff]   ;;  %s4990_s9 = scalar_lea.vmem %s5087_s3, %s2975_s27 }
  0x46   : > { %3252 = vmatprep.subr.bf16.mxu1 %v3905_v0  ;;  %3524 = vmatprep.subr.bf16.mxu0 %v4098_v19  ;;  %v4382_v0 = vsel %vm765_vm2, %v813_v59, %v814_v1  ;;  %v381_v1 = vshll.u32 %v3912_v16, 16  ;;  %v388_v61 = vshll.u32 %v3914_v33, 16 }
  0x47   : > { %3556 = vmatprep.mubr.bf16.mxu1 %v4375_v58  ;;  %v366_v4 = vrot.slane %v364_v47, 7  ;;  %5104 = vst [vmem:[#allocation6_spill] sm:$0xff] %v4382_v0  ;;  %v4393_v18 = vsel %vm514_vm4, %v565_v62, %v569_v39  ;;  %v627_v39 = vshll.u32 %v4148_v43, 16 }
  0x48   : > { %3557 = vmatmul.mubr.bf16.gmra.mrb[12].mxu1 %v4382_v0  ;;  %1131 = vmatprep.mubr.bf16.mxu0 %v4393_v18 }
  0x49   : > { %3253 = vmatpush3.bf16.msra.mxu1 %v3906_v3  ;;  %v369_v5 = vor.u32 %v367_v48, %v366_v4  ;;  %v4389_v3 = vsel %vm4128_vm3, %v366_v4, 0  ;;  %3525 = vmatpush3.bf16.msra.mxu0 %v4098_v19  ;;  %v373_v19 = vrot.slane %v371_v12, 7  ;;  %v385_v4 = vshrl.u32 %v3914_v33, 16  ;;  %v3913_v12 = vld [vmem:[%s5085_s1 + $0x88] sm:$0xff]  }
  0x4a   : > { %3254 = vmatprep.subr.bf16.mxu1 %v3907_v25  ;;  %v579_v20 = vshll.u32 %v4389_v3, 16  ;;  %1573 = vmatprep.mubr.bf16.mxu1 %v4210_v28  ;;  %v378_v25 = vshrl.u32 %v3912_v16, 16 }
  0x4b   : > { %v4401_v34 = vsel %vm4128_vm3, 0, %v369_v5  ;;  %1132 = vmatmul.mubr.bf16.gmra.mrb[12].mxu0 %v4350_v29  ;;  %3526 = vmatprep.subr.bf16.mxu0 %v4119_v23  ;;  %v376_v53 = vor.u32 %v374_v17, %v373_v19  ;;  %v4412_v59 = vsel %vm4128_vm3, %v373_v19, 0 }
  0x4c   : > { %v572_v40 = vshrl.u32 %v4401_v34, 16  ;;  %v581_v47 = vrot.slane %v579_v20, 1  ;;  %v380_v48 = vrot.slane %v378_v25, 7  ;;  %v591_v62 = vshll.u32 %v4412_v59, 16 }
  0x4d   : > { %3255 = vmatpush3.bf16.msra.mxu1 %v3908_v44  ;;  %v574_v44 = vshll.u32 %v4401_v34, 16  ;;  %3527 = vmatpush3.bf16.msra.mxu0 %v4119_v23  ;;  %v4425_v17 = vsel %vm4128_vm3, 0, %v376_v53  ;;  %v387_v25 = vrot.slane %v385_v4, 7  ;;  %v624_v23 = vrot.slane %v622_v38, 1 }
  0x4e   : > { %3560 = vmatprep.subr.bf16.mxu1 %v4371_v50  ;;  %v383_v16 = vor.u32 %v381_v1, %v380_v48  ;;  %v4418_v5 = vsel %vm4128_vm3, %v380_v48, 0  ;;  %v584_v19 = vshrl.u32 %v4425_v17, 16  ;;  %v586_v1 = vshll.u32 %v4425_v17, 16 }
  0x4f   : > { %v576_v43 = vrot.slane %v574_v44, 1  ;;  %v603_v20 = vshll.u32 %v4418_v5, 16  ;;  %v593_v44 = vrot.slane %v591_v62, 1  ;;  %v390_v58 = vor.u32 %v388_v61, %v387_v25  ;;  %v3919_v61 = vld [vmem:[%s5085_s1 + $0x1c0] sm:$0xff]  }
  0x50   : > { %1574 = vmatmul.mubr.bf16.vlgmr.msra.gmra.mrb[16].mxu1 %v5091_v27  ;;  %v4433_v48 = vsel %vm4128_vm3, 0, %v383_v16  ;;  %v4437_v53 = vsel %vm4128_vm3, %v387_v25, 0  ;;  %v625_v62 = vor.u32 %v624_v23, %v620_v2  ;;  %v629_v16 = vrot.slane %v627_v39, 1  ;;  %3376 = vmatprep.subr.bf16.mxu0 %v3919_v61  ;;  %v3916_v23 = vld [vmem:[%s5085_s1 + $0x98] sm:$0xff]  }
  0x51   : > { %v577_v33 = vor.u32 %v576_v43, %v572_v40  ;;  %v605_v0 = vrot.slane %v603_v20, 1  ;;  %3561 = vmatpush3.bf16.msra.mxu1 %v4371_v50  ;;  %v588_v40 = vrot.slane %v586_v1, 1  ;;  %1581 = vmatprep.mubr.bf16.mxu1 %v4183_v9  ;;  %v596_v4 = vshrl.u32 %v4433_v48, 16  ;;  %v3915_v9 = vld [vmem:[%s5085_s1 + $0x90] sm:$0xff]  }
  0x52   : > { %v598_v43 = vshll.u32 %v4433_v48, 16  ;;  %3562 = vmatprep.subr.bf16.mxu1 %v3913_v12  ;;  %v615_v50 = vshll.u32 %v4437_v53, 16  ;;  %v632_v2 = vshrl.u32 %v4170_v57, 16  ;;  %v634_v39 = vshll.u32 %v4170_v57, 16 }
  0x53   : > { %v4440_v38 = vsel %vm514_vm4, %v577_v33, %v581_v47  ;;  %v4452_v47 = vsel %vm4128_vm3, 0, %v390_v58  ;;  %v589_v20 = vor.u32 %v588_v40, %v584_v19  ;;  %v4464_v58 = vsel %vm514_vm4, %v625_v62, %v629_v16 }
  0x54   : > { %1139 = vmatprep.mubr.bf16.mxu0 %v4440_v38  ;;  %v600_v25 = vrot.slane %v598_v43, 1  ;;  %v608_v33 = vshrl.u32 %v4452_v47, 16  ;;  %v610_v1 = vshll.u32 %v4452_v47, 16  ;;  %v4461_v30 = vrot.slane %v615_v50, 1 }
  0x55   : > { %1140 = vmatmul.mubr.bf16.gmra.mrb[16].mxu0 %v4401_v34  ;;  %v4472_v19 = vsel %vm514_vm4, %v589_v20, %v593_v44  ;;  %3563 = vmatpush3.bf16.msra.mxu1 %v3913_v12  ;;  %v639_v61 = vshll.u32 %v4161_v51, 16  ;;  %v636_v50 = vrot.slane %v634_v39, 1  ;;  %v644_v62 = vshrl.u32 %v4224_v35, 16 }
  0x56   : > { %v601_v40 = vor.u32 %v600_v25, %v596_v4  ;;  %v612_v43 = vrot.slane %v610_v1, 1  ;;  %1147 = vmatprep.mubr.bf16.mxu0 %v4472_v19  ;;  %3564 = vmatprep.subr.bf16.mxu1 %v3915_v9  ;;  %v646_v16 = vshll.u32 %v4224_v35, 16  ;;  %v651_v27 = vshll.u32 %v4214_v31, 16 }
  0x57   : > { %v641_v44 = vrot.slane %v639_v61, 1  ;;  %v656_v4 = vshrl.u32 %v4234_v42, 16  ;;  %v637_v12 = vor.u32 %v636_v50, %v632_v2  ;;  %v658_v25 = vshll.u32 %v4234_v42, 16 }
  0x58   : > { %v4480_v10 = vsel %vm514_vm4, %v601_v40, %v605_v0  ;;  %1582 = vmatmul.mubr.bf16.gmra.mrb[20].mxu1 %v4144_v41  ;;  %v648_v51 = vrot.slane %v646_v16, 1  ;;  %v653_v20 = vrot.slane %v651_v27, 1  ;;  %v613_v1 = vor.u32 %v612_v43, %v608_v33  ;;  %v3917_v40 = vld [vmem:[%s5085_s1 + $0xa0] sm:$0xff]  }
  0x59   : > { %1589 = vmatprep.mubr.bf16.mxu1 %v4248_v55  ;;  %3565 = vmatpush3.bf16.msra.mxu1 %v3915_v9  ;;  %v663_v39 = vshll.u32 %v4218_v32, 16  ;;  %v668_v31 = vshrl.u32 %v4289_v26, 16  ;;  %v670_v0 = vshll.u32 %v4289_v26, 16  ;;  %v4493_v2 = vsel %vm514_vm4, %v637_v12, %v641_v44 }
  0x5a   : > { %v649_v27 = vor.u32 %v648_v51, %v644_v62  ;;  %3566 = vmatprep.subr.bf16.mxu1 %v3916_v23  ;;  %v660_v61 = vrot.slane %v658_v25, 1  ;;  %v675_v50 = vshll.u32 %v4281_v22, 16  ;;  %v680_v33 = vshrl.u32 %v4299_v37, 16 }
  0x5b   : > { %v665_v9 = vrot.slane %v663_v39, 1  ;;  %v672_v32 = vrot.slane %v670_v0, 1  ;;  %v682_v43 = vshll.u32 %v4299_v37, 16  ;;  %v687_v62 = vshll.u32 %v4285_v7, 16 }
  0x5c   : > { %v4501_v16 = vsel %vm514_vm4, %v649_v27, %v653_v20  ;;  %v661_v44 = vor.u32 %v660_v61, %v656_v4  ;;  %v677_v12 = vrot.slane %v675_v50, 1  ;;  %v692_v25 = vshrl.u32 %v4354_v13, 16  ;;  %v3918_v4 = vld [vmem:[%s5085_s1 + $0xa8] sm:$0xff]  }
  0x5d   : > { %1148 = vmatmul.mubr.bf16.gmra.mrb[20].mxu0 %v4425_v17  ;;  %3567 = vmatpush3.bf16.msra.mxu1 %v3916_v23  ;;  %v673_v51 = vor.u32 %v672_v32, %v668_v31  ;;  %v684_v22 = vrot.slane %v682_v43, 1  ;;  %v694_v39 = vshll.u32 %v4354_v13, 16  ;;  %v689_v46 = vrot.slane %v687_v62, 1 }
  0x5e   : > { %1155 = vmatprep.mubr.bf16.mxu0 %v4480_v10  ;;  %v4507_v0 = vsel %vm514_vm4, %v661_v44, %v665_v9  ;;  %3568 = vmatprep.subr.bf16.mxu1 %v3917_v40  ;;  %v704_v7 = vshrl.u32 %v4366_v45, 16  ;;  %v706_v27 = vshll.u32 %v4366_v45, 16  ;;  %v701_v61 = vrot.slane %v699_v56, 1 }
  0x5f   : > { %v4515_v23 = vsel %vm514_vm4, %v673_v51, %v677_v12  ;;  %v685_v20 = vor.u32 %v684_v22, %v680_v33  ;;  %v696_v31 = vrot.slane %v694_v39, 1  ;;  %v711_v50 = vshll.u32 %v4342_v24, 16  ;;  %v3920_v39 = vld [vmem:[%s5085_s1 + $0x180] sm:$0xff]  }
  0x60   : > { %1590 = vmatmul.mubr.bf16.gmra.mrb[24].mxu1 %v4201_v21  ;;  %v769_v9 = vrot.slane %v4138_v36, 1  ;;  %v4524_v32 = vsel %vm514_vm4, %v613_v1, %v4461_v30  ;;  %v708_v44 = vrot.slane %v706_v27, 1  ;;  %v3921_v36 = vld [vmem:[%s5085_s1 + $0xb0] sm:$0xff]   ;;  %v3930_v1 = vld [vmem:[%s5085_s1 + $0xb8] sm:$0xff]   ;;  %v772_v12 = vrot.slane %v4190_v14, 1  ;;  %v3922_v14 = vld [vmem:[%s5085_s1 + $0x1c8] sm:$0xff]  }
  0x61   : > { %1597 = vmatprep.mubr.bf16.mxu1 %v4314_v54  ;;  %3569 = vmatpush3.bf16.msra.mxu1 %v3917_v40  ;;  %v4528_v33 = vsel %vm514_vm4, %v685_v20, %v689_v46  ;;  %v697_v43 = vor.u32 %v696_v31, %v692_v25  ;;  %v713_v56 = vrot.slane %v711_v50, 1  ;;  %v4554_v40 = vld [vmem:[%s5085_s1 + $0x200] sm:$0xff]   ;;  %v771_v62 = vrot.slane %v4201_v21, 1  ;;  %v3924_v31 = vld [vmem:[%s5085_s1 + $0x1d0] sm:$0xff]  }
  0x62   : > { %3570 = vmatprep.subr.bf16.mxu1 %v3918_v4  ;;  %v4531_v24 = vsel %vm765_vm2, %v768_v15, %v769_v9  ;;  %v709_v30 = vor.u32 %v708_v44, %v704_v7  ;;  %v774_v51 = vrot.slane %v4270_v6, 1  ;;  %v775_v22 = vrot.slane %v4258_v60, 1  ;;  %v3923_v60 = vld [vmem:[%s5085_s1 + $0x188] sm:$0xff]   ;;  %v3925_v15 = vld [vmem:[%s5085_s1 + $0x190] sm:$0xff]  }
  0x63   : > { %v4538_v41 = vsel %vm514_vm4, %v697_v43, %v701_v61  ;;  %v4594_v25 = vsel %vm765_vm2, %v771_v62, %v772_v12  ;;  %v777_v7 = vrot.slane %v4350_v29, 1  ;;  %v778_v20 = vrot.slane %v4331_v8, 1  ;;  %v3926_v8 = vld [vmem:[%s5085_s1 + $0x1d8] sm:$0xff]   ;;  %v3929_v12 = vld [vmem:[%s5085_s1 + $0x1a0] sm:$0xff]  }
  0x64   : > { %v4542_v46 = vsel %vm514_vm4, %v709_v30, %v713_v56  ;;  %v780_v27 = vrot.slane %v4401_v34, 1  ;;  %v781_v61 = vrot.slane %v4389_v3, 1  ;;  %v3927_v3 = vld [vmem:[%s5085_s1 + $0x198] sm:$0xff]   ;;  %v783_v43 = vrot.slane %v4425_v17, 1  ;;  %v3928_v56 = vld [vmem:[%s5085_s1 + $0x1e0] sm:$0xff]  }
  0x65   : > { %1156 = vmatmul.mubr.bf16.gmra.mrb[24].mxu0 %v4433_v48  ;;  %3571 = vmatpush3.bf16.msra.mxu1 %v3918_v4  ;;  %v4604_v4 = vsel %vm765_vm2, %v774_v51, %v775_v22  ;;  %v4620_v50 = vsel %vm765_vm2, %v777_v7, %v778_v20  ;;  %v784_v44 = vrot.slane %v4412_v59, 1  ;;  %v787_v30 = vrot.slane %v4418_v5, 1  ;;  %v3931_v59 = vld [vmem:[%s5085_s1 + $0x1e8] sm:$0xff]   ;;  %v3936_v7 = vld [vmem:[%s5085_s1 + $0x1b8] sm:$0xff]  }
  0x66   : > { %1163 = vmatprep.mubr.bf16.mxu0 %v4524_v32  ;;  %3572 = vmatprep.subr.bf16.mxu1 %v3921_v36  ;;  %v4630_v9 = vsel %vm765_vm2, %v780_v27, %v781_v61  ;;  %v3932_v5 = vld [vmem:[%s5085_s1 + $0x1a8] sm:$0xff]   ;;  %v789_v51 = vrot.slane %v4452_v47, 1  ;;  %v790_v22 = vrot.slane %v4437_v53, 1  ;;  %v3935_v53 = vld [vmem:[%s5085_s1 + $0x1f8] sm:$0xff]   ;;  %v5107_v27 = vld [vmem:[#allocation4_spill] sm:$0xff] }
  0x67   : > { %v3938_v20 = vld [vmem:[%s5085_s1 + $0x208] sm:$0xff]   ;;  %v5108_v61 = vld [vmem:[#allocation5_spill] sm:$0xff] }
  0x68   : > { %1598 = vmatmul.mubr.bf16.gmra.mrb[28].mxu1 %v4270_v6 }
  0x69   : > { %1605 = vmatprep.mubr.bf16.mxu1 %v4393_v18  ;;  %3573 = vmatpush3.bf16.msra.mxu1 %v3921_v36  ;;  %v786_v36 = vrot.slane %v4433_v48, 1 }
  0x6a   : > { %3574 = vmatprep.subr.bf16.mxu1 %v3930_v1 }
  0x6b   : > { %v4656_v62 = vsel %vm765_vm2, %v786_v36, %v787_v30 }
  0x6d   : > { %1164 = vmatmul.mubr.bf16.gmra.mrb[28].mxu0 %v4452_v47  ;;  %3575 = vmatpush3.bf16.msra.mxu1 %v3930_v1  ;;  %v4646_v1 = vsel %vm765_vm2, %v783_v43, %v784_v44 }
  0x6e   : > { %1171 = vmatprep.mubr.bf16.mxu0 %v4464_v58  ;;  %3608 = vmatprep.subr.bf16.mxu1 %v4554_v40 }
  0x70   : > { %1606 = vmatmul.mubr.bf16.gmra.mrb[32].mxu1 %v4350_v29 }
  0x71   : > { %1613 = vmatprep.mubr.bf16.mxu1 %v4440_v38 }
  0x75   : > { %1172 = vmatmul.mubr.bf16.gmra.mrb[32].mxu0 %v4157_v49 }
  0x76   : > { %1179 = vmatprep.mubr.bf16.mxu0 %v4493_v2 }
  0x78   : > { %1614 = vmatmul.mubr.bf16.gmra.mrb[36].mxu1 %v4401_v34 }
  0x79   : > { %1621 = vmatprep.mubr.bf16.mxu1 %v4472_v19 }
  0x7d   : > { %1180 = vmatmul.mubr.bf16.gmra.mrb[36].mxu0 %v4170_v57 }
  0x7e   : > { %1187 = vmatprep.mubr.bf16.mxu0 %v4501_v16 }
  0x80   : > { %1622 = vmatmul.mubr.bf16.gmra.mrb[40].mxu1 %v4425_v17 }
  0x81   : > { %1629 = vmatprep.mubr.bf16.mxu1 %v4480_v10 }
  0x85   : > { %1188 = vmatmul.mubr.bf16.gmra.mrb[40].mxu0 %v4224_v35 }
  0x86   : > { %1195 = vmatprep.mubr.bf16.mxu0 %v4507_v0 }
  0x88   : > { %1630 = vmatmul.mubr.bf16.gmra.mrb[44].mxu1 %v4433_v48 }
  0x89   : > { %1637 = vmatprep.mubr.bf16.mxu1 %v4524_v32 }
  0x8d   : > { %1196 = vmatmul.mubr.bf16.gmra.mrb[44].mxu0 %v4234_v42 }
  0x8e   : > { %1203 = vmatprep.mubr.bf16.mxu0 %v4515_v23 }
  0x90   : > { %1638 = vmatmul.mubr.bf16.gmra.mrb[48].mxu1 %v4452_v47 }
  0x91   : > { %1645 = vmatprep.mubr.bf16.mxu1 %v4464_v58 }
  0x95   : > { %1204 = vmatmul.mubr.bf16.gmra.mrb[48].mxu0 %v4289_v26 }
  0x96   : > { %1211 = vmatprep.mubr.bf16.mxu0 %v4528_v33 }
  0x98   : > { %1646 = vmatmul.mubr.bf16.gmra.mrb[52].mxu1 %v4157_v49 }
  0x99   : > { %1653 = vmatprep.mubr.bf16.mxu1 %v4493_v2 }
  0x9d   : > { %1212 = vmatmul.mubr.bf16.gmra.mrb[52].mxu0 %v4299_v37 }
  0x9e   : > { %1219 = vmatprep.mubr.bf16.mxu0 %v4538_v41 }
  0xa0   : > { %1654 = vmatmul.mubr.bf16.gmra.mrb[56].mxu1 %v4170_v57 }
  0xa1   : > { %1661 = vmatprep.mubr.bf16.mxu1 %v4501_v16 }
  0xa5   : > { %1220 = vmatmul.mubr.bf16.gmra.mrb[56].mxu0 %v4354_v13 }
  0xa6   : > { %1227 = vmatprep.mubr.bf16.mxu0 %v4542_v46 }
  0xa8   : > { %1662 = vmatmul.mubr.bf16.gmra.mrb[60].mxu1 %v4224_v35 }
  0xa9   : > { %1669 = vmatprep.mubr.bf16.mxu1 %v4507_v0 }
  0xad   : > { %1228 = vmatmul.mubr.bf16.gmra.mrb[60].mxu0 %v4366_v45 }
  0xae   : > { %3528 = vmatprep.mubr.bf16.mxu0 %v4531_v24 }
  0xb0   : > { %1670 = vmatmul.mubr.bf16.gmra.mrb[64].mxu1 %v4234_v42 }
  0xb1   : > { %1677 = vmatprep.mubr.bf16.mxu1 %v4515_v23 }
  0xb5   : > { %3529 = vmatmul.mubr.bf16.vlgmr.msra.gmra.mrb[64].mxu0 %v4594_v25 }
  0xb6   : > { %3377 = vmatpush3.bf16.msra.mxu0 %v3920_v39  ;;  %3532 = vmatprep.mubr.bf16.mxu0 %v4604_v4  ;;  %v3933_v39 = vld [vmem:[%s5085_s1 + $0x1f0] sm:$0xff]  }
  0xb7   : > { %3378 = vmatprep.subr.bf16.mxu0 %v3922_v14  ;;  %v4670_v14 = vsel %vm765_vm2, %v789_v51, %v790_v22 }
  0xb8   : > { %1678 = vmatmul.mubr.bf16.gmra.mrb[68].mxu1 %v4289_v26 }
  0xb9   : > { %1685 = vmatprep.mubr.bf16.mxu1 %v4528_v33 }
  0xba   : > { %3379 = vmatpush3.bf16.msra.mxu0 %v3923_v60  ;;  %v3934_v60 = vld [vmem:[%s5085_s1 + $0x1b0] sm:$0xff]  }
  0xbb   : > { %3380 = vmatprep.subr.bf16.mxu0 %v3924_v31  ;;  %v3939_v31 = vld [vmem:[%s5085_s1 + $0x210] sm:$0xff]  }
  0xbd   : > { %3533 = vmatmul.mubr.bf16.gmra.mrb[68].mxu0 %v4620_v50 }
  0xbe   : > { %3381 = vmatpush3.bf16.msra.mxu0 %v3925_v15  ;;  %3536 = vmatprep.mubr.bf16.mxu0 %v4630_v9 }
  0xbf   : > { %3382 = vmatprep.subr.bf16.mxu0 %v3926_v8 }
  0xc0   : > { %1686 = vmatmul.mubr.bf16.gmra.mrb[72].mxu1 %v4299_v37 }
  0xc1   : > { %1693 = vmatprep.mubr.bf16.mxu1 %v4538_v41 }
  0xc2   : > { %3383 = vmatpush3.bf16.msra.mxu0 %v3927_v3 }
  0xc3   : > { %3384 = vmatprep.subr.bf16.mxu0 %v3928_v56 }
  0xc5   : > { %3537 = vmatmul.mubr.bf16.gmra.mrb[72].mxu0 %v4646_v1 }
  0xc6   : > { %3385 = vmatpush3.bf16.msra.mxu0 %v3929_v12  ;;  %3540 = vmatprep.mubr.bf16.mxu0 %v4656_v62 }
  0xc7   : > { %3386 = vmatprep.subr.bf16.mxu0 %v3931_v59 }
  0xc8   : > { %1694 = vmatmul.mubr.bf16.gmra.mrb[76].mxu1 %v4354_v13 }
  0xc9   : > { %3576 = vmatprep.mubr.bf16.mxu1 %v4210_v28 }
  0xca   : > { %3387 = vmatpush3.bf16.msra.mxu0 %v3932_v5 }
  0xcb   : > { %3388 = vmatprep.subr.bf16.mxu0 %v3933_v39 }
  0xcd   : > { %3541 = vmatmul.mubr.bf16.gmra.mrb[76].mxu0 %v4670_v14 }
  0xce   : > { %3389 = vmatpush3.bf16.msra.mxu0 %v3934_v60  ;;  %2088 = vmatprep.mubr.bf16.mxu0 %v4248_v55  ;;  %v3940_v55 = vld [vmem:[%s5085_s1 + $0x218] sm:$0xff]  }
  0xcf   : > { %3390 = vmatprep.subr.bf16.mxu0 %v3935_v53 }
  0xd0   : > { %3577 = vmatmul.mubr.bf16.vlgmr.msra.gmra.mrb[80].mxu1 %v4531_v24  ;;  %v3941_v24 = vld [vmem:[%s5085_s1 + $0x220] sm:$0xff]  }
  0xd1   : > { %3609 = vmatpush3.bf16.msra.mxu1 %v4554_v40  ;;  %3580 = vmatprep.mubr.bf16.mxu1 %v4594_v25 }
  0xd2   : > { %3391 = vmatpush3.bf16.msra.mxu0 %v3936_v7  ;;  %3610 = vmatprep.subr.bf16.mxu1 %v3938_v20 }
  0xd5   : > { %2089 = vmatmul.mubr.bf16.vlgmr.msra.gmra.mrb[80].mxu0 %v4201_v21  ;;  %3611 = vmatpush3.bf16.msra.mxu1 %v3938_v20  ;;  %v3942_v21 = vld [vmem:[%s5085_s1 + $0x228] sm:$0xff]  }
  0xd6   : > { %2096 = vmatprep.mubr.bf16.mxu0 %v4314_v54  ;;  %3612 = vmatprep.subr.bf16.mxu1 %v3939_v31  ;;  %v3943_v54 = vld [vmem:[%s5085_s1 + $0x230] sm:$0xff]  }
  0xd8   : > { %3581 = vmatmul.mubr.bf16.gmra.mrb[84].mxu1 %v4604_v4 }
  0xd9   : > { %3584 = vmatprep.mubr.bf16.mxu1 %v4620_v50  ;;  %3613 = vmatpush3.bf16.msra.mxu1 %v3939_v31 }
  0xda   : > { %3614 = vmatprep.subr.bf16.mxu1 %v3940_v55 }
  0xdd   : > { %2097 = vmatmul.mubr.bf16.gmra.mrb[84].mxu0 %v4270_v6  ;;  %3615 = vmatpush3.bf16.msra.mxu1 %v3940_v55  ;;  %v3944_v6 = vld [vmem:[%s5085_s1 + $0x238] sm:$0xff]  }
  0xde   : > { %2104 = vmatprep.mubr.bf16.mxu0 %v4393_v18  ;;  %3616 = vmatprep.subr.bf16.mxu1 %v3941_v24 }
  0xe0   : > { %3585 = vmatmul.mubr.bf16.gmra.mrb[88].mxu1 %v4630_v9 }
  0xe1   : > { %3588 = vmatprep.mubr.bf16.mxu1 %v4646_v1  ;;  %3617 = vmatpush3.bf16.msra.mxu1 %v3941_v24 }
  0xe2   : > { %3618 = vmatprep.subr.bf16.mxu1 %v3942_v21 }
  0xe5   : > { %2105 = vmatmul.mubr.bf16.gmra.mrb[88].mxu0 %v4350_v29  ;;  %3619 = vmatpush3.bf16.msra.mxu1 %v3942_v21  ;;  %v5105_v29 = vld [vmem:[#allocation2_spill] sm:$0xff] }
  0xe6   : > { %2112 = vmatprep.mubr.bf16.mxu0 %v4440_v38  ;;  %3620 = vmatprep.subr.bf16.mxu1 %v3943_v54 }
  0xe8   : > { %3589 = vmatmul.mubr.bf16.gmra.mrb[92].mxu1 %v4656_v62 }
  0xe9   : > { %3592 = vmatprep.mubr.bf16.mxu1 %v4670_v14  ;;  %3621 = vmatpush3.bf16.msra.mxu1 %v3943_v54 }
  0xea   : > { %3622 = vmatprep.subr.bf16.mxu1 %v3944_v6 }
  0xed   : > { %2113 = vmatmul.mubr.bf16.gmra.mrb[92].mxu0 %v4401_v34  ;;  %3623 = vmatpush3.bf16.msra.mxu1 %v3944_v6  ;;  %v5106_v34 = vld [vmem:[#allocation3_spill] sm:$0xff] }
  0xee   : > { %2120 = vmatprep.mubr.bf16.mxu0 %v4472_v19 }
  0xf0   : > { %3593 = vmatmul.mubr.bf16.gmra.mrb[0].mxu1 %v4178_v63 }
  0xf1   : > { %3596 = vmatprep.mubr.bf16.mxu1 %v4186_v11 }
  0xf5   : > { %2121 = vmatmul.mubr.bf16.gmra.mrb[96].mxu0 %v4425_v17 }
  0xf6   : > { %2128 = vmatprep.mubr.bf16.mxu0 %v4480_v10 }
  0xf8   : > { %3597 = vmatmul.mubr.bf16.gmra.mrb[4].mxu1 %v4243_v52 }
  0xf9   : > { %3600 = vmatprep.mubr.bf16.mxu1 %v5105_v29 }
  0xfd   : > { %2129 = vmatmul.mubr.bf16.gmra.mrb[100].mxu0 %v4433_v48 }
  0xfe   : > { %2136 = vmatprep.mubr.bf16.mxu0 %v4524_v32 }
 0x100   : > { %3601 = vmatmul.mubr.bf16.gmra.mrb[8].mxu1 %v5106_v34 }
 0x101   : > { %3604 = vmatprep.mubr.bf16.mxu1 %v5107_v27 }
 0x103   : > { %v3120_v18 = vpop.f32.mrb[0].mxu0 }
 0x104   : > { %v3121_v38 = vpop.f32.mrb[1].mxu0 }
 0x105   : > { %v4732_v19 = vadd.f32 %v3121_v38, %v3120_v18  ;;  %v3123_v40 = vpop.f32.mrb[2].mxu0  ;;  %2137 = vmatmul.mubr.bf16.gmra.mrb[104].mxu0 %v4452_v47 }
 0x106   : > { %v3124_v17 = vpop.f32.mrb[3].mxu0  ;;  %2144 = vmatprep.mubr.bf16.mxu0 %v4464_v58 }
 0x107   : > { %v4736_v10 = vadd.f32 %v3124_v17, %v3123_v40 }
 0x108   : > { %3605 = vmatmul.mubr.bf16.gmra.mrb[12].mxu1 %v5108_v61 }
 0x109   : > { %3624 = vmatprep.mubr.bf16.mxu1 %v4594_v25 }
 0x10b   : > { %v3126_v48 = vpop.f32.mrb[4].mxu0 }
 0x10c   : > { %v3127_v32 = vpop.f32.mrb[5].mxu0 }
 0x10d   : > { %v4741_v15 = vadd.f32 %v3127_v32, %v3126_v48  ;;  %v3129_v8 = vpop.f32.mrb[6].mxu0  ;;  %2145 = vmatmul.mubr.bf16.gmra.mrb[108].mxu0 %v4157_v49 }
 0x10e   : > { %v3130_v3 = vpop.f32.mrb[7].mxu0  ;;  %2152 = vmatprep.mubr.bf16.mxu0 %v4493_v2 }
 0x10f   : > { %v4744_v43 = vadd.f32 %v3130_v3, %v3129_v8 }
 0x110   : > { %3625 = vmatmul.mubr.bf16.vlgmr.msra.gmra.mrb[80].mxu1 %v4604_v4 }
 0x111   : > { %3628 = vmatprep.mubr.bf16.mxu1 %v4620_v50 }
 0x113   : > { %v3132_v47 = vpop.f32.mrb[8].mxu0 }
 0x114   : > { %v3133_v58 = vpop.f32.mrb[9].mxu0 }
 0x115   : > { %2153 = vmatmul.mubr.bf16.gmra.mrb[112].mxu0 %v4170_v57  ;;  %v4750_v44 = vadd.f32 %v3133_v58, %v3132_v47  ;;  %v3135_v25 = vpop.f32.mrb[10].mxu0 }
 0x116   : > { %2160 = vmatprep.mubr.bf16.mxu0 %v4501_v16  ;;  %v3136_v56 = vpop.f32.mrb[11].mxu0 }
 0x117   : > { %v4753_v49 = vadd.f32 %v3136_v56, %v3135_v25 }
 0x118   : > { %3629 = vmatmul.mubr.bf16.gmra.mrb[84].mxu1 %v4630_v9 }
 0x119   : > { %3632 = vmatprep.mubr.bf16.mxu1 %v4646_v1 }
 0x11d   : > { %2161 = vmatmul.mubr.bf16.gmra.mrb[116].mxu0 %v4224_v35 }
 0x11e   : > { %2168 = vmatprep.mubr.bf16.mxu0 %v4507_v0  ;;  %v3138_v2 = vpop.f32.mrb[12].mxu0 }
 0x11f   : > { %v3139_v4 = vpop.f32.mrb[13].mxu0 }
 0x120   : > { %v4759_v57 = vadd.f32 %v3139_v4, %v3138_v2  ;;  %v3141_v50 = vpop.f32.mrb[14].mxu0  ;;  %3633 = vmatmul.mubr.bf16.gmra.mrb[88].mxu1 %v4656_v62  ;;  %v5109_v2 = vld [vmem:[#allocation6_spill] sm:$0xff] }
 0x121   : > { %v3142_v36 = vpop.f32.mrb[15].mxu0  ;;  %3636 = vmatprep.mubr.bf16.mxu1 %v4670_v14 }
 0x122   : > { %v4763_v16 = vadd.f32 %v3142_v36, %v3141_v50 }
 0x123   : > { %v3256_v9 = vpop.f32.mrb[16].mxu1 }
 0x124   : > { %v3257_v30 = vpop.f32.mrb[17].mxu1 }
 0x125   : > { %2169 = vmatmul.mubr.bf16.gmra.mrb[120].mxu0 %v4234_v42  ;;  %v4767_v35 = vadd.f32 %v3257_v30, %v3256_v9  ;;  %v3259_v0 = vpop.f32.mrb[18].mxu1 }
 0x126   : > { %2176 = vmatprep.mubr.bf16.mxu0 %v4515_v23  ;;  %v3260_v12 = vpop.f32.mrb[19].mxu1 }
 0x127   : > { %v4769_v5 = vadd.f32 %v3260_v12, %v3259_v0 }
 0x128   : > { %v3144_v1 = vpop.f32.mrb[16].mxu0  ;;  %3637 = vmatmul.mubr.bf16.gmra.mrb[92].mxu1 %v4178_v63 }
 0x129   : > { %v3145_v59 = vpop.f32.mrb[17].mxu0  ;;  %3640 = vmatprep.mubr.bf16.mxu1 %v4186_v11 }
 0x12a   : > { %v4771_v62 = vadd.f32 %v3145_v59, %v3144_v1  ;;  %v3147_v51 = vpop.f32.mrb[18].mxu0 }
 0x12b   : > { %v3148_v22 = vpop.f32.mrb[19].mxu0  ;;  %v3262_v23 = vpop.f32.mrb[20].mxu1 }
 0x12c   : > { %v4775_v42 = vadd.f32 %v3148_v22, %v3147_v51  ;;  %v3263_v39 = vpop.f32.mrb[21].mxu1  ;;  %v5110_v22 = vmov 0  }
 0x12d   : > { %2177 = vmatmul.mubr.bf16.gmra.mrb[124].mxu0 %v4289_v26  ;;  %v4779_v14 = vadd.f32 %v3263_v39, %v3262_v23  ;;  %v3265_v60 = vpop.f32.mrb[22].mxu1 }
 0x12e   : > { %2184 = vmatprep.mubr.bf16.mxu0 %v4528_v33  ;;  %v3266_v7 = vpop.f32.mrb[23].mxu1 }
 0x12f   : > { %v4781_v31 = vadd.f32 %v3266_v7, %v3265_v60 }
 0x130   : > { %v3150_v53 = vpop.f32.mrb[20].mxu0  ;;  %3641 = vmatmul.mubr.bf16.gmra.mrb[0].mxu1 %v4243_v52 }
 0x131   : > { %v3151_v20 = vpop.f32.mrb[21].mxu0  ;;  %3644 = vmatprep.mubr.bf16.mxu1 %v5105_v29 }
 0x132   : > { %v4783_v63 = vadd.f32 %v3151_v20, %v3150_v53  ;;  %v3153_v55 = vpop.f32.mrb[22].mxu0 }
 0x133   : > { %v3154_v11 = vpop.f32.mrb[23].mxu0  ;;  %v3268_v33 = vpop.f32.mrb[24].mxu1 }
 0x134   : > { %v4787_v26 = vadd.f32 %v3154_v11, %v3153_v55  ;;  %v3269_v24 = vpop.f32.mrb[25].mxu1 }
 0x135   : > { %2185 = vmatmul.mubr.bf16.gmra.mrb[128].mxu0 %v4299_v37  ;;  %v4791_v21 = vadd.f32 %v3269_v24, %v3268_v33  ;;  %v3271_v54 = vpop.f32.mrb[26].mxu1 }
 0x136   : > { %2192 = vmatprep.mubr.bf16.mxu0 %v4538_v41  ;;  %v3272_v18 = vpop.f32.mrb[27].mxu1 }
 0x137   : > { %v4793_v40 = vadd.f32 %v3272_v18, %v3271_v54 }
 0x138   : > { %v3156_v6 = vpop.f32.mrb[24].mxu0  ;;  %3645 = vmatmul.mubr.bf16.gmra.mrb[4].mxu1 %v5106_v34 }
 0x139   : > { %v3157_v38 = vpop.f32.mrb[25].mxu0  ;;  %3648 = vmatprep.mubr.bf16.mxu1 %v5107_v27 }
 0x13a   : > { %v4795_v52 = vadd.f32 %v3157_v38, %v3156_v6  ;;  %v3159_v17 = vpop.f32.mrb[26].mxu0 }
 0x13b   : > { %v3160_v29 = vpop.f32.mrb[27].mxu0  ;;  %v3274_v41 = vpop.f32.mrb[28].mxu1 }
 0x13c   : > { %v4799_v37 = vadd.f32 %v3160_v29, %v3159_v17  ;;  %v3275_v48 = vpop.f32.mrb[29].mxu1 }
 0x13d   : > { %2193 = vmatmul.mubr.bf16.gmra.mrb[132].mxu0 %v4354_v13  ;;  %v4803_v32 = vadd.f32 %v3275_v48, %v3274_v41  ;;  %v3277_v8 = vpop.f32.mrb[30].mxu1 }
 0x13e   : > { %2200 = vmatprep.mubr.bf16.mxu0 %v4542_v46  ;;  %v3278_v47 = vpop.f32.mrb[31].mxu1 }
 0x13f   : > { %v4805_v25 = vadd.f32 %v3278_v47, %v3277_v8 }
 0x140   : > { %v3162_v3 = vpop.f32.mrb[28].mxu0  ;;  %3649 = vmatmul.mubr.bf16.gmra.mrb[8].mxu1 %v5108_v61 }
 0x141   : > { %v3163_v58 = vpop.f32.mrb[29].mxu0  ;;  %3652 = vmatprep.mubr.bf16.mxu1 %v5109_v2 }
 0x142   : > { %v4807_v34 = vadd.f32 %v3163_v58, %v3162_v3  ;;  %v3165_v56 = vpop.f32.mrb[30].mxu0 }
 0x143   : > { %v3166_v27 = vpop.f32.mrb[31].mxu0  ;;  %v3280_v46 = vpop.f32.mrb[32].mxu1 }
 0x144   : > { %v4811_v13 = vadd.f32 %v3166_v27, %v3165_v56  ;;  %v3281_v4 = vpop.f32.mrb[33].mxu1 }
 0x145   : > { %2201 = vmatmul.mubr.bf16.gmra.mrb[136].mxu0 %v4366_v45  ;;  %v4815_v50 = vadd.f32 %v3281_v4, %v3280_v46  ;;  %v3283_v36 = vpop.f32.mrb[34].mxu1 }
 0x146   : > { %2208 = vmatprep.mubr.bf16.mxu0 %v4210_v28  ;;  %v3284_v30 = vpop.f32.mrb[35].mxu1 }
 0x147   : > { %v4817_v1 = vadd.f32 %v3284_v30, %v3283_v36 }
 0x148   : > { %v3168_v9 = vpop.f32.mrb[32].mxu0  ;;  %3653 = vmatmul.mubr.bf16.gmra.mrb[12].mxu1 %v4210_v28 }
 0x149   : > { %v3169_v0 = vpop.f32.mrb[33].mxu0 }
 0x14a   : > { %v3170_v61 = vadd.f32 %v3169_v0, %v3168_v9  ;;  %v3171_v12 = vpop.f32.mrb[34].mxu0 }
 0x14b   : > { %v3172_v59 = vpop.f32.mrb[35].mxu0  ;;  %v3286_v45 = vpop.f32.mrb[36].mxu1 }
 0x14c   : > { %v3173_v51 = vadd.f32 %v3172_v59, %v3171_v12  ;;  %v3287_v23 = vpop.f32.mrb[37].mxu1 }
 0x14d   : > { %2209 = vmatmul.mubr.bf16.gmra.mrb[140].mxu0 %v5110_v22  ;;  %v4821_v39 = vadd.f32 %v3287_v23, %v3286_v45  ;;  %v3289_v60 = vpop.f32.mrb[38].mxu1 }
 0x14e   : > { %v3290_v7 = vpop.f32.mrb[39].mxu1 }
 0x14f   : > { %v4823_v55 = vadd.f32 %v3290_v7, %v3289_v60 }
 0x150   : > { %v3174_v53 = vpop.f32.mrb[36].mxu0 }
 0x151   : > { %v3175_v20 = vpop.f32.mrb[37].mxu0 }
 0x152   : > { %v3176_v11 = vadd.f32 %v3175_v20, %v3174_v53  ;;  %v3177_v33 = vpop.f32.mrb[38].mxu0 }
 0x153   : > { %v3178_v24 = vpop.f32.mrb[39].mxu0  ;;  %v3292_v6 = vpop.f32.mrb[40].mxu1 }
 0x154   : > { %v3179_v54 = vadd.f32 %v3178_v24, %v3177_v33  ;;  %v3293_v28 = vpop.f32.mrb[41].mxu1 }
 0x155   : > { %v4825_v18 = vadd.f32 %v3293_v28, %v3292_v6  ;;  %v3295_v38 = vpop.f32.mrb[42].mxu1 }
 0x156   : > { %v3296_v29 = vpop.f32.mrb[43].mxu1 }
 0x157   : > { %v4827_v48 = vadd.f32 %v3296_v29, %v3295_v38 }
 0x158   : > { %v3180_v17 = vpop.f32.mrb[40].mxu0 }
 0x159   : > { %v3181_v41 = vpop.f32.mrb[41].mxu0 }
 0x15a   : > { %v3182_v8 = vadd.f32 %v3181_v41, %v3180_v17  ;;  %v3183_v3 = vpop.f32.mrb[42].mxu0 }
 0x15b   : > { %v3184_v47 = vpop.f32.mrb[43].mxu0  ;;  %v3298_v56 = vpop.f32.mrb[44].mxu1 }
 0x15c   : > { %v3185_v58 = vadd.f32 %v3184_v47, %v3183_v3  ;;  %v3299_v27 = vpop.f32.mrb[45].mxu1 }
 0x15d   : > { %v4829_v2 = vadd.f32 %v3299_v27, %v3298_v56  ;;  %v3301_v46 = vpop.f32.mrb[46].mxu1 }
 0x15e   : > { %v3302_v36 = vpop.f32.mrb[47].mxu1 }
 0x15f   : > { %v4831_v30 = vadd.f32 %v3302_v36, %v3301_v46 }
 0x160   : > { %v3186_v4 = vpop.f32.mrb[44].mxu0 }
 0x161   : > { %v3187_v9 = vpop.f32.mrb[45].mxu0 }
 0x162   : > { %v3188_v0 = vadd.f32 %v3187_v9, %v3186_v4  ;;  %v3189_v12 = vpop.f32.mrb[46].mxu0 }
 0x163   : > { %v3190_v59 = vpop.f32.mrb[47].mxu0  ;;  %v3304_v45 = vpop.f32.mrb[48].mxu1 }
 0x164   : > { %v3191_v22 = vadd.f32 %v3190_v59, %v3189_v12  ;;  %v3305_v23 = vpop.f32.mrb[49].mxu1 }
 0x165   : > { %v3306_v60 = vadd.f32 %v3305_v23, %v3304_v45  ;;  %v3307_v53 = vpop.f32.mrb[50].mxu1 }
 0x166   : > { %v3308_v20 = vpop.f32.mrb[51].mxu1 }
 0x167   : > { %v4833_v24 = vadd.f32 %v3306_v60, %v3170_v61  ;;  %v3309_v6 = vadd.f32 %v3308_v20, %v3307_v53 }
 0x168   : > { %v3192_v7 = vpop.f32.mrb[48].mxu0 }
 0x169   : > { %v3193_v33 = vpop.f32.mrb[49].mxu0  ;;  %v4835_v29 = vadd.f32 %v3309_v6, %v3173_v51 }
 0x16a   : > { %v3194_v28 = vadd.f32 %v3193_v33, %v3192_v7  ;;  %v3195_v38 = vpop.f32.mrb[50].mxu0 }
 0x16b   : > { %v3196_v17 = vpop.f32.mrb[51].mxu0  ;;  %v3310_v3 = vpop.f32.mrb[52].mxu1 }
 0x16c   : > { %v3197_v41 = vadd.f32 %v3196_v17, %v3195_v38  ;;  %v3311_v47 = vpop.f32.mrb[53].mxu1 }
 0x16d   : > { %v3312_v56 = vadd.f32 %v3311_v47, %v3310_v3  ;;  %v3313_v27 = vpop.f32.mrb[54].mxu1 }
 0x16e   : > { %v3314_v4 = vpop.f32.mrb[55].mxu1 }
 0x16f   : > { %v4837_v9 = vadd.f32 %v3312_v56, %v3176_v11  ;;  %v3315_v12 = vadd.f32 %v3314_v4, %v3313_v27 }
 0x170   : > { %v3198_v46 = vpop.f32.mrb[52].mxu0 }
 0x171   : > { %v3199_v36 = vpop.f32.mrb[53].mxu0  ;;  %v4839_v23 = vadd.f32 %v3315_v12, %v3179_v54 }
 0x172   : > { %v3200_v59 = vadd.f32 %v3199_v36, %v3198_v46  ;;  %v3201_v61 = vpop.f32.mrb[54].mxu0 }
 0x173   : > { %v3202_v45 = vpop.f32.mrb[55].mxu0  ;;  %v3316_v51 = vpop.f32.mrb[56].mxu1 }
 0x174   : > { %v4841_v60 = vadd.f32 %v3202_v45, %v3201_v61  ;;  %v3317_v53 = vpop.f32.mrb[57].mxu1 }
 0x175   : > { %v3318_v7 = vadd.f32 %v3317_v53, %v3316_v51  ;;  %v3319_v20 = vpop.f32.mrb[58].mxu1 }
 0x176   : > { %v3320_v6 = vpop.f32.mrb[59].mxu1 }
 0x177   : > { %v4843_v17 = vadd.f32 %v3318_v7, %v3182_v8  ;;  %v3321_v3 = vadd.f32 %v3320_v6, %v3319_v20 }
 0x178   : > { %v3204_v33 = vpop.f32.mrb[56].mxu0 }
 0x179   : > { %v3205_v38 = vpop.f32.mrb[57].mxu0  ;;  %5111 = vst [vmem:[#allocation2_spill] sm:$0xff] %v4843_v17  ;;  %v4847_v27 = vadd.f32 %v3321_v3, %v3185_v58 }
 0x17a   : > { %v4845_v11 = vadd.f32 %v3205_v38, %v3204_v33  ;;  %v3207_v47 = vpop.f32.mrb[58].mxu0 }
 0x17b   : > { %v3208_v56 = vpop.f32.mrb[59].mxu0  ;;  %5112 = vst [vmem:[#allocation3_spill] sm:$0xff] %v4847_v27  ;;  %v3322_v46 = vpop.f32.mrb[60].mxu1 }
 0x17c   : > { %v4849_v54 = vadd.f32 %v3208_v56, %v3207_v47  ;;  %v3323_v4 = vpop.f32.mrb[61].mxu1 }
 0x17d   : > { %v3324_v36 = vadd.f32 %v3323_v4, %v3322_v46  ;;  %v3325_v12 = vpop.f32.mrb[62].mxu1 }
 0x17e   : > { %v3326_v45 = vpop.f32.mrb[63].mxu1 }
 0x17f   : > { %v4851_v53 = vadd.f32 %v3324_v36, %v3188_v0  ;;  %v3327_v8 = vadd.f32 %v3326_v45, %v3325_v12 }
 0x180   : > { %v3210_v61 = vpop.f32.mrb[60].mxu0 }
 0x181   : > { %v3211_v51 = vpop.f32.mrb[61].mxu0  ;;  %v4855_v6 = vadd.f32 %v3327_v8, %v3191_v22 }
 0x182   : > { %v4853_v7 = vadd.f32 %v3211_v51, %v3210_v61  ;;  %v3213_v20 = vpop.f32.mrb[62].mxu0 }
 0x183   : > { %v3214_v33 = vpop.f32.mrb[63].mxu0  ;;  %v3328_v38 = vpop.f32.mrb[64].mxu1 }
 0x184   : > { %v4857_v58 = vadd.f32 %v3214_v33, %v3213_v20  ;;  %v3329_v3 = vpop.f32.mrb[65].mxu1 }
 0x185   : > { %v3330_v47 = vadd.f32 %v3329_v3, %v3328_v38  ;;  %v3331_v56 = vpop.f32.mrb[66].mxu1 }
 0x186   : > { %v3332_v4 = vpop.f32.mrb[67].mxu1 }
 0x187   : > { %v4860_v0 = vadd.f32 %v3330_v47, %v3194_v28  ;;  %v3333_v36 = vadd.f32 %v3332_v4, %v3331_v56 }
 0x188   : > { %v3530_v46 = vpop.f32.mrb[64].mxu0 }
 0x189   : > { %v1279_v27 = vadd.f32 %v3530_v46, %v4741_v15  ;;  %v1270_v17 = vpop.f32.mrb[65].mxu0  ;;  %v4867_v8 = vadd.f32 %v3333_v36, %v3197_v41 }
 0x18a   : > { %v1271_v12 = vadd.f32 %v4732_v19, %v1270_v17  ;;  %v3531_v61 = vpop.f32.mrb[66].mxu0 }
 0x18b   : > { %v4864_v22 = vadd.f32 %v4779_v14, %v1279_v27  ;;  %v1282_v45 = vadd.f32 %v3531_v61, %v4744_v43  ;;  %v1273_v51 = vpop.f32.mrb[67].mxu0  ;;  %v3334_v33 = vpop.f32.mrb[68].mxu1 }
 0x18c   : > { %v4870_v20 = vadd.f32 %v4767_v35, %v1271_v12  ;;  %v1274_v15 = vadd.f32 %v4736_v10, %v1273_v51  ;;  %v3335_v17 = vpop.f32.mrb[69].mxu1 }
 0x18d   : > { %v4874_v28 = vadd.f32 %v4781_v31, %v1282_v45  ;;  %v3336_v14 = vadd.f32 %v3335_v17, %v3334_v33  ;;  %v3337_v27 = vpop.f32.mrb[70].mxu1 }
 0x18e   : > { %v4877_v19 = vadd.f32 %v4769_v5, %v1274_v15  ;;  %v3338_v43 = vpop.f32.mrb[71].mxu1 }
 0x18f   : > { %v4880_v47 = vadd.f32 %v3336_v14, %v3200_v59  ;;  %v3339_v35 = vadd.f32 %v3338_v43, %v3337_v27 }
 0x190   : > { %v3534_v38 = vpop.f32.mrb[68].mxu0 }
 0x191   : > { %v1295_v41 = vadd.f32 %v3534_v38, %v4759_v57  ;;  %v1286_v3 = vpop.f32.mrb[69].mxu0  ;;  %v4888_v4 = vadd.f32 %v3339_v35, %v4841_v60 }
 0x192   : > { %v1287_v10 = vadd.f32 %v4750_v44, %v1286_v3  ;;  %v3535_v56 = vpop.f32.mrb[70].mxu0 }
 0x193   : > { %v4884_v31 = vadd.f32 %v4803_v32, %v1295_v41  ;;  %v1298_v5 = vadd.f32 %v3535_v56, %v4763_v16  ;;  %v1289_v46 = vpop.f32.mrb[71].mxu0  ;;  %v3340_v12 = vpop.f32.mrb[72].mxu1 }
 0x194   : > { %v4891_v36 = vadd.f32 %v4791_v21, %v1287_v10  ;;  %v1290_v57 = vadd.f32 %v4753_v49, %v1289_v46  ;;  %v3341_v32 = vpop.f32.mrb[73].mxu1 }
 0x195   : > { %v4895_v59 = vadd.f32 %v4805_v25, %v1298_v5  ;;  %v3342_v61 = vadd.f32 %v3341_v32, %v3340_v12  ;;  %v3343_v45 = vpop.f32.mrb[74].mxu1 }
 0x196   : > { %v4898_v44 = vadd.f32 %v4793_v40, %v1290_v57  ;;  %v3344_v51 = vpop.f32.mrb[75].mxu1 }
 0x197   : > { %v4902_v21 = vadd.f32 %v3342_v61, %v4845_v11  ;;  %v3345_v33 = vadd.f32 %v3344_v51, %v3343_v45 }
 0x198   : > { %v3538_v16 = vpop.f32.mrb[72].mxu0 }
 0x199   : > { %v1311_v60 = vadd.f32 %v3538_v16, %v4783_v63  ;;  %v1302_v15 = vpop.f32.mrb[73].mxu0  ;;  %v4910_v27 = vadd.f32 %v3345_v33, %v4849_v54 }
 0x19a   : > { %v1303_v49 = vadd.f32 %v4771_v62, %v1302_v15  ;;  %v3539_v25 = vpop.f32.mrb[74].mxu0 }
 0x19b   : > { %v4906_v17 = vadd.f32 %v4821_v39, %v1311_v60  ;;  %v1314_v40 = vadd.f32 %v3539_v25, %v4787_v26  ;;  %v1305_v14 = vpop.f32.mrb[75].mxu0  ;;  %v3346_v43 = vpop.f32.mrb[76].mxu1 }
 0x19c   : > { %v1608_v38 = vadd.f32 %v4815_v50, %v1303_v49  ;;  %v1306_v63 = vadd.f32 %v4775_v42, %v1305_v14  ;;  %v3347_v41 = vpop.f32.mrb[77].mxu1 }
 0x19d   : > { %v4915_v11 = vadd.f32 %v4823_v55, %v1314_v40  ;;  %v3348_v3 = vadd.f32 %v3347_v41, %v3346_v43  ;;  %v3349_v39 = vpop.f32.mrb[78].mxu1 }
 0x19e   : > { %v1611_v62 = vadd.f32 %v4817_v1, %v1306_v63  ;;  %v3350_v10 = vpop.f32.mrb[79].mxu1 }
 0x19f   : > { %v4920_v54 = vadd.f32 %v3348_v3, %v4853_v7  ;;  %v3351_v50 = vadd.f32 %v3350_v10, %v3349_v39 }
 0x1a0   : > { %v3542_v35 = vpop.f32.mrb[76].mxu0 }
 0x1a1   : > { %v1327_v26 = vadd.f32 %v3542_v35, %v4807_v34  ;;  %v1318_v56 = vpop.f32.mrb[77].mxu0  ;;  %v4928_v57 = vadd.f32 %v3351_v50, %v4857_v58 }
 0x1a2   : > { %v1319_v42 = vadd.f32 %v4795_v52, %v1318_v56  ;;  %v3543_v5 = vpop.f32.mrb[78].mxu0 }
 0x1a3   : > { %v4924_v55 = vadd.f32 %v4829_v2, %v1327_v26  ;;  %v1330_v1 = vadd.f32 %v3543_v5, %v4811_v13  ;;  %v1321_v46 = vpop.f32.mrb[79].mxu0 }
 0x1a4   : > { %v1624_v12 = vadd.f32 %v4825_v18, %v1319_v42  ;;  %v1322_v34 = vadd.f32 %v4799_v37, %v1321_v46 }
 0x1a5   : > { %v4933_v7 = vadd.f32 %v4831_v30, %v1330_v1 }
 0x1a6   : > { %v1627_v32 = vadd.f32 %v4827_v48, %v1322_v34 }
 0x1a8   : > { %v3392_v52 = vpop.f32.mrb[80].mxu0 }
 0x1a9   : > { %v3393_v61 = vpop.f32.mrb[81].mxu0 }
 0x1aa   : > { %v3394_v45 = vadd.f32 %v3393_v61, %v3392_v52  ;;  %v3395_v2 = vpop.f32.mrb[82].mxu0 }
 0x1ab   : > { %v3396_v16 = vpop.f32.mrb[83].mxu0 }
 0x1ac   : > { %v3397_v51 = vadd.f32 %v3396_v16, %v3395_v2  ;;  %v3678_v13 = vadd.f32 %v3394_v45, %v4870_v20 }
 0x1ae   : > { %v4938_v58 = vadd.f32 %v3397_v51, %v4877_v19 }
 0x1b0   : > { %v3398_v60 = vpop.f32.mrb[84].mxu0 }
 0x1b1   : > { %v3399_v18 = vpop.f32.mrb[85].mxu0 }
 0x1b2   : > { %v3400_v15 = vadd.f32 %v3399_v18, %v3398_v60  ;;  %v3401_v37 = vpop.f32.mrb[86].mxu0 }
 0x1b3   : > { %v3402_v33 = vpop.f32.mrb[87].mxu0 }
 0x1b4   : > { %v3403_v30 = vadd.f32 %v3402_v33, %v3401_v37  ;;  %v3674_v49 = vadd.f32 %v3400_v15, %v4864_v22 }
 0x1b6   : > { %v3682_v48 = vadd.f32 %v3403_v30, %v4874_v28 }
 0x1b8   : > { %v3404_v25 = vpop.f32.mrb[88].mxu0 }
 0x1b9   : > { %v3405_v40 = vpop.f32.mrb[89].mxu0 }
 0x1ba   : > { %v3406_v14 = vadd.f32 %v3405_v40, %v3404_v25  ;;  %v3407_v63 = vpop.f32.mrb[90].mxu0 }
 0x1bb   : > { %v3408_v43 = vpop.f32.mrb[91].mxu0 }
 0x1bc   : > { %v3409_v41 = vadd.f32 %v3408_v43, %v3407_v63  ;;  %v4943_v20 = vadd.f32 %v3406_v14, %v4891_v36 }
 0x1be   : > { %v4946_v19 = vadd.f32 %v3409_v41, %v4898_v44 }
 0x1c0   : > { %v3410_v3 = vpop.f32.mrb[92].mxu0 }
 0x1c1   : > { %v3411_v39 = vpop.f32.mrb[93].mxu0 }
 0x1c2   : > { %v3412_v35 = vadd.f32 %v3411_v39, %v3410_v3  ;;  %v3413_v10 = vpop.f32.mrb[94].mxu0 }
 0x1c3   : > { %v3414_v26 = vpop.f32.mrb[95].mxu0 }
 0x1c4   : > { %v3415_v22 = vadd.f32 %v3414_v26, %v3413_v10  ;;  %v3690_v28 = vadd.f32 %v3412_v35, %v4884_v31 }
 0x1c6   : > { %v4950_v56 = vadd.f32 %v3415_v22, %v4895_v59 }
 0x1c8   : > { %v3416_v50 = vpop.f32.mrb[96].mxu0 }
 0x1c9   : > { %v3417_v42 = vpop.f32.mrb[97].mxu0 }
 0x1ca   : > { %v3418_v5 = vadd.f32 %v3417_v42, %v3416_v50  ;;  %v3419_v1 = vpop.f32.mrb[98].mxu0 }
 0x1cb   : > { %v3420_v36 = vpop.f32.mrb[99].mxu0 }
 0x1cc   : > { %v3421_v46 = vadd.f32 %v3420_v36, %v3419_v1  ;;  %v4952_v34 = vadd.f32 %v3418_v5, %v1608_v38 }
 0x1ce   : > { %v4954_v44 = vadd.f32 %v3421_v46, %v1611_v62 }
 0x1d0   : > { %v3422_v52 = vpop.f32.mrb[100].mxu0 }
 0x1d1   : > { %v3423_v61 = vpop.f32.mrb[101].mxu0 }
 0x1d2   : > { %v3424_v45 = vadd.f32 %v3423_v61, %v3422_v52  ;;  %v3425_v2 = vpop.f32.mrb[102].mxu0 }
 0x1d3   : > { %v3426_v16 = vpop.f32.mrb[103].mxu0 }
 0x1d4   : > { %v3427_v51 = vadd.f32 %v3426_v16, %v3425_v2  ;;  %v4957_v31 = vadd.f32 %v3424_v45, %v4906_v17 }
 0x1d6   : > { %v4960_v59 = vadd.f32 %v3427_v51, %v4915_v11  ;;  %v4972_v11 = vld [vmem:[%s5086_s2] ss:$0 sm:$0xff] }
 0x1d8   : > { %v3428_v60 = vpop.f32.mrb[104].mxu0 }
 0x1d9   : > { %v3429_v18 = vpop.f32.mrb[105].mxu0 }
 0x1da   : > { %v3430_v15 = vadd.f32 %v3429_v18, %v3428_v60  ;;  %v3431_v37 = vpop.f32.mrb[106].mxu0 }
 0x1db   : > { %v3432_v38 = vpop.f32.mrb[107].mxu0 }
 0x1dc   : > { %v3433_v33 = vadd.f32 %v3432_v38, %v3431_v37  ;;  %v4962_v62 = vadd.f32 %v3430_v15, %v1624_v12 }
 0x1de   : > { %v4964_v30 = vadd.f32 %v3433_v33, %v1627_v32 }
 0x1e0   : > { %v3434_v25 = vpop.f32.mrb[108].mxu0 }
 0x1e1   : > { %v3435_v40 = vpop.f32.mrb[109].mxu0 }
 0x1e2   : > { %v3436_v14 = vadd.f32 %v3435_v40, %v3434_v25  ;;  %v3437_v63 = vpop.f32.mrb[110].mxu0 }
 0x1e3   : > { %v3438_v43 = vpop.f32.mrb[111].mxu0  ;;  %v3626_v3 = vpop.f32.mrb[80].mxu1 }
 0x1e4   : > { %v3439_v17 = vadd.f32 %v3438_v43, %v3437_v63  ;;  %v4967_v41 = vadd.f32 %v3436_v14, %v4924_v55  ;;  %v3675_v39 = vadd.f32 %v3674_v49, %v3626_v3  ;;  %v2251_v12 = vpop.f32.mrb[81].mxu1 }
 0x1e5   : > { %v3679_v35 = vadd.f32 %v3678_v13, %v2251_v12  ;;  %v3627_v10 = vpop.f32.mrb[82].mxu1 }
 0x1e6   : > { %v4975_v32 = vadd.f32 %v3439_v17, %v4933_v7  ;;  %v2418_v22 = vadd.f32 %v3675_v39, %v4972_v11  ;;  %v3683_v50 = vadd.f32 %v3682_v48, %v3627_v10  ;;  %v2254_v55 = vpop.f32.mrb[83].mxu1 }
 0x1e7   : > { %v2416_v5 = vadd.f32 %v3679_v35, %v4972_v11  ;;  %v3687_v1 = vadd.f32 %v4938_v58, %v2254_v55 }
 0x1e8   : > { %v3440_v26 = vpop.f32.mrb[112].mxu0  ;;  %v2419_v49 = vadd.f32 %v3683_v50, %v4972_v11  ;;  %v2450_v13 = vmax.f32 %v2418_v22, 0.0 }
 0x1e9   : > { %v3441_v42 = vpop.f32.mrb[113].mxu0  ;;  %v2417_v7 = vadd.f32 %v3687_v1, %v4972_v11  ;;  %v2448_v48 = vmax.f32 %v2416_v5, 0.0 }
 0x1ea   : > { %v3442_v36 = vadd.f32 %v3441_v42, %v3440_v26  ;;  %v3443_v46 = vpop.f32.mrb[114].mxu0  ;;  %v2451_v61 = vmax.f32 %v2419_v49, 0.0 }
 0x1eb   : > { %v3444_v52 = vpop.f32.mrb[115].mxu0  ;;  %v2449_v58 = vmax.f32 %v2417_v7, 0.0  ;;  %v3630_v16 = vpop.f32.mrb[84].mxu1 }
 0x1ec   : > { %v3445_v45 = vadd.f32 %v3444_v52, %v3443_v46  ;;  %v4983_v2 = vadd.f32 %v4833_v24, %v3442_v36  ;;  %v3017_v51 = vpack.c.bf16 %v2451_v61, %v2450_v13  ;;  %v3691_v60 = vadd.f32 %v3690_v28, %v3630_v16  ;;  %v2267_v18 = vpop.f32.mrb[85].mxu1 }
 0x1ed   : > { %v3012_v37 = vpack.c.bf16 %v2449_v58, %v2448_v48  ;;  %v3695_v24 = vadd.f32 %v4943_v20, %v2267_v18  ;;  %v3631_v38 = vpop.f32.mrb[86].mxu1  ;;  %v5113_v18 = vld [vmem:[#allocation2_spill] sm:$0xff] }
 0x1ee   : > { %v4993_v15 = vadd.f32 %v4835_v29, %v3445_v45  ;;  %3089 = vst [vmem:[%s4990_s9 + $0x8] sm:$0xff] %v3017_v51   ;;  %v2422_v25 = vadd.f32 %v3691_v60, %v4972_v11  ;;  %v3699_v40 = vadd.f32 %v4950_v56, %v3631_v38  ;;  %v2270_v14 = vpop.f32.mrb[87].mxu1 }
 0x1ef   : > { %3013 = vst [vmem:[%s4990_s9] sm:$0xff] %v3012_v37   ;;  %v2420_v43 = vadd.f32 %v3695_v24, %v4972_v11  ;;  %v3703_v28 = vadd.f32 %v4946_v19, %v2270_v14 }
 0x1f0   : > { %v3446_v33 = vpop.f32.mrb[116].mxu0  ;;  %v2423_v3 = vadd.f32 %v3699_v40, %v4972_v11  ;;  %v2454_v12 = vmax.f32 %v2422_v25, 0.0  ;;  %v5114_v40 = vld [vmem:[#allocation3_spill] sm:$0xff] }
 0x1f1   : > { %v3447_v63 = vpop.f32.mrb[117].mxu0  ;;  %v2421_v20 = vadd.f32 %v3703_v28, %v4972_v11  ;;  %v2452_v26 = vmax.f32 %v2420_v43, 0.0 }
 0x1f2   : > { %v3448_v17 = vadd.f32 %v3447_v63, %v3446_v33  ;;  %v3449_v29 = vpop.f32.mrb[118].mxu0  ;;  %v2455_v35 = vmax.f32 %v2423_v3, 0.0 }
 0x1f3   : > { %v3450_v39 = vpop.f32.mrb[119].mxu0  ;;  %v2453_v22 = vmax.f32 %v2421_v20, 0.0  ;;  %v3634_v50 = vpop.f32.mrb[88].mxu1 }
 0x1f4   : > { %v3451_v10 = vadd.f32 %v3450_v39, %v3449_v29  ;;  %v3737_v56 = vadd.f32 %v4837_v9, %v3448_v17  ;;  %v3027_v55 = vpack.c.bf16 %v2455_v35, %v2454_v12  ;;  %v3707_v19 = vadd.f32 %v4957_v31, %v3634_v50  ;;  %v2283_v42 = vpop.f32.mrb[89].mxu1 }
 0x1f5   : > { %v3022_v1 = vpack.c.bf16 %v2453_v22, %v2452_v26  ;;  %v3711_v36 = vadd.f32 %v4952_v34, %v2283_v42  ;;  %v3635_v46 = vpop.f32.mrb[90].mxu1 }
 0x1f6   : > { %v5007_v5 = vadd.f32 %v4839_v23, %v3451_v10  ;;  %3091 = vst [vmem:[%s4990_s9 + $0x18] sm:$0xff] %v3027_v55   ;;  %v2426_v52 = vadd.f32 %v3707_v19, %v4972_v11  ;;  %v3715_v9 = vadd.f32 %v4960_v59, %v3635_v46  ;;  %v2286_v7 = vpop.f32.mrb[91].mxu1 }
 0x1f7   : > { %3090 = vst [vmem:[%s4990_s9 + $0x10] sm:$0xff] %v3022_v1   ;;  %v2424_v61 = vadd.f32 %v3711_v36, %v4972_v11  ;;  %v3719_v31 = vadd.f32 %v4954_v44, %v2286_v7 }
 0x1f8   : > { %v3452_v49 = vpop.f32.mrb[120].mxu0  ;;  %v2427_v48 = vadd.f32 %v3715_v9, %v4972_v11  ;;  %v2458_v16 = vmax.f32 %v2426_v52, 0.0 }
 0x1f9   : > { %v3453_v13 = vpop.f32.mrb[121].mxu0  ;;  %v2425_v34 = vadd.f32 %v3719_v31, %v4972_v11  ;;  %v2456_v37 = vmax.f32 %v2424_v61, 0.0 }
 0x1fa   : > { %v3454_v45 = vadd.f32 %v3453_v13, %v3452_v49  ;;  %v3455_v23 = vpop.f32.mrb[122].mxu0  ;;  %v2459_v51 = vmax.f32 %v2427_v48, 0.0 }
 0x1fb   : > { %v3456_v58 = vpop.f32.mrb[123].mxu0  ;;  %v2457_v24 = vmax.f32 %v2425_v34, 0.0  ;;  %v3638_v38 = vpop.f32.mrb[92].mxu1 }
 0x1fc   : > { %v3457_v60 = vadd.f32 %v3456_v58, %v3455_v23  ;;  %v5019_v59 = vadd.f32 %v5113_v18, %v3454_v45  ;;  %v3037_v33 = vpack.c.bf16 %v2459_v51, %v2458_v16  ;;  %v3723_v44 = vadd.f32 %v4967_v41, %v3638_v38  ;;  %v2299_v25 = vpop.f32.mrb[93].mxu1 }
 0x1fd   : > { %v3032_v63 = vpack.c.bf16 %v2457_v24, %v2456_v37  ;;  %v3727_v43 = vadd.f32 %v4962_v62, %v2299_v25  ;;  %v3639_v28 = vpop.f32.mrb[94].mxu1 }
 0x1fe   : > { %v5023_v14 = vadd.f32 %v5114_v40, %v3457_v60  ;;  %3093 = vst [vmem:[%s4990_s9 + $0x28] sm:$0xff] %v3037_v33   ;;  %v2430_v29 = vadd.f32 %v3723_v44, %v4972_v11  ;;  %v3731_v3 = vadd.f32 %v4975_v32, %v3639_v28  ;;  %v2302_v39 = vpop.f32.mrb[95].mxu1 }
 0x1ff   : > { %3092 = vst [vmem:[%s4990_s9 + $0x20] sm:$0xff] %v3032_v63   ;;  %v2428_v12 = vadd.f32 %v3727_v43, %v4972_v11  ;;  %v3735_v41 = vadd.f32 %v4964_v30, %v2302_v39 }
 0x200   : > { %v3458_v17 = vpop.f32.mrb[124].mxu0  ;;  %v2431_v26 = vadd.f32 %v3731_v3, %v4972_v11  ;;  %v2462_v50 = vmax.f32 %v2430_v29, 0.0 }
 0x201   : > { %v3459_v20 = vpop.f32.mrb[125].mxu0  ;;  %v2429_v62 = vadd.f32 %v3735_v41, %v4972_v11  ;;  %v2460_v42 = vmax.f32 %v2428_v12, 0.0 }
 0x202   : > { %v3460_v35 = vadd.f32 %v3459_v20, %v3458_v17  ;;  %v3461_v10 = vpop.f32.mrb[126].mxu0  ;;  %v2463_v55 = vmax.f32 %v2431_v26, 0.0 }
 0x203   : > { %v3462_v22 = vpop.f32.mrb[127].mxu0  ;;  %v2461_v1 = vmax.f32 %v2429_v62, 0.0  ;;  %v3642_v36 = vpop.f32.mrb[0].mxu1 }
 0x204   : > { %v3463_v19 = vadd.f32 %v3462_v22, %v3461_v10  ;;  %v3749_v32 = vadd.f32 %v4851_v53, %v3460_v35  ;;  %v3047_v46 = vpack.c.bf16 %v2463_v55, %v2462_v50  ;;  %v3738_v49 = vadd.f32 %v3737_v56, %v3642_v36  ;;  %v2315_v30 = vpop.f32.mrb[1].mxu1 }
 0x205   : > { %v3042_v9 = vpack.c.bf16 %v2461_v1, %v2460_v42  ;;  %v3741_v7 = vadd.f32 %v4983_v2, %v2315_v30  ;;  %v3643_v13 = vpop.f32.mrb[2].mxu1 }
 0x206   : > { %v3755_v52 = vadd.f32 %v4855_v6, %v3463_v19  ;;  %3095 = vst [vmem:[%s4990_s9 + $0x38] sm:$0xff] %v3047_v46   ;;  %v2434_v31 = vadd.f32 %v3738_v49, %v4972_v11  ;;  %v3744_v45 = vadd.f32 %v5007_v5, %v3643_v13  ;;  %v2318_v53 = vpop.f32.mrb[3].mxu1 }
 0x207   : > { %3094 = vst [vmem:[%s4990_s9 + $0x30] sm:$0xff] %v3042_v9   ;;  %v2432_v48 = vadd.f32 %v3741_v7, %v4972_v11  ;;  %v3747_v56 = vadd.f32 %v4993_v15, %v2318_v53 }
 0x208   : > { %v3464_v61 = vpop.f32.mrb[128].mxu0  ;;  %v2435_v6 = vadd.f32 %v3744_v45, %v4972_v11  ;;  %v2466_v51 = vmax.f32 %v2434_v31, 0.0 }
 0x209   : > { %v3465_v23 = vpop.f32.mrb[129].mxu0  ;;  %v2433_v2 = vadd.f32 %v3747_v56, %v4972_v11  ;;  %v2464_v37 = vmax.f32 %v2432_v48, 0.0 }
 0x20a   : > { %v3466_v58 = vadd.f32 %v3465_v23, %v3464_v61  ;;  %v3467_v34 = vpop.f32.mrb[130].mxu0  ;;  %v2467_v60 = vmax.f32 %v2435_v6, 0.0 }
 0x20b   : > { %v3468_v16 = vpop.f32.mrb[131].mxu0  ;;  %v2465_v24 = vmax.f32 %v2433_v2, 0.0  ;;  %v3646_v38 = vpop.f32.mrb[4].mxu1 }
 0x20c   : > { %v3469_v18 = vadd.f32 %v3468_v16, %v3467_v34  ;;  %v3764_v5 = vadd.f32 %v4860_v0, %v3466_v58  ;;  %v3057_v33 = vpack.c.bf16 %v2467_v60, %v2466_v51  ;;  %v3750_v44 = vadd.f32 %v3749_v32, %v3646_v38  ;;  %v2331_v15 = vpop.f32.mrb[5].mxu1 }
 0x20d   : > { %v3052_v40 = vpack.c.bf16 %v2465_v24, %v2464_v37  ;;  %v3753_v63 = vadd.f32 %v5019_v59, %v2331_v15  ;;  %v3647_v43 = vpop.f32.mrb[6].mxu1 }
 0x20e   : > { %v3770_v25 = vadd.f32 %v4867_v8, %v3469_v18  ;;  %3097 = vst [vmem:[%s4990_s9 + $0x48] sm:$0xff] %v3057_v33   ;;  %v2438_v17 = vadd.f32 %v3750_v44, %v4972_v11  ;;  %v3756_v29 = vadd.f32 %v3755_v52, %v3647_v43  ;;  %v2334_v3 = vpop.f32.mrb[7].mxu1 }
 0x20f   : > { %3096 = vst [vmem:[%s4990_s9 + $0x40] sm:$0xff] %v3052_v40   ;;  %v2436_v39 = vadd.f32 %v3753_v63, %v4972_v11  ;;  %v3759_v20 = vadd.f32 %v5023_v14, %v2334_v3 }
 0x210   : > { %v3470_v28 = vpop.f32.mrb[132].mxu0  ;;  %v2439_v8 = vadd.f32 %v3756_v29, %v4972_v11  ;;  %v2470_v10 = vmax.f32 %v2438_v17, 0.0 }
 0x211   : > { %v3471_v0 = vpop.f32.mrb[133].mxu0  ;;  %v2437_v59 = vadd.f32 %v3759_v20, %v4972_v11  ;;  %v2468_v50 = vmax.f32 %v2436_v39, 0.0 }
 0x212   : > { %v3472_v12 = vadd.f32 %v3471_v0, %v3470_v28  ;;  %v3473_v41 = vpop.f32.mrb[134].mxu0  ;;  %v2471_v26 = vmax.f32 %v2439_v8, 0.0 }
 0x213   : > { %v3474_v35 = vpop.f32.mrb[135].mxu0  ;;  %v2469_v55 = vmax.f32 %v2437_v59, 0.0  ;;  %v3650_v19 = vpop.f32.mrb[8].mxu1 }
 0x214   : > { %v3475_v22 = vadd.f32 %v3474_v35, %v3473_v41  ;;  %v3761_v62 = vadd.f32 %v4880_v47, %v3472_v12  ;;  %v3067_v32 = vpack.c.bf16 %v2471_v26, %v2470_v10  ;;  %v2347_v14 = vpop.f32.mrb[9].mxu1 }
 0x215   : > { %v3062_v36 = vpack.c.bf16 %v2469_v55, %v2468_v50  ;;  %v3765_v46 = vadd.f32 %v3764_v5, %v2347_v14  ;;  %v3651_v49 = vpop.f32.mrb[10].mxu1 }
 0x216   : > { %v3762_v42 = vadd.f32 %v3761_v62, %v3650_v19  ;;  %v3767_v1 = vadd.f32 %v4888_v4, %v3475_v22  ;;  %3099 = vst [vmem:[%s4990_s9 + $0x58] sm:$0xff] %v3067_v32   ;;  %v2350_v7 = vpop.f32.mrb[11].mxu1 }
 0x217   : > { %3098 = vst [vmem:[%s4990_s9 + $0x50] sm:$0xff] %v3062_v36   ;;  %v2440_v13 = vadd.f32 %v3765_v46, %v4972_v11  ;;  %v3771_v61 = vadd.f32 %v3770_v25, %v2350_v7 }
 0x218   : > { %v3476_v30 = vpop.f32.mrb[136].mxu0  ;;  %v2442_v52 = vadd.f32 %v3762_v42, %v4972_v11  ;;  %v3768_v9 = vadd.f32 %v3767_v1, %v3651_v49 }
 0x219   : > { %v3477_v47 = vpop.f32.mrb[137].mxu0  ;;  %v2441_v23 = vadd.f32 %v3771_v61, %v4972_v11  ;;  %v2472_v6 = vmax.f32 %v2440_v13, 0.0 }
 0x21a   : > { %v3478_v31 = vadd.f32 %v3477_v47, %v3476_v30  ;;  %v3479_v45 = vpop.f32.mrb[138].mxu0  ;;  %v2443_v53 = vadd.f32 %v3768_v9, %v4972_v11  ;;  %v2474_v48 = vmax.f32 %v2442_v52, 0.0 }
 0x21b   : > { %v3480_v4 = vpop.f32.mrb[139].mxu0  ;;  %v2473_v16 = vmax.f32 %v2441_v23, 0.0  ;;  %v3654_v2 = vpop.f32.mrb[12].mxu1 }
 0x21c   : > { %v2475_v56 = vmax.f32 %v2443_v53, 0.0  ;;  %v3481_v58 = vadd.f32 %v3480_v4, %v3479_v45  ;;  %v3776_v34 = vadd.f32 %v4902_v21, %v3478_v31  ;;  %v2363_v60 = vpop.f32.mrb[13].mxu1 }
 0x21d   : > { %v3072_v5 = vpack.c.bf16 %v2473_v16, %v2472_v6  ;;  %v3655_v24 = vpop.f32.mrb[14].mxu1 }
 0x21e   : > { %v3077_v51 = vpack.c.bf16 %v2475_v56, %v2474_v48  ;;  %v3782_v18 = vadd.f32 %v4910_v27, %v3481_v58  ;;  %v3777_v37 = vadd.f32 %v3776_v34, %v2363_v60  ;;  %v2366_v33 = vpop.f32.mrb[15].mxu1 }
 0x21f   : > { %3100 = vst [vmem:[%s4990_s9 + $0x60] sm:$0xff] %v3072_v5  }
 0x220   : > { %3101 = vst [vmem:[%s4990_s9 + $0x68] sm:$0xff] %v3077_v51   ;;  %v3482_v38 = vpop.f32.mrb[140].mxu0  ;;  %v2444_v15 = vadd.f32 %v3777_v37, %v4972_v11  ;;  %v3783_v25 = vadd.f32 %v3782_v18, %v2366_v33 }
 0x221   : > { %v3483_v44 = vpop.f32.mrb[141].mxu0 }
 0x222   : > { %v3484_v21 = vadd.f32 %v3483_v44, %v3482_v38  ;;  %v3485_v40 = vpop.f32.mrb[142].mxu0  ;;  %v2445_v43 = vadd.f32 %v3783_v25, %v4972_v11  ;;  %v2476_v17 = vmax.f32 %v2444_v15, 0.0 }
 0x223   : > { %v3486_v63 = vpop.f32.mrb[143].mxu0 }
 0x224   : > { %v3773_v27 = vadd.f32 %v4920_v54, %v3484_v21  ;;  %v3487_v28 = vadd.f32 %v3486_v63, %v3485_v40  ;;  %v2477_v29 = vmax.f32 %v2445_v43, 0.0 }
 0x226   : > { %v3774_v3 = vadd.f32 %v3773_v27, %v3654_v2  ;;  %v3779_v0 = vadd.f32 %v4928_v57, %v3487_v28  ;;  %v3082_v39 = vpack.c.bf16 %v2477_v29, %v2476_v17 }
 0x228   : > { %v2446_v20 = vadd.f32 %v3774_v3, %v4972_v11  ;;  %v3780_v12 = vadd.f32 %v3779_v0, %v3655_v24  ;;  %3102 = vst [vmem:[%s4990_s9 + $0x70] sm:$0xff] %v3082_v39  }
 0x22a   : > { %v2447_v41 = vadd.f32 %v3780_v12, %v4972_v11  ;;  %v2478_v8 = vmax.f32 %v2446_v20, 0.0 }
 0x22c   : > { %v2479_v35 = vmax.f32 %v2447_v41, 0.0 }
 0x22e   : > { %v3087_v59 = vpack.c.bf16 %v2479_v35, %v2478_v8 }
 0x230   : > { %3103 = vst [vmem:[%s4990_s9 + $0x78] sm:$0xff] %v3087_v59  }
 0x231 PF: > { %s13_s14 = sadd.s32 1, %s3967_s14   ;;  %s5115_s12 = smov %s3963_s13 }
 0x232   : > { %p10_p5 = scmp.ge.s32.totalorder %s13_s14, 10   ;;  %s5116_s13 = smov %s5118_s15 }
 0x234   :  { %12 = sbr.rel (!%p10_p5) target bundleno = 2 (0x2), region = 70 }

// kernel: forward.7
= control target key start
LH: loop header
LB: loop body
LE: loop exit
PB: predicated region body
PF: predicated region fallthrough
CT: control target
= control target key end

     0   :  { %s2378_s15 = smov 0   ;;  %s2380_s16 = smov 0   ;;  %s2858_s0 = inlined_call_operand.vmem [shape: bf16[2048,128], index: 0, kind: input, shape index: {}]   ;;  %s2859_s1 = inlined_call_operand.vmem [shape: bf16[128,128], index: 1, kind: input, shape index: {}]   ;;  %s2860_s2 = inlined_call_operand.vmem [shape: f32[1,128], index: 2, kind: input, shape index: {}]   ;;  %s2861_s3 = inlined_call_operand.vmem [shape: bf16[2048,128], index: 3, kind: input, shape index: {}]   ;;  %s2862_s4 = inlined_call_operand.vmem [shape: bf16[2048,128], index: 4, kind: output, shape index: {}]  }
   0x1   :  { %s2382_s17 = smov 0  }
   0x2 LB: > { %s26_s18 = sadd.s32 1, %s2347_s16  ;;  %p1601_p0 = scmp.ge.s32.totalorder %s2351_s17, 1  ;;  %s2351_s17 = sphi %s2382_s17, %s14_s17   ;;  %s2347_s16 = sphi %s2380_s16, %s2873_s16   ;;  %s2343_s15 = sphi %s2378_s15, %s2872_s15  }
   0x3   : > { %p28_p1 = scmp.ge.s32.totalorder %s26_s18, 4  ;;  %p210_p2 = scmp.lt.s32.totalorder %s2351_s17, 5 }
   0x5   : > { %s2875_s18 = smov (%p28_p1, %s26_s18), 0  ;;  %p211_p3 = pnand %p1601_p0, %p210_p2 }
   0x6   : > { %v2289_v0 = vld [vmem:[%s2859_s1] sm:$0xff] (!%p211_p3)   ;;  %s1602_s21 = sshll.u32 (!%p211_p3), %s2343_s15, 6  ;;  %v2290_v1 = vld [vmem:[%s2859_s1 + $0x8] sm:$0xff] (!%p211_p3)   ;;  %v2291_v2 = vld [vmem:[%s2859_s1 + $0x10] sm:$0xff] (!%p211_p3)  }
   0x7   : > { %214 = sbr.rel (%p211_p3) target bundleno = 323 (0x143), region = 36  ;;  %p255_p4 = scmp.lt.s32.totalorder (!%p211_p3), %s1602_s21, 255  ;;  %2169 = vmatprep.subr.bf16.mxu0 (!%p211_p3), %v2289_v0  ;;  %2249 = vmatprep.subr.bf16.mxu1 (!%p211_p3), %v2289_v0  ;;  %v2292_v3 = vld [vmem:[%s2859_s1 + $0x18] sm:$0xff] (!%p211_p3)   ;;  %v2293_v6 = vld [vmem:[%s2859_s1 + $0x20] sm:$0xff] (!%p211_p3)   ;;  %v2294_v7 = vld [vmem:[%s2859_s1 + $0x28] sm:$0xff] (!%p211_p3)  }
   0x8   : > { %2170 = vmatpush3.bf16.msra.mxu0 (!%p211_p3), %v2289_v0  ;;  %2257 = vmatpush3.bf16.msra.mxu1 (!%p211_p3), %v2289_v0  ;;  %v2295_v8 = vld [vmem:[%s2859_s1 + $0x30] sm:$0xff] (!%p211_p3)   ;;  %v2296_v9 = vld [vmem:[%s2859_s1 + $0x38] sm:$0xff] (!%p211_p3)  }
   0x9   : > { %2171 = vmatprep.subr.bf16.mxu0 (!%p211_p3), %v2290_v1  ;;  %2250 = vmatprep.subr.bf16.mxu1 (!%p211_p3), %v2290_v1 }
   0xc   : > { %2172 = vmatpush3.bf16.msra.mxu0 (!%p211_p3), %v2290_v1  ;;  %2258 = vmatpush3.bf16.msra.mxu1 (!%p211_p3), %v2290_v1 }
   0xd   : > { %2173 = vmatprep.subr.bf16.mxu0 (!%p211_p3), %v2291_v2  ;;  %2251 = vmatprep.subr.bf16.mxu1 (!%p211_p3), %v2291_v2 }
   0xe   : > { %s2877_s21 = smov (!%p255_p4, %s1602_s21), 255 }
   0xf   : > { %s2405_s26 = sshll.u32 %s2877_s21, 2 }
  0x10   : > { %s2411_s29 = scalar_lea.vmem %s2858_s0, %s2405_s26  ;;  %2174 = vmatpush3.bf16.msra.mxu0 %v2291_v2  ;;  %2259 = vmatpush3.bf16.msra.mxu1 %v2291_v2  ;;  %s2464_s19 = scalar_lea.vmem %s2861_s3, %s2405_s26 }
  0x11   : > { %v2297_v4 = vld [vmem:[%s2411_s29] sm:$0xff]   ;;  %2175 = vmatprep.subr.bf16.mxu0 %v2292_v3  ;;  %2252 = vmatprep.subr.bf16.mxu1 %v2292_v3  ;;  %v2299_v10 = vld [vmem:[%s2411_s29 + $0x8] sm:$0xff]   ;;  %v2301_v12 = vld [vmem:[%s2411_s29 + $0x10] sm:$0xff]   ;;  %s2595_s24 = scalar_lea.vmem %s2862_s4, %s2405_s26 }
  0x12   : > { %v2298_v5 = vld [vmem:[%s2411_s29 + $0x80] sm:$0xff]   ;;  %2185 = vmatprep.mubr.bf16.mxu0 %v2297_v4  ;;  %v2300_v11 = vld [vmem:[%s2411_s29 + $0x88] sm:$0xff]   ;;  %v2302_v13 = vld [vmem:[%s2411_s29 + $0x90] sm:$0xff]  }
  0x13   : > { %2217 = vmatprep.mubr.bf16.mxu1 %v2298_v5  ;;  %v2303_v14 = vld [vmem:[%s2411_s29 + $0x18] sm:$0xff]   ;;  %v2305_v16 = vld [vmem:[%s2411_s29 + $0x20] sm:$0xff]   ;;  %v2307_v18 = vld [vmem:[%s2411_s29 + $0x28] sm:$0xff]  }
  0x14   : > { %2176 = vmatpush3.bf16.msra.mxu0 %v2292_v3  ;;  %2260 = vmatpush3.bf16.msra.mxu1 %v2292_v3  ;;  %v2304_v15 = vld [vmem:[%s2411_s29 + $0x98] sm:$0xff]   ;;  %v2306_v17 = vld [vmem:[%s2411_s29 + $0xa0] sm:$0xff]   ;;  %v2308_v19 = vld [vmem:[%s2411_s29 + $0xa8] sm:$0xff]  }
  0x15   : > { %2177 = vmatprep.subr.bf16.mxu0 %v2293_v6  ;;  %2253 = vmatprep.subr.bf16.mxu1 %v2293_v6  ;;  %v2309_v20 = vld [vmem:[%s2411_s29 + $0x30] sm:$0xff]   ;;  %v2311_v22 = vld [vmem:[%s2411_s29 + $0x38] sm:$0xff]   ;;  %v2313_v24 = vld [vmem:[%s2411_s29 + $0x40] sm:$0xff]  }
  0x16   : > { %v2310_v21 = vld [vmem:[%s2411_s29 + $0xb0] sm:$0xff]   ;;  %v2312_v23 = vld [vmem:[%s2411_s29 + $0xb8] sm:$0xff]   ;;  %v2314_v25 = vld [vmem:[%s2411_s29 + $0xc0] sm:$0xff]  }
  0x17   : > { %v2315_v26 = vld [vmem:[%s2411_s29 + $0x48] sm:$0xff]   ;;  %v2317_v28 = vld [vmem:[%s2411_s29 + $0x50] sm:$0xff]   ;;  %v2319_v30 = vld [vmem:[%s2411_s29 + $0x58] sm:$0xff]  }
  0x18   : > { %2178 = vmatpush3.bf16.msra.mxu0 %v2293_v6  ;;  %2261 = vmatpush3.bf16.msra.mxu1 %v2293_v6  ;;  %v2316_v27 = vld [vmem:[%s2411_s29 + $0xc8] sm:$0xff]   ;;  %v2318_v29 = vld [vmem:[%s2411_s29 + $0xd0] sm:$0xff]   ;;  %v2320_v31 = vld [vmem:[%s2411_s29 + $0xd8] sm:$0xff]  }
  0x19   : > { %2179 = vmatprep.subr.bf16.mxu0 %v2294_v7  ;;  %2254 = vmatprep.subr.bf16.mxu1 %v2294_v7  ;;  %v2321_v32 = vld [vmem:[%s2411_s29 + $0x60] sm:$0xff]   ;;  %v2323_v34 = vld [vmem:[%s2411_s29 + $0x68] sm:$0xff]   ;;  %v2325_v36 = vld [vmem:[%s2411_s29 + $0x70] sm:$0xff]  }
  0x1a   : > { %v2322_v33 = vld [vmem:[%s2411_s29 + $0xe0] sm:$0xff]   ;;  %v2324_v35 = vld [vmem:[%s2411_s29 + $0xe8] sm:$0xff]   ;;  %v2326_v37 = vld [vmem:[%s2411_s29 + $0xf0] sm:$0xff]  }
  0x1b   : > { %v2327_v38 = vld [vmem:[%s2411_s29 + $0x78] sm:$0xff]   ;;  %v2467_v40 = vld [vmem:[%s2464_s19 + $0x8] sm:$0xff]   ;;  %v2473_v42 = vld [vmem:[%s2464_s19] sm:$0xff]  }
  0x1c   : > { %2180 = vmatpush3.bf16.msra.mxu0 %v2294_v7  ;;  %2262 = vmatpush3.bf16.msra.mxu1 %v2294_v7  ;;  %v2328_v39 = vld [vmem:[%s2411_s29 + $0xf8] sm:$0xff]   ;;  %v2470_v41 = vld [vmem:[%s2464_s19 + $0x88] sm:$0xff]   ;;  %v2476_v43 = vld [vmem:[%s2464_s19 + $0x80] sm:$0xff]   ;;  %v1785_v48 = vunpack.c.l.bf16 %v2467_v40  ;;  %v1781_v50 = vunpack.c.l.bf16 %v2473_v42  ;;  %v1786_v53 = vunpack.c.h.bf16 %v2467_v40  ;;  %v1782_v55 = vunpack.c.h.bf16 %v2473_v42 }
  0x1d   : > { %2181 = vmatprep.subr.bf16.mxu0 %v2295_v8  ;;  %2255 = vmatprep.subr.bf16.mxu1 %v2295_v8  ;;  %v2479_v44 = vld [vmem:[%s2464_s19 + $0x18] sm:$0xff]   ;;  %v2485_v46 = vld [vmem:[%s2464_s19 + $0x10] sm:$0xff]   ;;  %v1849_v49 = vunpack.c.l.bf16 %v2470_v41  ;;  %v1845_v51 = vunpack.c.l.bf16 %v2476_v43  ;;  %v2495_v52 = vld [vmem:[%s2464_s19 + $0x28] sm:$0xff]   ;;  %v1850_v54 = vunpack.c.h.bf16 %v2470_v41  ;;  %v1846_v56 = vunpack.c.h.bf16 %v2476_v43 }
  0x1e   : > { %v2482_v45 = vld [vmem:[%s2464_s19 + $0x98] sm:$0xff]   ;;  %v2488_v47 = vld [vmem:[%s2464_s19 + $0x90] sm:$0xff]   ;;  %v2502_v57 = vld [vmem:[%s2464_s19 + $0xa8] sm:$0xff]   ;;  %v1793_v60 = vunpack.c.l.bf16 %v2479_v44  ;;  %v1789_v62 = vunpack.c.l.bf16 %v2485_v46  ;;  %v1794_v1 = vunpack.c.h.bf16 %v2479_v44  ;;  %v1790_v3 = vunpack.c.h.bf16 %v2485_v46 }
  0x1f   : > { %v2505_v58 = vld [vmem:[%s2464_s19 + $0x20] sm:$0xff]   ;;  %v1857_v61 = vunpack.c.l.bf16 %v2482_v45  ;;  %v1853_v63 = vunpack.c.l.bf16 %v2488_v47  ;;  %v2515_v0 = vld [vmem:[%s2464_s19 + $0x38] sm:$0xff]   ;;  %v1858_v2 = vunpack.c.h.bf16 %v2482_v45  ;;  %v1854_v4 = vunpack.c.h.bf16 %v2488_v47  ;;  %v2525_v6 = vld [vmem:[%s2464_s19 + $0x30] sm:$0xff]  }
  0x20   : > { %2182 = vmatpush3.bf16.msra.mxu0 %v2295_v8  ;;  %2263 = vmatpush3.bf16.msra.mxu1 %v2295_v8  ;;  %v2508_v59 = vld [vmem:[%s2464_s19 + $0xa0] sm:$0xff]   ;;  %v2522_v5 = vld [vmem:[%s2464_s19 + $0xb8] sm:$0xff]   ;;  %v2528_v7 = vld [vmem:[%s2464_s19 + $0xb0] sm:$0xff]   ;;  %v1801_v8 = vunpack.c.l.bf16 %v2495_v52 }
  0x21   : > { %2183 = vmatprep.subr.bf16.mxu0 %v2296_v9  ;;  %2256 = vmatprep.subr.bf16.mxu1 %v2296_v9 }
  0x24   : > { %2184 = vmatpush3.bf16.msra.mxu0 %v2296_v9  ;;  %2264 = vmatpush3.bf16.msra.mxu1 %v2296_v9  ;;  %v1865_v9 = vunpack.c.l.bf16 %v2502_v57 }
  0x27   : > { %2186 = vmatmul.mubr.bf16.vlgmr.msra.gmra.mrb[0].mxu0 %v2299_v10  ;;  %2218 = vmatmul.mubr.bf16.vlgmr.msra.gmra.mrb[0].mxu1 %v2300_v11  ;;  %v1797_v10 = vunpack.c.l.bf16 %v2505_v58  ;;  %v1861_v11 = vunpack.c.l.bf16 %v2508_v59 }
  0x28   : > { %2189 = vmatprep.mubr.bf16.mxu0 %v2301_v12  ;;  %2221 = vmatprep.mubr.bf16.mxu1 %v2302_v13  ;;  %v2537_v12 = vld [vmem:[%s2860_s2] ss:$0 sm:$0xff]  ;;  %v1802_v13 = vunpack.c.h.bf16 %v2495_v52 }
  0x2f   : > { %2190 = vmatmul.mubr.bf16.gmra.mrb[4].mxu0 %v2303_v14  ;;  %2222 = vmatmul.mubr.bf16.gmra.mrb[4].mxu1 %v2304_v15  ;;  %v1866_v14 = vunpack.c.h.bf16 %v2502_v57  ;;  %v1798_v15 = vunpack.c.h.bf16 %v2505_v58 }
  0x30   : > { %2193 = vmatprep.mubr.bf16.mxu0 %v2305_v16  ;;  %2225 = vmatprep.mubr.bf16.mxu1 %v2306_v17  ;;  %v1862_v16 = vunpack.c.h.bf16 %v2508_v59  ;;  %v2544_v17 = vld [vmem:[%s2464_s19 + $0x48] sm:$0xff]  }
  0x37   : > { %2194 = vmatmul.mubr.bf16.gmra.mrb[8].mxu0 %v2307_v18  ;;  %2226 = vmatmul.mubr.bf16.gmra.mrb[8].mxu1 %v2308_v19  ;;  %v2547_v18 = vld [vmem:[%s2464_s19 + $0xc8] sm:$0xff]   ;;  %v1809_v19 = vunpack.c.l.bf16 %v2515_v0 }
  0x38   : > { %2197 = vmatprep.mubr.bf16.mxu0 %v2309_v20  ;;  %2229 = vmatprep.mubr.bf16.mxu1 %v2310_v21  ;;  %v1873_v20 = vunpack.c.l.bf16 %v2522_v5 }
  0x3f   : > { %2198 = vmatmul.mubr.bf16.gmra.mrb[12].mxu0 %v2311_v22  ;;  %2230 = vmatmul.mubr.bf16.gmra.mrb[12].mxu1 %v2312_v23  ;;  %v2554_v23 = vld [vmem:[%s2464_s19 + $0x40] sm:$0xff]  }
  0x40   : > { %2201 = vmatprep.mubr.bf16.mxu0 %v2313_v24  ;;  %2233 = vmatprep.mubr.bf16.mxu1 %v2314_v25  ;;  %v2557_v24 = vld [vmem:[%s2464_s19 + $0xc0] sm:$0xff]  }
  0x47   : > { %2202 = vmatmul.mubr.bf16.gmra.mrb[16].mxu0 %v2315_v26  ;;  %2234 = vmatmul.mubr.bf16.gmra.mrb[16].mxu1 %v2316_v27 }
  0x48   : > { %2205 = vmatprep.mubr.bf16.mxu0 %v2317_v28  ;;  %2237 = vmatprep.mubr.bf16.mxu1 %v2318_v29 }
  0x4f   : > { %2206 = vmatmul.mubr.bf16.gmra.mrb[20].mxu0 %v2319_v30  ;;  %2238 = vmatmul.mubr.bf16.gmra.mrb[20].mxu1 %v2320_v31  ;;  %v1877_v30 = vunpack.c.l.bf16 %v2557_v24 }
  0x50   : > { %2209 = vmatprep.mubr.bf16.mxu0 %v2321_v32  ;;  %2241 = vmatprep.mubr.bf16.mxu1 %v2322_v33 }
  0x57   : > { %2210 = vmatmul.mubr.bf16.gmra.mrb[24].mxu0 %v2323_v34  ;;  %2242 = vmatmul.mubr.bf16.gmra.mrb[24].mxu1 %v2324_v35 }
  0x58   : > { %2213 = vmatprep.mubr.bf16.mxu0 %v2325_v36  ;;  %2245 = vmatprep.mubr.bf16.mxu1 %v2326_v37 }
  0x5f   : > { %2214 = vmatmul.mubr.bf16.gmra.mrb[28].mxu0 %v2327_v38  ;;  %2246 = vmatmul.mubr.bf16.gmra.mrb[28].mxu1 %v2328_v39 }
  0xfa   : > { %v2187_v25 = vpop.f32.mrb[0].mxu0  ;;  %v2219_v26 = vpop.f32.mrb[0].mxu1 }
  0xfb   : > { %v656_v31 = vadd.f32 %v2187_v25, %v2537_v12  ;;  %v784_v32 = vadd.f32 %v2219_v26, %v2537_v12  ;;  %v647_v33 = vpop.f32.mrb[1].mxu0  ;;  %v775_v34 = vpop.f32.mrb[1].mxu1 }
  0xfc   : > { %v648_v37 = vadd.f32 %v2537_v12, %v647_v33  ;;  %v776_v38 = vadd.f32 %v2537_v12, %v775_v34  ;;  %v2188_v39 = vpop.f32.mrb[2].mxu0  ;;  %v2220_v28 = vpop.f32.mrb[2].mxu1 }
  0xfd   : > { %v1032_v27 = vadd.f32 %v1785_v48, %v656_v31  ;;  %v1064_v25 = vadd.f32 %v1849_v49, %v784_v32  ;;  %v659_v26 = vadd.f32 %v2188_v39, %v2537_v12  ;;  %v787_v22 = vadd.f32 %v2220_v28, %v2537_v12  ;;  %v650_v21 = vpop.f32.mrb[3].mxu0  ;;  %v778_v35 = vpop.f32.mrb[3].mxu1 }
  0xfe   : > { %v1030_v36 = vadd.f32 %v1781_v50, %v648_v37  ;;  %v1062_v33 = vadd.f32 %v1845_v51, %v776_v38  ;;  %v651_v34 = vadd.f32 %v2537_v12, %v650_v21  ;;  %v779_v29 = vadd.f32 %v2537_v12, %v778_v35 }
  0xff   : > { %v1033_v48 = vadd.f32 %v1786_v53, %v659_v26  ;;  %v1065_v49 = vadd.f32 %v1850_v54, %v787_v22  ;;  %v1818_v28 = vunpack.c.h.bf16 %v2544_v17  ;;  %v1882_v31 = vunpack.c.h.bf16 %v2547_v18 }
 0x100   : > { %v1031_v50 = vadd.f32 %v1782_v55, %v651_v34  ;;  %v1063_v51 = vadd.f32 %v1846_v56, %v779_v29  ;;  %v1814_v21 = vunpack.c.h.bf16 %v2554_v23  ;;  %v1878_v32 = vunpack.c.h.bf16 %v2557_v24 }
 0x101   : > { %v1096_v35 = vmax.f32 %v1032_v27, 0.0  ;;  %v1128_v40 = vmax.f32 %v1064_v25, 0.0  ;;  %v1097_v53 = vmax.f32 %v1033_v48, 0.0  ;;  %v1129_v37 = vmax.f32 %v1065_v49, 0.0 }
 0x102   : > { %v1094_v41 = vmax.f32 %v1030_v36, 0.0  ;;  %v1126_v54 = vmax.f32 %v1062_v33, 0.0  ;;  %v1095_v42 = vmax.f32 %v1031_v50, 0.0  ;;  %v1127_v55 = vmax.f32 %v1063_v51, 0.0  ;;  %v2191_v43 = vpop.f32.mrb[4].mxu0  ;;  %v2223_v56 = vpop.f32.mrb[4].mxu1 }
 0x103   : > { %v1915_v22 = vpack.c.bf16 %v1097_v53, %v1096_v35  ;;  %v1995_v27 = vpack.c.bf16 %v1129_v37, %v1128_v40  ;;  %v672_v29 = vadd.f32 %v2191_v43, %v2537_v12  ;;  %v800_v36 = vadd.f32 %v2223_v56, %v2537_v12  ;;  %v663_v38 = vpop.f32.mrb[5].mxu0  ;;  %v791_v39 = vpop.f32.mrb[5].mxu1  ;;  %v2602_v50 = vld [vmem:[%s2464_s19 + $0x58] sm:$0xff]  }
 0x104   : > { %v1910_v25 = vpack.c.bf16 %v1095_v42, %v1094_v41  ;;  %v1990_v26 = vpack.c.bf16 %v1127_v55, %v1126_v54  ;;  %v664_v33 = vadd.f32 %v2537_v12, %v663_v38  ;;  %v792_v34 = vadd.f32 %v2537_v12, %v791_v39  ;;  %v2192_v48 = vpop.f32.mrb[6].mxu0  ;;  %v2224_v49 = vpop.f32.mrb[6].mxu1  ;;  %v2605_v51 = vld [vmem:[%s2464_s19 + $0xd8] sm:$0xff]   ;;  %v2616_v42 = vld [vmem:[%s2464_s19 + $0x50] sm:$0xff]  }
 0x105   : > { %2098 = vst [vmem:[%s2595_s24 + $0x8] sm:$0xff] %v1915_v22   ;;  %2114 = vst [vmem:[%s2595_s24 + $0x88] sm:$0xff] %v1995_v27   ;;  %v1036_v35 = vadd.f32 %v1793_v60, %v672_v29  ;;  %v1068_v40 = vadd.f32 %v1857_v61, %v800_v36  ;;  %v675_v53 = vadd.f32 %v2192_v48, %v2537_v12  ;;  %v666_v41 = vpop.f32.mrb[7].mxu0  ;;  %v794_v54 = vpop.f32.mrb[7].mxu1  ;;  %v2619_v55 = vld [vmem:[%s2464_s19 + $0xd0] sm:$0xff]   ;;  %v1825_v29 = vunpack.c.l.bf16 %v2602_v50 }
 0x106   : > { %v803_v37 = vadd.f32 %v2224_v49, %v2537_v12  ;;  %1911 = vst [vmem:[%s2595_s24] sm:$0xff] %v1910_v25   ;;  %2113 = vst [vmem:[%s2595_s24 + $0x80] sm:$0xff] %v1990_v26   ;;  %v1034_v43 = vadd.f32 %v1789_v62, %v664_v33  ;;  %v1066_v60 = vadd.f32 %v1853_v63, %v792_v34  ;;  %v1889_v36 = vunpack.c.l.bf16 %v2605_v51 }
 0x107   : > { %v667_v61 = vadd.f32 %v2537_v12, %v666_v41  ;;  %v795_v56 = vadd.f32 %v2537_v12, %v794_v54  ;;  %v1037_v22 = vadd.f32 %v1794_v1, %v675_v53  ;;  %v1821_v38 = vunpack.c.l.bf16 %v2616_v42 }
 0x108   : > { %v1069_v27 = vadd.f32 %v1858_v2, %v803_v37  ;;  %v1885_v39 = vunpack.c.l.bf16 %v2619_v55  ;;  %v1100_v25 = vmax.f32 %v1036_v35, 0.0  ;;  %v1132_v44 = vmax.f32 %v1068_v40, 0.0 }
 0x109   : > { %v1035_v62 = vadd.f32 %v1790_v3, %v667_v61  ;;  %v1067_v63 = vadd.f32 %v1854_v4, %v795_v56  ;;  %v1101_v1 = vmax.f32 %v1037_v22, 0.0  ;;  %v1098_v45 = vmax.f32 %v1034_v43, 0.0 }
 0x10a   : > { %v1133_v26 = vmax.f32 %v1069_v27, 0.0  ;;  %v1130_v2 = vmax.f32 %v1066_v60, 0.0  ;;  %v2195_v48 = vpop.f32.mrb[8].mxu0  ;;  %v2227_v46 = vpop.f32.mrb[8].mxu1 }
 0x10b   : > { %v1099_v33 = vmax.f32 %v1035_v62, 0.0  ;;  %v1131_v34 = vmax.f32 %v1067_v63, 0.0  ;;  %v1925_v3 = vpack.c.bf16 %v1101_v1, %v1100_v25  ;;  %v688_v47 = vadd.f32 %v2195_v48, %v2537_v12  ;;  %v679_v53 = vpop.f32.mrb[9].mxu0  ;;  %v807_v35 = vpop.f32.mrb[9].mxu1 }
 0x10c   : > { %v2005_v49 = vpack.c.bf16 %v1133_v26, %v1132_v44  ;;  %v816_v4 = vadd.f32 %v2227_v46, %v2537_v12  ;;  %v680_v41 = vadd.f32 %v2537_v12, %v679_v53  ;;  %v808_v54 = vadd.f32 %v2537_v12, %v807_v35  ;;  %v2196_v43 = vpop.f32.mrb[10].mxu0  ;;  %v2228_v60 = vpop.f32.mrb[10].mxu1 }
 0x10d   : > { %v1920_v40 = vpack.c.bf16 %v1099_v33, %v1098_v45  ;;  %v2000_v37 = vpack.c.bf16 %v1131_v34, %v1130_v2  ;;  %2100 = vst [vmem:[%s2595_s24 + $0x18] sm:$0xff] %v1925_v3   ;;  %v1040_v61 = vadd.f32 %v1801_v8, %v688_v47  ;;  %v691_v22 = vadd.f32 %v2196_v43, %v2537_v12  ;;  %v682_v62 = vpop.f32.mrb[11].mxu0  ;;  %v810_v63 = vpop.f32.mrb[11].mxu1 }
 0x10e   : > { %2116 = vst [vmem:[%s2595_s24 + $0x98] sm:$0xff] %v2005_v49   ;;  %v1072_v56 = vadd.f32 %v1865_v9, %v816_v4  ;;  %v819_v27 = vadd.f32 %v2228_v60, %v2537_v12  ;;  %v1038_v25 = vadd.f32 %v1797_v10, %v680_v41  ;;  %v1070_v44 = vadd.f32 %v1861_v11, %v808_v54 }
 0x10f   : > { %2099 = vst [vmem:[%s2595_s24 + $0x10] sm:$0xff] %v1920_v40   ;;  %2115 = vst [vmem:[%s2595_s24 + $0x90] sm:$0xff] %v2000_v37   ;;  %v683_v1 = vadd.f32 %v2537_v12, %v682_v62  ;;  %v811_v8 = vadd.f32 %v2537_v12, %v810_v63  ;;  %v1041_v9 = vadd.f32 %v1802_v13, %v691_v22  ;;  %v1826_v45 = vunpack.c.h.bf16 %v2602_v50 }
 0x110   : > { %v1073_v26 = vadd.f32 %v1866_v14, %v819_v27  ;;  %v1890_v2 = vunpack.c.h.bf16 %v2605_v51  ;;  %v1822_v33 = vunpack.c.h.bf16 %v2616_v42  ;;  %v1886_v34 = vunpack.c.h.bf16 %v2619_v55 }
 0x111   : > { %v1039_v10 = vadd.f32 %v1798_v15, %v683_v1  ;;  %v1071_v11 = vadd.f32 %v1862_v16, %v811_v8  ;;  %v1104_v48 = vmax.f32 %v1040_v61, 0.0  ;;  %v1136_v52 = vmax.f32 %v1072_v56, 0.0  ;;  %v2678_v61 = vld [vmem:[%s2464_s19 + $0x68] sm:$0xff]   ;;  %v2692_v1 = vld [vmem:[%s2464_s19 + $0x60] sm:$0xff]  }
 0x112   : > { %v1105_v13 = vmax.f32 %v1041_v9, 0.0  ;;  %v1137_v46 = vmax.f32 %v1073_v26, 0.0  ;;  %v1102_v57 = vmax.f32 %v1038_v25, 0.0  ;;  %v1134_v14 = vmax.f32 %v1070_v44, 0.0  ;;  %v2199_v47 = vpop.f32.mrb[12].mxu0  ;;  %v2231_v58 = vpop.f32.mrb[12].mxu1 }
 0x113   : > { %v1103_v3 = vmax.f32 %v1039_v10, 0.0  ;;  %v1135_v49 = vmax.f32 %v1071_v11, 0.0  ;;  %v704_v16 = vadd.f32 %v2199_v47, %v2537_v12  ;;  %v832_v4 = vadd.f32 %v2231_v58, %v2537_v12  ;;  %v695_v53 = vpop.f32.mrb[13].mxu0  ;;  %v823_v35 = vpop.f32.mrb[13].mxu1  ;;  %v2681_v56 = vld [vmem:[%s2464_s19 + $0xe8] sm:$0xff]   ;;  %v2695_v8 = vld [vmem:[%s2464_s19 + $0xe0] sm:$0xff]  }
 0x114   : > { %v1935_v59 = vpack.c.bf16 %v1105_v13, %v1104_v48  ;;  %v2015_v15 = vpack.c.bf16 %v1137_v46, %v1136_v52  ;;  %v696_v41 = vadd.f32 %v2537_v12, %v695_v53  ;;  %v824_v54 = vadd.f32 %v2537_v12, %v823_v35  ;;  %v2200_v43 = vpop.f32.mrb[14].mxu0  ;;  %v2232_v60 = vpop.f32.mrb[14].mxu1 }
 0x115   : > { %v1930_v40 = vpack.c.bf16 %v1103_v3, %v1102_v57  ;;  %v2010_v37 = vpack.c.bf16 %v1135_v49, %v1134_v14  ;;  %v1044_v22 = vadd.f32 %v1809_v19, %v704_v16  ;;  %v1076_v27 = vadd.f32 %v1873_v20, %v832_v4  ;;  %v698_v25 = vpop.f32.mrb[15].mxu0  ;;  %v826_v44 = vpop.f32.mrb[15].mxu1 }
 0x116   : > { %2102 = vst [vmem:[%s2595_s24 + $0x28] sm:$0xff] %v1935_v59   ;;  %2118 = vst [vmem:[%s2595_s24 + $0xa8] sm:$0xff] %v2015_v15   ;;  %v707_v62 = vadd.f32 %v2200_v43, %v2537_v12  ;;  %v835_v63 = vadd.f32 %v2232_v60, %v2537_v12  ;;  %v2863_v9 = vunpack.c.l.bf16 %v2525_v6  ;;  %v2864_v19 = vunpack.c.l.bf16 %v2528_v7 }
 0x117   : > { %2101 = vst [vmem:[%s2595_s24 + $0x20] sm:$0xff] %v1930_v40   ;;  %2117 = vst [vmem:[%s2595_s24 + $0xa0] sm:$0xff] %v2010_v37   ;;  %v699_v20 = vadd.f32 %v2537_v12, %v698_v25  ;;  %v827_v11 = vadd.f32 %v2537_v12, %v826_v44  ;;  %v2865_v48 = vunpack.c.h.bf16 %v2515_v0  ;;  %v2866_v13 = vunpack.c.h.bf16 %v2522_v5 }
 0x118   : > { %v1042_v26 = vadd.f32 %v2863_v9, %v696_v41  ;;  %v1074_v10 = vadd.f32 %v2864_v19, %v824_v54  ;;  %v1833_v57 = vunpack.c.l.bf16 %v2678_v61  ;;  %v1897_v14 = vunpack.c.l.bf16 %v2681_v56 }
 0x119   : > { %v1045_v52 = vadd.f32 %v2865_v48, %v707_v62  ;;  %v1077_v46 = vadd.f32 %v2866_v13, %v835_v63  ;;  %v2867_v3 = vunpack.c.h.bf16 %v2525_v6  ;;  %v2868_v47 = vunpack.c.h.bf16 %v2528_v7 }
 0x11a   : > { %v1829_v59 = vunpack.c.l.bf16 %v2692_v1  ;;  %v1893_v15 = vunpack.c.l.bf16 %v2695_v8  ;;  %v1108_v16 = vmax.f32 %v1044_v22, 0.0  ;;  %v1140_v0 = vmax.f32 %v1076_v27, 0.0  ;;  %v2203_v41 = vpop.f32.mrb[16].mxu0  ;;  %v2235_v6 = vpop.f32.mrb[16].mxu1 }
 0x11b   : > { %v1043_v49 = vadd.f32 %v2867_v3, %v699_v20  ;;  %v1075_v58 = vadd.f32 %v2868_v47, %v827_v11  ;;  %v1109_v4 = vmax.f32 %v1045_v52, 0.0  ;;  %v1141_v53 = vmax.f32 %v1077_v46, 0.0  ;;  %v711_v62 = vpop.f32.mrb[17].mxu0  ;;  %v839_v22 = vpop.f32.mrb[17].mxu1 }
 0x11c   : > { %v1106_v5 = vmax.f32 %v1042_v26, 0.0  ;;  %v1138_v35 = vmax.f32 %v1074_v10, 0.0  ;;  %v720_v7 = vadd.f32 %v2203_v41, %v2537_v12  ;;  %v848_v60 = vadd.f32 %v2235_v6, %v2537_v12  ;;  %v2204_v9 = vpop.f32.mrb[18].mxu0  ;;  %v2236_v26 = vpop.f32.mrb[18].mxu1 }
 0x11d   : > { %v1107_v40 = vmax.f32 %v1043_v49, 0.0  ;;  %v1139_v37 = vmax.f32 %v1075_v58, 0.0  ;;  %v1945_v54 = vpack.c.bf16 %v1109_v4, %v1108_v16  ;;  %v2025_v43 = vpack.c.bf16 %v1141_v53, %v1140_v0  ;;  %v714_v13 = vpop.f32.mrb[19].mxu0  ;;  %v842_v46 = vpop.f32.mrb[19].mxu1 }
 0x11e   : > { %v712_v25 = vadd.f32 %v2537_v12, %v711_v62  ;;  %v840_v44 = vadd.f32 %v2537_v12, %v839_v22  ;;  %v2869_v19 = vunpack.c.l.bf16 %v2544_v17  ;;  %v2870_v20 = vunpack.c.l.bf16 %v2547_v18 }
 0x11f   : > { %v1940_v27 = vpack.c.bf16 %v1107_v40, %v1106_v5  ;;  %v2020_v63 = vpack.c.bf16 %v1139_v37, %v1138_v35  ;;  %2104 = vst [vmem:[%s2595_s24 + $0x38] sm:$0xff] %v1945_v54   ;;  %2120 = vst [vmem:[%s2595_s24 + $0xb8] sm:$0xff] %v2025_v43   ;;  %v723_v48 = vadd.f32 %v2204_v9, %v2537_v12  ;;  %v2871_v3 = vunpack.c.l.bf16 %v2554_v23 }
 0x120   : > { %v1048_v10 = vadd.f32 %v2869_v19, %v720_v7  ;;  %v1080_v11 = vadd.f32 %v2870_v20, %v848_v60  ;;  %v851_v52 = vadd.f32 %v2236_v26, %v2537_v12  ;;  %v1078_v47 = vadd.f32 %v1877_v30, %v840_v44  ;;  %v2754_v19 = vld [vmem:[%s2464_s19 + $0x78] sm:$0xff]  }
 0x121   : > { %2103 = vst [vmem:[%s2595_s24 + $0x30] sm:$0xff] %v1940_v27   ;;  %2119 = vst [vmem:[%s2595_s24 + $0xb0] sm:$0xff] %v2020_v63   ;;  %v1046_v49 = vadd.f32 %v2871_v3, %v712_v25  ;;  %v715_v58 = vadd.f32 %v2537_v12, %v714_v13  ;;  %v843_v16 = vadd.f32 %v2537_v12, %v842_v46  ;;  %v1834_v53 = vunpack.c.h.bf16 %v2678_v61  ;;  %v2768_v3 = vld [vmem:[%s2464_s19 + $0x70] sm:$0xff]  }
 0x122   : > { %v1049_v0 = vadd.f32 %v1818_v28, %v723_v48  ;;  %v1081_v4 = vadd.f32 %v1882_v31, %v851_v52  ;;  %v1898_v5 = vunpack.c.h.bf16 %v2681_v56  ;;  %v1830_v40 = vunpack.c.h.bf16 %v2692_v1  ;;  %v2207_v7 = vpop.f32.mrb[20].mxu0  ;;  %v2239_v23 = vpop.f32.mrb[20].mxu1 }
 0x123   : > { %v1047_v35 = vadd.f32 %v1814_v21, %v715_v58  ;;  %v1079_v30 = vadd.f32 %v1878_v32, %v843_v16  ;;  %v1894_v37 = vunpack.c.h.bf16 %v2695_v8  ;;  %v1112_v41 = vmax.f32 %v1048_v10, 0.0  ;;  %v727_v62 = vpop.f32.mrb[21].mxu0  ;;  %v855_v22 = vpop.f32.mrb[21].mxu1  ;;  %v2757_v10 = vld [vmem:[%s2464_s19 + $0xf8] sm:$0xff]  }
 0x124   : > { %v1144_v17 = vmax.f32 %v1080_v11, 0.0  ;;  %v1113_v28 = vmax.f32 %v1049_v0, 0.0  ;;  %v1145_v6 = vmax.f32 %v1081_v4, 0.0  ;;  %v1110_v18 = vmax.f32 %v1046_v49, 0.0  ;;  %v2208_v9 = vpop.f32.mrb[22].mxu0  ;;  %v2240_v26 = vpop.f32.mrb[22].mxu1 }
 0x125   : > { %v1142_v31 = vmax.f32 %v1078_v47, 0.0  ;;  %v1111_v54 = vmax.f32 %v1047_v35, 0.0  ;;  %v1143_v43 = vmax.f32 %v1079_v30, 0.0  ;;  %v736_v32 = vadd.f32 %v2207_v7, %v2537_v12  ;;  %v730_v13 = vpop.f32.mrb[23].mxu0  ;;  %v858_v46 = vpop.f32.mrb[23].mxu1  ;;  %v2771_v49 = vld [vmem:[%s2464_s19 + $0xf0] sm:$0xff]  }
 0x126   : > { %v1955_v24 = vpack.c.bf16 %v1113_v28, %v1112_v41  ;;  %v2035_v21 = vpack.c.bf16 %v1145_v6, %v1144_v17  ;;  %v864_v60 = vadd.f32 %v2239_v23, %v2537_v12  ;;  %v728_v25 = vadd.f32 %v2537_v12, %v727_v62 }
 0x127   : > { %v1950_v27 = vpack.c.bf16 %v1111_v54, %v1110_v18  ;;  %v2030_v63 = vpack.c.bf16 %v1143_v43, %v1142_v31  ;;  %v856_v44 = vadd.f32 %v2537_v12, %v855_v22  ;;  %v1052_v20 = vadd.f32 %v1825_v29, %v736_v32 }
 0x128   : > { %2106 = vst [vmem:[%s2595_s24 + $0x48] sm:$0xff] %v1955_v24   ;;  %2122 = vst [vmem:[%s2595_s24 + $0xc8] sm:$0xff] %v2035_v21   ;;  %v1084_v11 = vadd.f32 %v1889_v36, %v864_v60  ;;  %v739_v48 = vadd.f32 %v2208_v9, %v2537_v12  ;;  %v867_v52 = vadd.f32 %v2240_v26, %v2537_v12  ;;  %v1841_v4 = vunpack.c.l.bf16 %v2754_v19 }
 0x129   : > { %2105 = vst [vmem:[%s2595_s24 + $0x40] sm:$0xff] %v1950_v27   ;;  %2121 = vst [vmem:[%s2595_s24 + $0xc0] sm:$0xff] %v2030_v63   ;;  %v1050_v47 = vadd.f32 %v1821_v38, %v728_v25  ;;  %v1082_v29 = vadd.f32 %v1885_v39, %v856_v44  ;;  %v731_v36 = vadd.f32 %v2537_v12, %v730_v13  ;;  %v1905_v35 = vunpack.c.l.bf16 %v2757_v10 }
 0x12a   : > { %v859_v58 = vadd.f32 %v2537_v12, %v858_v46  ;;  %v1053_v16 = vadd.f32 %v1826_v45, %v739_v48  ;;  %v1085_v0 = vadd.f32 %v1890_v2, %v867_v52  ;;  %v1837_v30 = vunpack.c.l.bf16 %v2768_v3  ;;  %v2211_v31 = vpop.f32.mrb[24].mxu0  ;;  %v2243_v42 = vpop.f32.mrb[24].mxu1 }
 0x12b   : > { %v1051_v38 = vadd.f32 %v1822_v33, %v731_v36  ;;  %v1901_v41 = vunpack.c.l.bf16 %v2771_v49  ;;  %v1116_v17 = vmax.f32 %v1052_v20, 0.0  ;;  %v1148_v50 = vmax.f32 %v1084_v11, 0.0  ;;  %v743_v43 = vpop.f32.mrb[25].mxu0  ;;  %v871_v7 = vpop.f32.mrb[25].mxu1 }
 0x12c   : > { %v1083_v39 = vadd.f32 %v1886_v34, %v859_v58  ;;  %v1117_v45 = vmax.f32 %v1053_v16, 0.0  ;;  %v1149_v28 = vmax.f32 %v1085_v0, 0.0  ;;  %v1114_v51 = vmax.f32 %v1050_v47, 0.0  ;;  %v2212_v60 = vpop.f32.mrb[26].mxu0  ;;  %v2244_v62 = vpop.f32.mrb[26].mxu1 }
 0x12d   : > { %v1146_v2 = vmax.f32 %v1082_v29, 0.0  ;;  %v1115_v6 = vmax.f32 %v1051_v38, 0.0  ;;  %v752_v55 = vadd.f32 %v2211_v31, %v2537_v12  ;;  %v880_v34 = vadd.f32 %v2243_v42, %v2537_v12  ;;  %v746_v44 = vpop.f32.mrb[27].mxu0  ;;  %v874_v9 = vpop.f32.mrb[27].mxu1 }
 0x12e   : > { %v1147_v18 = vmax.f32 %v1083_v39, 0.0  ;;  %v1965_v33 = vpack.c.bf16 %v1117_v45, %v1116_v17  ;;  %v2045_v54 = vpack.c.bf16 %v1149_v28, %v1148_v50  ;;  %v744_v21 = vadd.f32 %v2537_v12, %v743_v43 }
 0x12f   : > { %v1960_v23 = vpack.c.bf16 %v1115_v6, %v1114_v51  ;;  %v872_v32 = vadd.f32 %v2537_v12, %v871_v7  ;;  %v1056_v22 = vadd.f32 %v1833_v57, %v752_v55  ;;  %v1088_v27 = vadd.f32 %v1897_v14, %v880_v34 }
 0x130   : > { %v2040_v24 = vpack.c.bf16 %v1147_v18, %v1146_v2  ;;  %2108 = vst [vmem:[%s2595_s24 + $0x58] sm:$0xff] %v1965_v33   ;;  %2124 = vst [vmem:[%s2595_s24 + $0xd8] sm:$0xff] %v2045_v54   ;;  %v755_v63 = vadd.f32 %v2212_v60, %v2537_v12  ;;  %v883_v25 = vadd.f32 %v2244_v62, %v2537_v12  ;;  %v1842_v52 = vunpack.c.h.bf16 %v2754_v19 }
 0x131   : > { %2107 = vst [vmem:[%s2595_s24 + $0x50] sm:$0xff] %v1960_v23   ;;  %v1054_v26 = vadd.f32 %v1829_v59, %v744_v21  ;;  %v1086_v20 = vadd.f32 %v1893_v15, %v872_v32  ;;  %v747_v11 = vadd.f32 %v2537_v12, %v746_v44  ;;  %v875_v57 = vadd.f32 %v2537_v12, %v874_v9 }
 0x132   : > { %2123 = vst [vmem:[%s2595_s24 + $0xd0] sm:$0xff] %v2040_v24   ;;  %v1057_v14 = vadd.f32 %v1834_v53, %v755_v63  ;;  %v1089_v48 = vadd.f32 %v1898_v5, %v883_v25  ;;  %v1906_v13 = vunpack.c.h.bf16 %v2757_v10  ;;  %v1838_v46 = vunpack.c.h.bf16 %v2768_v3  ;;  %v2215_v0 = vpop.f32.mrb[28].mxu0  ;;  %v2247_v1 = vpop.f32.mrb[28].mxu1 }
 0x133   : > { %v1055_v59 = vadd.f32 %v1830_v40, %v747_v11  ;;  %v1087_v15 = vadd.f32 %v1894_v37, %v875_v57  ;;  %v1902_v47 = vunpack.c.h.bf16 %v2771_v49  ;;  %v1120_v29 = vmax.f32 %v1056_v22, 0.0  ;;  %v759_v39 = vpop.f32.mrb[29].mxu0  ;;  %v887_v17 = vpop.f32.mrb[29].mxu1 }
 0x134   : > { %v1152_v61 = vmax.f32 %v1088_v27, 0.0  ;;  %v1121_v53 = vmax.f32 %v1057_v14, 0.0  ;;  %v1153_v36 = vmax.f32 %v1089_v48, 0.0  ;;  %v1118_v56 = vmax.f32 %v1054_v26, 0.0  ;;  %v2216_v2 = vpop.f32.mrb[30].mxu0  ;;  %v2248_v6 = vpop.f32.mrb[30].mxu1 }
 0x135   : > { %v1150_v5 = vmax.f32 %v1086_v20, 0.0  ;;  %v1119_v58 = vmax.f32 %v1055_v59, 0.0  ;;  %v1151_v16 = vmax.f32 %v1087_v15, 0.0  ;;  %v768_v8 = vadd.f32 %v2215_v0, %v2537_v12  ;;  %v762_v54 = vpop.f32.mrb[31].mxu0  ;;  %v890_v55 = vpop.f32.mrb[31].mxu1 }
 0x136   : > { %v1975_v40 = vpack.c.bf16 %v1121_v53, %v1120_v29  ;;  %v2055_v38 = vpack.c.bf16 %v1153_v36, %v1152_v61  ;;  %v896_v37 = vadd.f32 %v2247_v1, %v2537_v12  ;;  %v760_v28 = vadd.f32 %v2537_v12, %v759_v39 }
 0x137   : > { %v1970_v50 = vpack.c.bf16 %v1119_v58, %v1118_v56  ;;  %v2050_v45 = vpack.c.bf16 %v1151_v16, %v1150_v5  ;;  %v888_v51 = vadd.f32 %v2537_v12, %v887_v17  ;;  %v1060_v18 = vadd.f32 %v1841_v4, %v768_v8 }
 0x138   : > { %2110 = vst [vmem:[%s2595_s24 + $0x68] sm:$0xff] %v1975_v40   ;;  %2126 = vst [vmem:[%s2595_s24 + $0xe8] sm:$0xff] %v2055_v38   ;;  %v1092_v31 = vadd.f32 %v1905_v35, %v896_v37  ;;  %v771_v42 = vadd.f32 %v2216_v2, %v2537_v12  ;;  %v899_v33 = vadd.f32 %v2248_v6, %v2537_v12 }
 0x139   : > { %2109 = vst [vmem:[%s2595_s24 + $0x60] sm:$0xff] %v1970_v50   ;;  %2125 = vst [vmem:[%s2595_s24 + $0xe0] sm:$0xff] %v2050_v45   ;;  %v1058_v34 = vadd.f32 %v1837_v30, %v760_v28  ;;  %v1090_v43 = vadd.f32 %v1901_v41, %v888_v51  ;;  %v763_v19 = vadd.f32 %v2537_v12, %v762_v54  ;;  %v1124_v24 = vmax.f32 %v1060_v18, 0.0 }
 0x13a   : > { %v891_v4 = vadd.f32 %v2537_v12, %v890_v55  ;;  %v1061_v10 = vadd.f32 %v1842_v52, %v771_v42  ;;  %v1093_v35 = vadd.f32 %v1906_v13, %v899_v33  ;;  %v1156_v21 = vmax.f32 %v1092_v31, 0.0 }
 0x13b   : > { %v1059_v7 = vadd.f32 %v1838_v46, %v763_v19  ;;  %v1122_v30 = vmax.f32 %v1058_v34, 0.0  ;;  %v1154_v60 = vmax.f32 %v1090_v43, 0.0 }
 0x13c   : > { %v1091_v23 = vadd.f32 %v1902_v47, %v891_v4  ;;  %v1125_v32 = vmax.f32 %v1061_v10, 0.0  ;;  %v1157_v3 = vmax.f32 %v1093_v35, 0.0 }
 0x13d   : > { %v1123_v49 = vmax.f32 %v1059_v7, 0.0 }
 0x13e   : > { %v1155_v41 = vmax.f32 %v1091_v23, 0.0  ;;  %v1985_v62 = vpack.c.bf16 %v1125_v32, %v1124_v24  ;;  %v2065_v22 = vpack.c.bf16 %v1157_v3, %v1156_v21 }
 0x13f   : > { %v1980_v27 = vpack.c.bf16 %v1123_v49, %v1122_v30 }
 0x140   : > { %v2060_v12 = vpack.c.bf16 %v1155_v41, %v1154_v60  ;;  %2112 = vst [vmem:[%s2595_s24 + $0x78] sm:$0xff] %v1985_v62   ;;  %2128 = vst [vmem:[%s2595_s24 + $0xf8] sm:$0xff] %v2065_v22  }
 0x141   : > { %2111 = vst [vmem:[%s2595_s24 + $0x70] sm:$0xff] %v1980_v27  }
 0x142   : > { %2127 = vst [vmem:[%s2595_s24 + $0xf0] sm:$0xff] %v2060_v12  }
 0x143 PF: > { %s14_s17 = sadd.s32 1, %s2351_s17   ;;  %s2872_s15 = smov %s2347_s16 }
 0x144   : > { %p11_p5 = scmp.ge.s32.totalorder %s14_s17, 6   ;;  %s2873_s16 = smov %s2875_s18 }
 0x146   :  { %13 = sbr.rel (!%p11_p5) target bundleno = 2 (0x2), region = 75 }

</bundles_post_ra>
